<compile_context>
chip_gen: v5e
topology: v5e:2x2
jax: 0.10.0
libtpu: 0.0.40
codegen_flags: <defaults>
</compile_context>

<pallas_src>
from collections import namedtuple

import jax
import jax.numpy as jnp
import numpy as np
from jax.experimental import pallas as pl
from jax.experimental.pallas import tpu as pltpu

# ----------------------------------------------------------------------------
# Padded-flat activation geometry
# ----------------------------------------------------------------------------
Geom = namedtuple("Geom", "H W Wp T M R")  # Wp=W+2, T=(H+2)*Wp, M=margin, R=rows


def _make_geom(h, w):
    wp = w + 2
    t = (h + 2) * wp
    m = wp + 1
    return Geom(h, w, wp, t, m, t + 2 * m)


G16 = _make_geom(16, 16)   # input / features output (16x16)
G8 = _make_geom(8, 8)      # module1 output          (8x8)
G4 = _make_geom(4, 4)      # module2 output          (4x4)
G2 = _make_geom(2, 2)      # module3 output          (2x2)

_CDT = jnp.bfloat16        # MXU operand dtype (accumulate + epilogue stay f32)


# ----------------------------------------------------------------------------
# In-kernel conv helpers (trace-time Python, fully static offsets)
# ----------------------------------------------------------------------------
def _conv3x3_s1(read, g, w_ref, shift_ref, relu):
    """Stride-1 3x3 conv over the whole padded domain (g.T rows).

    read(start, size) -> (size, C_in) f32 window of the source buffer.
    Returns f32 (g.T, C_out); non-interior rows hold garbage and must be
    masked by the caller before being stored as the next layer's padding.
    """
    w_taps = [w_ref[t] for t in range(9)]
    shift = shift_ref[...]
    acc = None
    for kh in range(3):
        for kw in range(3):
            off = (kh - 1) * g.Wp + (kw - 1)
            slab = read(g.M + off, g.T).astype(_CDT)
            d = jnp.dot(slab, w_taps[kh * 3 + kw],
                        preferred_element_type=jnp.float32)
            acc = d if acc is None else acc + d
    y = acc + shift
    if relu:
        y = jnp.maximum(y, 0.0)
    return y


def _conv3x3_s2(src_ref, g_in, w_ref, shift_ref, dst_ref, g_out):
    """Stride-2 3x3 conv + folded BN + ReLU; writes interior rows of dst
    (padded layout).  One matmul per tap: the per-output-row stride-2 gathers
    are stacked along sublanes so the MXU weights are loaded only 9 times."""
    h, w = g_out.H, g_out.W
    w_taps = [w_ref[t] for t in range(9)]
    shift = shift_ref[...]
    acc = None
    for kh in range(3):
        for kw in range(3):
            rows = [src_ref[pl.ds(g_in.M + (2 * ho + kh) * g_in.Wp + kw,
                                  w, stride=2), :]
                    for ho in range(h)]
            lhs = jnp.concatenate(rows, axis=0).astype(_CDT)     # (h*w, C_in)
            d = jnp.dot(lhs, w_taps[kh * 3 + kw],
                        preferred_element_type=jnp.float32)
            acc = d if acc is None else acc + d
    y = jnp.maximum(acc + shift, 0.0)                            # (h*w, C_out)
    for ho in range(h):
        dst_ref[pl.ds(g_out.M + (ho + 1) * g_out.Wp + 1, w), :] = \
            y[ho * w:(ho + 1) * w, :]


# ----------------------------------------------------------------------------
# Fused whole-network kernel (one image per grid step)
# ----------------------------------------------------------------------------
def _qfcnn_kernel(x_ref,
                  wf_ref, bf_ref,
                  w11_ref, s11_ref, w12_ref, s12_ref,
                  w21_ref, s21_ref, w22_ref, s22_ref,
                  w31_ref, s31_ref, w32_ref, s32_ref,
                  mk16_ref, mk8_ref, mk4_ref, mk2_ref,
                  o_ref,
                  a1, a2, a3, a4, a5, a6):
    # Margins / borders of the VMEM activation buffers must be zero (padding).
    for buf in (a1, a2, a3, a4, a5, a6):
        buf[...] = jnp.zeros_like(buf)

    # features: 3x3 / stride 1, bias only (no BN, no ReLU).  The host supplies
    # an im2col'ed input (K = 9 taps * 3 channels, zero-padded to 32), so this
    # is a single MXU matmul per image.
    y = jnp.dot(x_ref[...].astype(_CDT), wf_ref[...],
                preferred_element_type=jnp.float32) + bf_ref[...]
    a1[pl.ds(G16.M, G16.T), :] = y * mk16_ref[...]

    # module 1 (32 -> 64).  Dropout2d(p=0.1) is identity at inference.
    _conv3x3_s2(a1, G16, w11_ref, s11_ref, a2, G8)
    y = _conv3x3_s1(lambda s, n: a2[pl.ds(s, n), :], G8, w12_ref, s12_ref,
                    relu=True)
    a3[pl.ds(G8.M, G8.T), :] = y * mk8_ref[...]

    # module 2 (64 -> 128)
    _conv3x3_s2(a3, G8, w21_ref, s21_ref, a4, G4)
    y = _conv3x3_s1(lambda s, n: a4[pl.ds(s, n), :], G4, w22_ref, s22_ref,
                    relu=True)
    a5[pl.ds(G4.M, G4.T), :] = y * mk4_ref[...]

    # module 3 (128 -> 128) with the adaptive (1,1) avg-pool fused in.
    _conv3x3_s2(a5, G4, w31_ref, s31_ref, a6, G2)
    y = _conv3x3_s1(lambda s, n: a6[pl.ds(s, n), :], G2, w32_ref, s32_ref,
                    relu=True)
    o_ref[...] = jnp.sum(y * mk2_ref[...], axis=0, keepdims=True) * 0.25


# ----------------------------------------------------------------------------
# Host-side parameter folding / layout prep (tiny, once per call)
# ----------------------------------------------------------------------------
def _fold_conv_bn(p, with_bn):
    """PyTorch conv (+ optional eval-mode BN) -> (9, C_in, C_out) bf16 tap
    weights (BN scale folded in) and a (1, C_out) f32 shift."""
    w = p["w"]                                        # (C_out, C_in, 3, 3)
    c_out, c_in = w.shape[0], w.shape[1]
    w9 = jnp.transpose(w, (2, 3, 1, 0)).reshape(9, c_in, c_out)
    if with_bn:
        inv = p["gamma"] / jnp.sqrt(p["var"] + 1e-5)
        shift = (p["b"] - p["mean"]) * inv + p["beta"]
        w9 = w9 * inv[None, None, :]
    else:
        shift = p["b"]
    return w9.astype(_CDT), shift.reshape(1, c_out).astype(jnp.float32)


def _im2col_input(x_nhwc, g, k_pad):
    """Host-side im2col for the tiny 3-channel features conv only.
    Row ph*g.Wp+pw, column t*C+c (t = kh*3+kw) holds x zero-padded-by-2 at
    spatial (ph+kh, pw+kw), channel c.  Result: (N, g.T, k_pad) f32."""
    n, _, _, c = x_nhwc.shape
    xp = jnp.pad(x_nhwc, ((0, 0), (2, 2), (2, 2), (0, 0)))
    wins = [xp[:, kh:kh + g.H + 2, kw:kw + g.W + 2, :]
            for kh in range(3) for kw in range(3)]
    col = jnp.stack(wins, axis=3).reshape(n, g.T, 9 * c)
    return jnp.pad(col, ((0, 0), (0, 0), (0, k_pad - 9 * c)))


def _interior_mask(g):
    m = np.zeros((g.H + 2, g.Wp), np.float32)
    m[1:g.H + 1, 1:g.W + 1] = 1.0
    return jnp.asarray(m.reshape(g.T, 1))


@jax.jit
def qfcnn_forward(x_nchw, params):
    n = x_nchw.shape[0]
    x = jnp.transpose(x_nchw, (0, 2, 3, 1)).astype(jnp.float32)   # NCHW -> NHWC
    x_col = _im2col_input(x, G16, k_pad=32)                       # (N, 324, 32)

    wf9, bf = _fold_conv_bn(params["features"], with_bn=False)    # (9,3,32)
    wf = jnp.pad(wf9.reshape(27, 32), ((0, 5), (0, 0)))           # K 27 -> 32
    w11, s11 = _fold_conv_bn(params["m1"]["conv1"], True)
    w12, s12 = _fold_conv_bn(params["m1"]["conv2"], True)
    w21, s21 = _fold_conv_bn(params["m2"]["conv1"], True)
    w22, s22 = _fold_conv_bn(params["m2"]["conv2"], True)
    w31, s31 = _fold_conv_bn(params["m3"]["conv1"], True)
    w32, s32 = _fold_conv_bn(params["m3"]["conv2"], True)

    operands = (x_col,
                wf, bf, w11, s11, w12, s12, w21, s21, w22, s22,
                w31, s31, w32, s32,
                _interior_mask(G16), _interior_mask(G8),
                _interior_mask(G4), _interior_mask(G2))

    def const_spec(a):
        nd = a.ndim
        return pl.BlockSpec(a.shape, lambda i, _nd=nd: (0,) * _nd)

    in_specs = [pl.BlockSpec((None, G16.T, 32), lambda i: (i, 0, 0))]
    in_specs += [const_spec(a) for a in operands[1:]]

    out = pl.pallas_call(
        _qfcnn_kernel,
        out_shape=jax.ShapeDtypeStruct((n, 1, 128), jnp.float32),
        grid=(n,),
        in_specs=in_specs,
        out_specs=pl.BlockSpec((None, 1, 128), lambda i: (i, 0, 0)),
        scratch_shapes=[
            pltpu.VMEM((G16.R, 32), jnp.float32),    # features out (16x16x32)
            pltpu.VMEM((G8.R, 64), jnp.float32),     # m1.conv1 out (8x8x64)
            pltpu.VMEM((G8.R, 64), jnp.float32),     # m1.conv2 out (8x8x64)
            pltpu.VMEM((G4.R, 128), jnp.float32),    # m2.conv1 out (4x4x128)
            pltpu.VMEM((G4.R, 128), jnp.float32),    # m2.conv2 out (4x4x128)
            pltpu.VMEM((G2.R, 128), jnp.float32),    # m3.conv1 out (2x2x128)
        ],
        compiler_params=pltpu.CompilerParams(
            dimension_semantics=("parallel",)),      # v7x: one image per core
    )(*operands)
    return out.reshape(n, 128)


# ----------------------------------------------------------------------------
# Pure-JAX reference (same bf16 quantization points as the kernel)
# ----------------------------------------------------------------------------
@jax.jit
def qfcnn_reference(x_nchw, params):
    def conv(x, p, stride, bn_relu):
        w9, shift = _fold_conv_bn(p, bn_relu)
        w = w9.astype(jnp.float32).reshape(3, 3, w9.shape[1], w9.shape[2])
        xb = x.astype(_CDT).astype(jnp.float32)
        y = jax.lax.conv_general_dilated(
            xb, w, window_strides=(stride, stride), padding=((1, 1), (1, 1)),
            dimension_numbers=("NHWC", "HWIO", "NHWC"),
            precision=jax.lax.Precision.HIGHEST)
        y = y + shift.reshape(1, 1, 1, -1)
        return jnp.maximum(y, 0.0) if bn_relu else y

    x = jnp.transpose(x_nchw, (0, 2, 3, 1)).astype(jnp.float32)
    x = conv(x, params["features"], 1, False)
    for m in ("m1", "m2", "m3"):
        x = conv(x, params[m]["conv1"], 2, True)
        x = conv(x, params[m]["conv2"], 1, True)
    return jnp.mean(x, axis=(1, 2))                  # (N, 128)


# ----------------------------------------------------------------------------
# Parameter construction
# ----------------------------------------------------------------------------
def init_conv(key, c_in, c_out, k=3):
    kw, kb = jax.random.split(key)
    fan_in = c_in * k * k
    w = jax.random.normal(kw, (c_out, c_in, k, k), jnp.float32) * (2.0 / fan_in) ** 0.5
    b = jax.random.normal(kb, (c_out,), jnp.float32) * 0.01
    return {"w": w, "b": b}


def init_bn(key, c):
    k1, k2, k3, k4 = jax.random.split(key, 4)
    return {
        "gamma": jax.random.uniform(k1, (c,), jnp.float32, minval=0.5, maxval=1.5),
        "beta": jax.random.normal(k2, (c,), jnp.float32) * 0.1,
        "mean": jax.random.normal(k3, (c,), jnp.float32) * 0.1,
        "var": jax.random.uniform(k4, (c,), jnp.float32, minval=0.5, maxval=1.5),
    }


def init_module(key, c_in, c_out):
    k1, k2, k3, k4 = jax.random.split(key, 4)
    return {
        "conv1": {**init_conv(k1, c_in, c_out), **init_bn(k2, c_out)},
        "conv2": {**init_conv(k3, c_out, c_out), **init_bn(k4, c_out)},
    }


def init_qfcnn(key):
    k0, k1, k2, k3 = jax.random.split(key, 4)
    return {
        "features": init_conv(k0, 3, 32),
        "m1": init_module(k1, 32, 64),
        "m2": init_module(k2, 64, 128),
        "m3": init_module(k3, 128, 128),
    }


if __name__ == "__main__":
    key = jax.random.PRNGKey(0)
    kx, kp = jax.random.split(key)
    # PyTorch input convention: NCHW, batch=2, 3 channels, 16x16 spatial.
    x = jax.random.normal(kx, (2, 3, 16, 16), jnp.float32)
    params = init_qfcnn(kp)

    out = qfcnn_forward(x, params)
    jax.block_until_ready(out)
    assert out.shape == (2, 128), out.shape
    assert out.dtype == jnp.float32

    # Numerical sanity check vs a pure-JAX reference with matching quantization.
    ref = qfcnn_reference(x, params)
    np.testing.assert_allclose(np.asarray(out), np.asarray(ref), rtol=2e-2, atol=2e-2)

    print("KERNEL_OK")
</pallas_src>

<mosaic_0001>
module attributes {stable_mosaic.version = 11 : i64} {
  func.func @_qfcnn_kernel(%arg0: i32, %arg1: memref<1x324x32xf32, #tpu.memory_space<vmem>>, %arg2: memref<32x32xbf16, #tpu.memory_space<vmem>>, %arg3: memref<1x32xf32, #tpu.memory_space<vmem>>, %arg4: memref<9x32x64xbf16, #tpu.memory_space<vmem>>, %arg5: memref<1x64xf32, #tpu.memory_space<vmem>>, %arg6: memref<9x64x64xbf16, #tpu.memory_space<vmem>>, %arg7: memref<1x64xf32, #tpu.memory_space<vmem>>, %arg8: memref<9x64x128xbf16, #tpu.memory_space<vmem>>, %arg9: memref<1x128xf32, #tpu.memory_space<vmem>>, %arg10: memref<9x128x128xbf16, #tpu.memory_space<vmem>>, %arg11: memref<1x128xf32, #tpu.memory_space<vmem>>, %arg12: memref<9x128x128xbf16, #tpu.memory_space<vmem>>, %arg13: memref<1x128xf32, #tpu.memory_space<vmem>>, %arg14: memref<9x128x128xbf16, #tpu.memory_space<vmem>>, %arg15: memref<1x128xf32, #tpu.memory_space<vmem>>, %arg16: memref<324x1xf32, #tpu.memory_space<vmem>>, %arg17: memref<100x1xf32, #tpu.memory_space<vmem>>, %arg18: memref<36x1xf32, #tpu.memory_space<vmem>>, %arg19: memref<16x1xf32, #tpu.memory_space<vmem>>, %arg20: memref<1x1x128xf32, #tpu.memory_space<vmem>>, %arg21: memref<362x32xf32, #tpu.memory_space<vmem>>, %arg22: memref<122x64xf32, #tpu.memory_space<vmem>>, %arg23: memref<122x64xf32, #tpu.memory_space<vmem>>, %arg24: memref<50x128xf32, #tpu.memory_space<vmem>>, %arg25: memref<50x128xf32, #tpu.memory_space<vmem>>, %arg26: memref<26x128xf32, #tpu.memory_space<vmem>>) attributes {dimension_semantics = [#tpu.dimension_semantics<parallel>], iteration_bounds = array<i64: 2>, scalar_prefetch = 0 : i64, scratch_operands = 6 : i64, tpu.core_type = #tpu.core_type<tc>, window_params = [{transform_indices = @transform_0, window_bounds = array<i64: 1, 324, 32>}, {pipeline_mode = #tpu.pipeline_mode<synchronous>, transform_indices = @transform_1, window_bounds = array<i64: 32, 32>}, {pipeline_mode = #tpu.pipeline_mode<synchronous>, transform_indices = @transform_2, window_bounds = array<i64: 1, 32>}, {pipeline_mode = #tpu.pipeline_mode<synchronous>, transform_indices = @transform_3, window_bounds = array<i64: 9, 32, 64>}, {pipeline_mode = #tpu.pipeline_mode<synchronous>, transform_indices = @transform_4, window_bounds = array<i64: 1, 64>}, {pipeline_mode = #tpu.pipeline_mode<synchronous>, transform_indices = @transform_5, window_bounds = array<i64: 9, 64, 64>}, {pipeline_mode = #tpu.pipeline_mode<synchronous>, transform_indices = @transform_6, window_bounds = array<i64: 1, 64>}, {pipeline_mode = #tpu.pipeline_mode<synchronous>, transform_indices = @transform_7, window_bounds = array<i64: 9, 64, 128>}, {pipeline_mode = #tpu.pipeline_mode<synchronous>, transform_indices = @transform_8, window_bounds = array<i64: 1, 128>}, {pipeline_mode = #tpu.pipeline_mode<synchronous>, transform_indices = @transform_9, window_bounds = array<i64: 9, 128, 128>}, {pipeline_mode = #tpu.pipeline_mode<synchronous>, transform_indices = @transform_10, window_bounds = array<i64: 1, 128>}, {pipeline_mode = #tpu.pipeline_mode<synchronous>, transform_indices = @transform_11, window_bounds = array<i64: 9, 128, 128>}, {pipeline_mode = #tpu.pipeline_mode<synchronous>, transform_indices = @transform_12, window_bounds = array<i64: 1, 128>}, {pipeline_mode = #tpu.pipeline_mode<synchronous>, transform_indices = @transform_13, window_bounds = array<i64: 9, 128, 128>}, {pipeline_mode = #tpu.pipeline_mode<synchronous>, transform_indices = @transform_14, window_bounds = array<i64: 1, 128>}, {pipeline_mode = #tpu.pipeline_mode<synchronous>, transform_indices = @transform_15, window_bounds = array<i64: 324, 1>}, {pipeline_mode = #tpu.pipeline_mode<synchronous>, transform_indices = @transform_16, window_bounds = array<i64: 100, 1>}, {pipeline_mode = #tpu.pipeline_mode<synchronous>, transform_indices = @transform_17, window_bounds = array<i64: 36, 1>}, {pipeline_mode = #tpu.pipeline_mode<synchronous>, transform_indices = @transform_18, window_bounds = array<i64: 16, 1>}, {transform_indices = @transform_19, window_bounds = array<i64: 1, 1, 128>}]} {
    %cst = arith.constant 0.000000e+00 : f32
    %0 = vector.broadcast %cst : f32 to vector<362x32xf32>
    %c0 = arith.constant 0 : index
    %c0_0 = arith.constant 0 : index
    %1 = vector.load %arg21[%c0, %c0_0] : memref<362x32xf32, #tpu.memory_space<vmem>>, vector<362x32xf32>
    tpu.vector_store %arg21[%c0, %c0_0], %0 {strides = array<i32>} : memref<362x32xf32, #tpu.memory_space<vmem>>, vector<362x32xf32>,
    %cst_1 = arith.constant 0.000000e+00 : f32
    %2 = vector.broadcast %cst_1 : f32 to vector<122x64xf32>
    %c0_2 = arith.constant 0 : index
    %c0_3 = arith.constant 0 : index
    %3 = vector.load %arg22[%c0_2, %c0_3] : memref<122x64xf32, #tpu.memory_space<vmem>>, vector<122x64xf32>
    tpu.vector_store %arg22[%c0_2, %c0_3], %2 {strides = array<i32>} : memref<122x64xf32, #tpu.memory_space<vmem>>, vector<122x64xf32>,
    %cst_4 = arith.constant 0.000000e+00 : f32
    %4 = vector.broadcast %cst_4 : f32 to vector<122x64xf32>
    %c0_5 = arith.constant 0 : index
    %c0_6 = arith.constant 0 : index
    %5 = vector.load %arg23[%c0_5, %c0_6] : memref<122x64xf32, #tpu.memory_space<vmem>>, vector<122x64xf32>
    tpu.vector_store %arg23[%c0_5, %c0_6], %4 {strides = array<i32>} : memref<122x64xf32, #tpu.memory_space<vmem>>, vector<122x64xf32>,
    %cst_7 = arith.constant 0.000000e+00 : f32
    %6 = vector.broadcast %cst_7 : f32 to vector<50x128xf32>
    %c0_8 = arith.constant 0 : index
    %c0_9 = arith.constant 0 : index
    %7 = vector.load %arg24[%c0_8, %c0_9] : memref<50x128xf32, #tpu.memory_space<vmem>>, vector<50x128xf32>
    tpu.vector_store %arg24[%c0_8, %c0_9], %6 {strides = array<i32>} : memref<50x128xf32, #tpu.memory_space<vmem>>, vector<50x128xf32>,
    %cst_10 = arith.constant 0.000000e+00 : f32
    %8 = vector.broadcast %cst_10 : f32 to vector<50x128xf32>
    %c0_11 = arith.constant 0 : index
    %c0_12 = arith.constant 0 : index
    %9 = vector.load %arg25[%c0_11, %c0_12] : memref<50x128xf32, #tpu.memory_space<vmem>>, vector<50x128xf32>
    tpu.vector_store %arg25[%c0_11, %c0_12], %8 {strides = array<i32>} : memref<50x128xf32, #tpu.memory_space<vmem>>, vector<50x128xf32>,
    %cst_13 = arith.constant 0.000000e+00 : f32
    %10 = vector.broadcast %cst_13 : f32 to vector<26x128xf32>
    %c0_14 = arith.constant 0 : index
    %c0_15 = arith.constant 0 : index
    %11 = vector.load %arg26[%c0_14, %c0_15] : memref<26x128xf32, #tpu.memory_space<vmem>>, vector<26x128xf32>
    tpu.vector_store %arg26[%c0_14, %c0_15], %10 {strides = array<i32>} : memref<26x128xf32, #tpu.memory_space<vmem>>, vector<26x128xf32>,
    %c0_16 = arith.constant 0 : index
    %c0_17 = arith.constant 0 : index
    %c0_18 = arith.constant 0 : index
    %12 = vector.load %arg1[%c0_16, %c0_17, %c0_18] : memref<1x324x32xf32, #tpu.memory_space<vmem>>, vector<1x324x32xf32>
    %13 = vector.shape_cast %12 : vector<1x324x32xf32> to vector<324x32xf32>
    %14 = arith.truncf %13 : vector<324x32xf32> to vector<324x32xbf16>
    %c0_19 = arith.constant 0 : index
    %c0_20 = arith.constant 0 : index
    %15 = vector.load %arg2[%c0_19, %c0_20] : memref<32x32xbf16, #tpu.memory_space<vmem>>, vector<32x32xbf16>
    %cst_21 = arith.constant dense<0.000000e+00> : vector<324x32xf32>
    %16 = tpu.matmul %14, %15, %cst_21 {dimension_numbers = #tpu.dot_dimension_numbers<[1], [0], [0], [1], [0, 0, 1, 1], [], []>} : vector<324x32xbf16>, vector<32x32xbf16>, vector<324x32xf32> -> vector<324x32xf32>
    %c0_22 = arith.constant 0 : index
    %c0_23 = arith.constant 0 : index
    %17 = vector.load %arg3[%c0_22, %c0_23] : memref<1x32xf32, #tpu.memory_space<vmem>>, vector<1x32xf32>
    %18 = vector.broadcast %17 : vector<1x32xf32> to vector<324x32xf32>
    %19 = arith.addf %16, %18 : vector<324x32xf32>
    %c0_24 = arith.constant 0 : index
    %c0_25 = arith.constant 0 : index
    %20 = vector.load %arg16[%c0_24, %c0_25] : memref<324x1xf32, #tpu.memory_space<vmem>>, vector<324x1xf32>
    %21 = vector.broadcast %20 : vector<324x1xf32> to vector<324x32xf32>
    %22 = arith.mulf %19, %21 : vector<324x32xf32>
    %c19 = arith.constant 19 : index
    %c0_26 = arith.constant 0 : index
    %23 = vector.load %arg21[%c19, %c0_26] : memref<362x32xf32, #tpu.memory_space<vmem>>, vector<324x32xf32>
    tpu.vector_store %arg21[%c19, %c0_26], %22 {strides = array<i32>} : memref<362x32xf32, #tpu.memory_space<vmem>>, vector<324x32xf32>,
    %c0_27 = arith.constant 0 : index
    %c0_28 = arith.constant 0 : index
    %c0_29 = arith.constant 0 : index
    %24 = vector.load %arg4[%c0_27, %c0_28, %c0_29] : memref<9x32x64xbf16, #tpu.memory_space<vmem>>, vector<1x32x64xbf16>
    %25 = vector.shape_cast %24 : vector<1x32x64xbf16> to vector<32x64xbf16>
    %c1 = arith.constant 1 : index
    %c0_30 = arith.constant 0 : index
    %c0_31 = arith.constant 0 : index
    %26 = vector.load %arg4[%c1, %c0_30, %c0_31] : memref<9x32x64xbf16, #tpu.memory_space<vmem>>, vector<1x32x64xbf16>
    %27 = vector.shape_cast %26 : vector<1x32x64xbf16> to vector<32x64xbf16>
    %c2 = arith.constant 2 : index
    %c0_32 = arith.constant 0 : index
    %c0_33 = arith.constant 0 : index
    %28 = vector.load %arg4[%c2, %c0_32, %c0_33] : memref<9x32x64xbf16, #tpu.memory_space<vmem>>, vector<1x32x64xbf16>
    %29 = vector.shape_cast %28 : vector<1x32x64xbf16> to vector<32x64xbf16>
    %c3 = arith.constant 3 : index
    %c0_34 = arith.constant 0 : index
    %c0_35 = arith.constant 0 : index
    %30 = vector.load %arg4[%c3, %c0_34, %c0_35] : memref<9x32x64xbf16, #tpu.memory_space<vmem>>, vector<1x32x64xbf16>
    %31 = vector.shape_cast %30 : vector<1x32x64xbf16> to vector<32x64xbf16>
    %c4 = arith.constant 4 : index
    %c0_36 = arith.constant 0 : index
    %c0_37 = arith.constant 0 : index
    %32 = vector.load %arg4[%c4, %c0_36, %c0_37] : memref<9x32x64xbf16, #tpu.memory_space<vmem>>, vector<1x32x64xbf16>
    %33 = vector.shape_cast %32 : vector<1x32x64xbf16> to vector<32x64xbf16>
    %c5 = arith.constant 5 : index
    %c0_38 = arith.constant 0 : index
    %c0_39 = arith.constant 0 : index
    %34 = vector.load %arg4[%c5, %c0_38, %c0_39] : memref<9x32x64xbf16, #tpu.memory_space<vmem>>, vector<1x32x64xbf16>
    %35 = vector.shape_cast %34 : vector<1x32x64xbf16> to vector<32x64xbf16>
    %c6 = arith.constant 6 : index
    %c0_40 = arith.constant 0 : index
    %c0_41 = arith.constant 0 : index
    %36 = vector.load %arg4[%c6, %c0_40, %c0_41] : memref<9x32x64xbf16, #tpu.memory_space<vmem>>, vector<1x32x64xbf16>
    %37 = vector.shape_cast %36 : vector<1x32x64xbf16> to vector<32x64xbf16>
    %c7 = arith.constant 7 : index
    %c0_42 = arith.constant 0 : index
    %c0_43 = arith.constant 0 : index
    %38 = vector.load %arg4[%c7, %c0_42, %c0_43] : memref<9x32x64xbf16, #tpu.memory_space<vmem>>, vector<1x32x64xbf16>
    %39 = vector.shape_cast %38 : vector<1x32x64xbf16> to vector<32x64xbf16>
    %c8 = arith.constant 8 : index
    %c0_44 = arith.constant 0 : index
    %c0_45 = arith.constant 0 : index
    %40 = vector.load %arg4[%c8, %c0_44, %c0_45] : memref<9x32x64xbf16, #tpu.memory_space<vmem>>, vector<1x32x64xbf16>
    %41 = vector.shape_cast %40 : vector<1x32x64xbf16> to vector<32x64xbf16>
    %c0_46 = arith.constant 0 : index
    %c0_47 = arith.constant 0 : index
    %42 = vector.load %arg5[%c0_46, %c0_47] : memref<1x64xf32, #tpu.memory_space<vmem>>, vector<1x64xf32>
    %c19_48 = arith.constant 19 : index
    %c0_49 = arith.constant 0 : index
    %43 = tpu.strided_load %arg21[%c19_48, %c0_49] {strides = array<i32: 2, 1>} : memref<362x32xf32, #tpu.memory_space<vmem>>, vector<8x32xf32>
    %c55 = arith.constant 55 : index
    %c0_50 = arith.constant 0 : index
    %44 = tpu.strided_load %arg21[%c55, %c0_50] {strides = array<i32: 2, 1>} : memref<362x32xf32, #tpu.memory_space<vmem>>, vector<8x32xf32>
    %c91 = arith.constant 91 : index
    %c0_51 = arith.constant 0 : index
    %45 = tpu.strided_load %arg21[%c91, %c0_51] {strides = array<i32: 2, 1>} : memref<362x32xf32, #tpu.memory_space<vmem>>, vector<8x32xf32>
    %c127 = arith.constant 127 : index
    %c0_52 = arith.constant 0 : index
    %46 = tpu.strided_load %arg21[%c127, %c0_52] {strides = array<i32: 2, 1>} : memref<362x32xf32, #tpu.memory_space<vmem>>, vector<8x32xf32>
    %c163 = arith.constant 163 : index
    %c0_53 = arith.constant 0 : index
    %47 = tpu.strided_load %arg21[%c163, %c0_53] {strides = array<i32: 2, 1>} : memref<362x32xf32, #tpu.memory_space<vmem>>, vector<8x32xf32>
    %c199 = arith.constant 199 : index
    %c0_54 = arith.constant 0 : index
    %48 = tpu.strided_load %arg21[%c199, %c0_54] {strides = array<i32: 2, 1>} : memref<362x32xf32, #tpu.memory_space<vmem>>, vector<8x32xf32>
    %c235 = arith.constant 235 : index
    %c0_55 = arith.constant 0 : index
    %49 = tpu.strided_load %arg21[%c235, %c0_55] {strides = array<i32: 2, 1>} : memref<362x32xf32, #tpu.memory_space<vmem>>, vector<8x32xf32>
    %c271 = arith.constant 271 : index
    %c0_56 = arith.constant 0 : index
    %50 = tpu.strided_load %arg21[%c271, %c0_56] {strides = array<i32: 2, 1>} : memref<362x32xf32, #tpu.memory_space<vmem>>, vector<8x32xf32>
    %51 = tpu.concatenate %43, %44, %45, %46, %47, %48, %49, %50 in 0 : vector<8x32xf32>, vector<8x32xf32>, vector<8x32xf32>, vector<8x32xf32>, vector<8x32xf32>, vector<8x32xf32>, vector<8x32xf32>, vector<8x32xf32> -> vector<64x32xf32>
    %52 = arith.truncf %51 : vector<64x32xf32> to vector<64x32xbf16>
    %cst_57 = arith.constant dense<0.000000e+00> : vector<64x64xf32>
    %53 = tpu.matmul %52, %25, %cst_57 {dimension_numbers = #tpu.dot_dimension_numbers<[1], [0], [0], [1], [0, 0, 1, 1], [], []>} : vector<64x32xbf16>, vector<32x64xbf16>, vector<64x64xf32> -> vector<64x64xf32>
    %c20 = arith.constant 20 : index
    %c0_58 = arith.constant 0 : index
    %54 = tpu.strided_load %arg21[%c20, %c0_58] {strides = array<i32: 2, 1>} : memref<362x32xf32, #tpu.memory_space<vmem>>, vector<8x32xf32>
    %c56 = arith.constant 56 : index
    %c0_59 = arith.constant 0 : index
    %55 = tpu.strided_load %arg21[%c56, %c0_59] {strides = array<i32: 2, 1>} : memref<362x32xf32, #tpu.memory_space<vmem>>, vector<8x32xf32>
    %c92 = arith.constant 92 : index
    %c0_60 = arith.constant 0 : index
    %56 = tpu.strided_load %arg21[%c92, %c0_60] {strides = array<i32: 2, 1>} : memref<362x32xf32, #tpu.memory_space<vmem>>, vector<8x32xf32>
    %c128 = arith.constant 128 : index
    %c0_61 = arith.constant 0 : index
    %57 = tpu.strided_load %arg21[%c128, %c0_61] {strides = array<i32: 2, 1>} : memref<362x32xf32, #tpu.memory_space<vmem>>, vector<8x32xf32>
    %c164 = arith.constant 164 : index
    %c0_62 = arith.constant 0 : index
    %58 = tpu.strided_load %arg21[%c164, %c0_62] {strides = array<i32: 2, 1>} : memref<362x32xf32, #tpu.memory_space<vmem>>, vector<8x32xf32>
    %c200 = arith.constant 200 : index
    %c0_63 = arith.constant 0 : index
    %59 = tpu.strided_load %arg21[%c200, %c0_63] {strides = array<i32: 2, 1>} : memref<362x32xf32, #tpu.memory_space<vmem>>, vector<8x32xf32>
    %c236 = arith.constant 236 : index
    %c0_64 = arith.constant 0 : index
    %60 = tpu.strided_load %arg21[%c236, %c0_64] {strides = array<i32: 2, 1>} : memref<362x32xf32, #tpu.memory_space<vmem>>, vector<8x32xf32>
    %c272 = arith.constant 272 : index
    %c0_65 = arith.constant 0 : index
    %61 = tpu.strided_load %arg21[%c272, %c0_65] {strides = array<i32: 2, 1>} : memref<362x32xf32, #tpu.memory_space<vmem>>, vector<8x32xf32>
    %62 = tpu.concatenate %54, %55, %56, %57, %58, %59, %60, %61 in 0 : vector<8x32xf32>, vector<8x32xf32>, vector<8x32xf32>, vector<8x32xf32>, vector<8x32xf32>, vector<8x32xf32>, vector<8x32xf32>, vector<8x32xf32> -> vector<64x32xf32>
    %63 = arith.truncf %62 : vector<64x32xf32> to vector<64x32xbf16>
    %cst_66 = arith.constant dense<0.000000e+00> : vector<64x64xf32>
    %64 = tpu.matmul %63, %27, %cst_66 {dimension_numbers = #tpu.dot_dimension_numbers<[1], [0], [0], [1], [0, 0, 1, 1], [], []>} : vector<64x32xbf16>, vector<32x64xbf16>, vector<64x64xf32> -> vector<64x64xf32>
    %65 = arith.addf %53, %64 : vector<64x64xf32>
    %c21 = arith.constant 21 : index
    %c0_67 = arith.constant 0 : index
    %66 = tpu.strided_load %arg21[%c21, %c0_67] {strides = array<i32: 2, 1>} : memref<362x32xf32, #tpu.memory_space<vmem>>, vector<8x32xf32>
    %c57 = arith.constant 57 : index
    %c0_68 = arith.constant 0 : index
    %67 = tpu.strided_load %arg21[%c57, %c0_68] {strides = array<i32: 2, 1>} : memref<362x32xf32, #tpu.memory_space<vmem>>, vector<8x32xf32>
    %c93 = arith.constant 93 : index
    %c0_69 = arith.constant 0 : index
    %68 = tpu.strided_load %arg21[%c93, %c0_69] {strides = array<i32: 2, 1>} : memref<362x32xf32, #tpu.memory_space<vmem>>, vector<8x32xf32>
    %c129 = arith.constant 129 : index
    %c0_70 = arith.constant 0 : index
    %69 = tpu.strided_load %arg21[%c129, %c0_70] {strides = array<i32: 2, 1>} : memref<362x32xf32, #tpu.memory_space<vmem>>, vector<8x32xf32>
    %c165 = arith.constant 165 : index
    %c0_71 = arith.constant 0 : index
    %70 = tpu.strided_load %arg21[%c165, %c0_71] {strides = array<i32: 2, 1>} : memref<362x32xf32, #tpu.memory_space<vmem>>, vector<8x32xf32>
    %c201 = arith.constant 201 : index
    %c0_72 = arith.constant 0 : index
    %71 = tpu.strided_load %arg21[%c201, %c0_72] {strides = array<i32: 2, 1>} : memref<362x32xf32, #tpu.memory_space<vmem>>, vector<8x32xf32>
    %c237 = arith.constant 237 : index
    %c0_73 = arith.constant 0 : index
    %72 = tpu.strided_load %arg21[%c237, %c0_73] {strides = array<i32: 2, 1>} : memref<362x32xf32, #tpu.memory_space<vmem>>, vector<8x32xf32>
    %c273 = arith.constant 273 : index
    %c0_74 = arith.constant 0 : index
    %73 = tpu.strided_load %arg21[%c273, %c0_74] {strides = array<i32: 2, 1>} : memref<362x32xf32, #tpu.memory_space<vmem>>, vector<8x32xf32>
    %74 = tpu.concatenate %66, %67, %68, %69, %70, %71, %72, %73 in 0 : vector<8x32xf32>, vector<8x32xf32>, vector<8x32xf32>, vector<8x32xf32>, vector<8x32xf32>, vector<8x32xf32>, vector<8x32xf32>, vector<8x32xf32> -> vector<64x32xf32>
    %75 = arith.truncf %74 : vector<64x32xf32> to vector<64x32xbf16>
    %cst_75 = arith.constant dense<0.000000e+00> : vector<64x64xf32>
    %76 = tpu.matmul %75, %29, %cst_75 {dimension_numbers = #tpu.dot_dimension_numbers<[1], [0], [0], [1], [0, 0, 1, 1], [], []>} : vector<64x32xbf16>, vector<32x64xbf16>, vector<64x64xf32> -> vector<64x64xf32>
    %77 = arith.addf %65, %76 : vector<64x64xf32>
    %c37 = arith.constant 37 : index
    %c0_76 = arith.constant 0 : index
    %78 = tpu.strided_load %arg21[%c37, %c0_76] {strides = array<i32: 2, 1>} : memref<362x32xf32, #tpu.memory_space<vmem>>, vector<8x32xf32>
    %c73 = arith.constant 73 : index
    %c0_77 = arith.constant 0 : index
    %79 = tpu.strided_load %arg21[%c73, %c0_77] {strides = array<i32: 2, 1>} : memref<362x32xf32, #tpu.memory_space<vmem>>, vector<8x32xf32>
    %c109 = arith.constant 109 : index
    %c0_78 = arith.constant 0 : index
    %80 = tpu.strided_load %arg21[%c109, %c0_78] {strides = array<i32: 2, 1>} : memref<362x32xf32, #tpu.memory_space<vmem>>, vector<8x32xf32>
    %c145 = arith.constant 145 : index
    %c0_79 = arith.constant 0 : index
    %81 = tpu.strided_load %arg21[%c145, %c0_79] {strides = array<i32: 2, 1>} : memref<362x32xf32, #tpu.memory_space<vmem>>, vector<8x32xf32>
    %c181 = arith.constant 181 : index
    %c0_80 = arith.constant 0 : index
    %82 = tpu.strided_load %arg21[%c181, %c0_80] {strides = array<i32: 2, 1>} : memref<362x32xf32, #tpu.memory_space<vmem>>, vector<8x32xf32>
    %c217 = arith.constant 217 : index
    %c0_81 = arith.constant 0 : index
    %83 = tpu.strided_load %arg21[%c217, %c0_81] {strides = array<i32: 2, 1>} : memref<362x32xf32, #tpu.memory_space<vmem>>, vector<8x32xf32>
    %c253 = arith.constant 253 : index
    %c0_82 = arith.constant 0 : index
    %84 = tpu.strided_load %arg21[%c253, %c0_82] {strides = array<i32: 2, 1>} : memref<362x32xf32, #tpu.memory_space<vmem>>, vector<8x32xf32>
    %c289 = arith.constant 289 : index
    %c0_83 = arith.constant 0 : index
    %85 = tpu.strided_load %arg21[%c289, %c0_83] {strides = array<i32: 2, 1>} : memref<362x32xf32, #tpu.memory_space<vmem>>, vector<8x32xf32>
    %86 = tpu.concatenate %78, %79, %80, %81, %82, %83, %84, %85 in 0 : vector<8x32xf32>, vector<8x32xf32>, vector<8x32xf32>, vector<8x32xf32>, vector<8x32xf32>, vector<8x32xf32>, vector<8x32xf32>, vector<8x32xf32> -> vector<64x32xf32>
    %87 = arith.truncf %86 : vector<64x32xf32> to vector<64x32xbf16>
    %cst_84 = arith.constant dense<0.000000e+00> : vector<64x64xf32>
    %88 = tpu.matmul %87, %31, %cst_84 {dimension_numbers = #tpu.dot_dimension_numbers<[1], [0], [0], [1], [0, 0, 1, 1], [], []>} : vector<64x32xbf16>, vector<32x64xbf16>, vector<64x64xf32> -> vector<64x64xf32>
    %89 = arith.addf %77, %88 : vector<64x64xf32>
    %c38 = arith.constant 38 : index
    %c0_85 = arith.constant 0 : index
    %90 = tpu.strided_load %arg21[%c38, %c0_85] {strides = array<i32: 2, 1>} : memref<362x32xf32, #tpu.memory_space<vmem>>, vector<8x32xf32>
    %c74 = arith.constant 74 : index
    %c0_86 = arith.constant 0 : index
    %91 = tpu.strided_load %arg21[%c74, %c0_86] {strides = array<i32: 2, 1>} : memref<362x32xf32, #tpu.memory_space<vmem>>, vector<8x32xf32>
    %c110 = arith.constant 110 : index
    %c0_87 = arith.constant 0 : index
    %92 = tpu.strided_load %arg21[%c110, %c0_87] {strides = array<i32: 2, 1>} : memref<362x32xf32, #tpu.memory_space<vmem>>, vector<8x32xf32>
    %c146 = arith.constant 146 : index
    %c0_88 = arith.constant 0 : index
    %93 = tpu.strided_load %arg21[%c146, %c0_88] {strides = array<i32: 2, 1>} : memref<362x32xf32, #tpu.memory_space<vmem>>, vector<8x32xf32>
    %c182 = arith.constant 182 : index
    %c0_89 = arith.constant 0 : index
    %94 = tpu.strided_load %arg21[%c182, %c0_89] {strides = array<i32: 2, 1>} : memref<362x32xf32, #tpu.memory_space<vmem>>, vector<8x32xf32>
    %c218 = arith.constant 218 : index
    %c0_90 = arith.constant 0 : index
    %95 = tpu.strided_load %arg21[%c218, %c0_90] {strides = array<i32: 2, 1>} : memref<362x32xf32, #tpu.memory_space<vmem>>, vector<8x32xf32>
    %c254 = arith.constant 254 : index
    %c0_91 = arith.constant 0 : index
    %96 = tpu.strided_load %arg21[%c254, %c0_91] {strides = array<i32: 2, 1>} : memref<362x32xf32, #tpu.memory_space<vmem>>, vector<8x32xf32>
    %c290 = arith.constant 290 : index
    %c0_92 = arith.constant 0 : index
    %97 = tpu.strided_load %arg21[%c290, %c0_92] {strides = array<i32: 2, 1>} : memref<362x32xf32, #tpu.memory_space<vmem>>, vector<8x32xf32>
    %98 = tpu.concatenate %90, %91, %92, %93, %94, %95, %96, %97 in 0 : vector<8x32xf32>, vector<8x32xf32>, vector<8x32xf32>, vector<8x32xf32>, vector<8x32xf32>, vector<8x32xf32>, vector<8x32xf32>, vector<8x32xf32> -> vector<64x32xf32>
    %99 = arith.truncf %98 : vector<64x32xf32> to vector<64x32xbf16>
    %cst_93 = arith.constant dense<0.000000e+00> : vector<64x64xf32>
    %100 = tpu.matmul %99, %33, %cst_93 {dimension_numbers = #tpu.dot_dimension_numbers<[1], [0], [0], [1], [0, 0, 1, 1], [], []>} : vector<64x32xbf16>, vector<32x64xbf16>, vector<64x64xf32> -> vector<64x64xf32>
    %101 = arith.addf %89, %100 : vector<64x64xf32>
    %c39 = arith.constant 39 : index
    %c0_94 = arith.constant 0 : index
    %102 = tpu.strided_load %arg21[%c39, %c0_94] {strides = array<i32: 2, 1>} : memref<362x32xf32, #tpu.memory_space<vmem>>, vector<8x32xf32>
    %c75 = arith.constant 75 : index
    %c0_95 = arith.constant 0 : index
    %103 = tpu.strided_load %arg21[%c75, %c0_95] {strides = array<i32: 2, 1>} : memref<362x32xf32, #tpu.memory_space<vmem>>, vector<8x32xf32>
    %c111 = arith.constant 111 : index
    %c0_96 = arith.constant 0 : index
    %104 = tpu.strided_load %arg21[%c111, %c0_96] {strides = array<i32: 2, 1>} : memref<362x32xf32, #tpu.memory_space<vmem>>, vector<8x32xf32>
    %c147 = arith.constant 147 : index
    %c0_97 = arith.constant 0 : index
    %105 = tpu.strided_load %arg21[%c147, %c0_97] {strides = array<i32: 2, 1>} : memref<362x32xf32, #tpu.memory_space<vmem>>, vector<8x32xf32>
    %c183 = arith.constant 183 : index
    %c0_98 = arith.constant 0 : index
    %106 = tpu.strided_load %arg21[%c183, %c0_98] {strides = array<i32: 2, 1>} : memref<362x32xf32, #tpu.memory_space<vmem>>, vector<8x32xf32>
    %c219 = arith.constant 219 : index
    %c0_99 = arith.constant 0 : index
    %107 = tpu.strided_load %arg21[%c219, %c0_99] {strides = array<i32: 2, 1>} : memref<362x32xf32, #tpu.memory_space<vmem>>, vector<8x32xf32>
    %c255 = arith.constant 255 : index
    %c0_100 = arith.constant 0 : index
    %108 = tpu.strided_load %arg21[%c255, %c0_100] {strides = array<i32: 2, 1>} : memref<362x32xf32, #tpu.memory_space<vmem>>, vector<8x32xf32>
    %c291 = arith.constant 291 : index
    %c0_101 = arith.constant 0 : index
    %109 = tpu.strided_load %arg21[%c291, %c0_101] {strides = array<i32: 2, 1>} : memref<362x32xf32, #tpu.memory_space<vmem>>, vector<8x32xf32>
    %110 = tpu.concatenate %102, %103, %104, %105, %106, %107, %108, %109 in 0 : vector<8x32xf32>, vector<8x32xf32>, vector<8x32xf32>, vector<8x32xf32>, vector<8x32xf32>, vector<8x32xf32>, vector<8x32xf32>, vector<8x32xf32> -> vector<64x32xf32>
    %111 = arith.truncf %110 : vector<64x32xf32> to vector<64x32xbf16>
    %cst_102 = arith.constant dense<0.000000e+00> : vector<64x64xf32>
    %112 = tpu.matmul %111, %35, %cst_102 {dimension_numbers = #tpu.dot_dimension_numbers<[1], [0], [0], [1], [0, 0, 1, 1], [], []>} : vector<64x32xbf16>, vector<32x64xbf16>, vector<64x64xf32> -> vector<64x64xf32>
    %113 = arith.addf %101, %112 : vector<64x64xf32>
    %c55_103 = arith.constant 55 : index
    %c0_104 = arith.constant 0 : index
    %114 = tpu.strided_load %arg21[%c55_103, %c0_104] {strides = array<i32: 2, 1>} : memref<362x32xf32, #tpu.memory_space<vmem>>, vector<8x32xf32>
    %c91_105 = arith.constant 91 : index
    %c0_106 = arith.constant 0 : index
    %115 = tpu.strided_load %arg21[%c91_105, %c0_106] {strides = array<i32: 2, 1>} : memref<362x32xf32, #tpu.memory_space<vmem>>, vector<8x32xf32>
    %c127_107 = arith.constant 127 : index
    %c0_108 = arith.constant 0 : index
    %116 = tpu.strided_load %arg21[%c127_107, %c0_108] {strides = array<i32: 2, 1>} : memref<362x32xf32, #tpu.memory_space<vmem>>, vector<8x32xf32>
    %c163_109 = arith.constant 163 : index
    %c0_110 = arith.constant 0 : index
    %117 = tpu.strided_load %arg21[%c163_109, %c0_110] {strides = array<i32: 2, 1>} : memref<362x32xf32, #tpu.memory_space<vmem>>, vector<8x32xf32>
    %c199_111 = arith.constant 199 : index
    %c0_112 = arith.constant 0 : index
    %118 = tpu.strided_load %arg21[%c199_111, %c0_112] {strides = array<i32: 2, 1>} : memref<362x32xf32, #tpu.memory_space<vmem>>, vector<8x32xf32>
    %c235_113 = arith.constant 235 : index
    %c0_114 = arith.constant 0 : index
    %119 = tpu.strided_load %arg21[%c235_113, %c0_114] {strides = array<i32: 2, 1>} : memref<362x32xf32, #tpu.memory_space<vmem>>, vector<8x32xf32>
    %c271_115 = arith.constant 271 : index
    %c0_116 = arith.constant 0 : index
    %120 = tpu.strided_load %arg21[%c271_115, %c0_116] {strides = array<i32: 2, 1>} : memref<362x32xf32, #tpu.memory_space<vmem>>, vector<8x32xf32>
    %c307 = arith.constant 307 : index
    %c0_117 = arith.constant 0 : index
    %121 = tpu.strided_load %arg21[%c307, %c0_117] {strides = array<i32: 2, 1>} : memref<362x32xf32, #tpu.memory_space<vmem>>, vector<8x32xf32>
    %122 = tpu.concatenate %114, %115, %116, %117, %118, %119, %120, %121 in 0 : vector<8x32xf32>, vector<8x32xf32>, vector<8x32xf32>, vector<8x32xf32>, vector<8x32xf32>, vector<8x32xf32>, vector<8x32xf32>, vector<8x32xf32> -> vector<64x32xf32>
    %123 = arith.truncf %122 : vector<64x32xf32> to vector<64x32xbf16>
    %cst_118 = arith.constant dense<0.000000e+00> : vector<64x64xf32>
    %124 = tpu.matmul %123, %37, %cst_118 {dimension_numbers = #tpu.dot_dimension_numbers<[1], [0], [0], [1], [0, 0, 1, 1], [], []>} : vector<64x32xbf16>, vector<32x64xbf16>, vector<64x64xf32> -> vector<64x64xf32>
    %125 = arith.addf %113, %124 : vector<64x64xf32>
    %c56_119 = arith.constant 56 : index
    %c0_120 = arith.constant 0 : index
    %126 = tpu.strided_load %arg21[%c56_119, %c0_120] {strides = array<i32: 2, 1>} : memref<362x32xf32, #tpu.memory_space<vmem>>, vector<8x32xf32>
    %c92_121 = arith.constant 92 : index
    %c0_122 = arith.constant 0 : index
    %127 = tpu.strided_load %arg21[%c92_121, %c0_122] {strides = array<i32: 2, 1>} : memref<362x32xf32, #tpu.memory_space<vmem>>, vector<8x32xf32>
    %c128_123 = arith.constant 128 : index
    %c0_124 = arith.constant 0 : index
    %128 = tpu.strided_load %arg21[%c128_123, %c0_124] {strides = array<i32: 2, 1>} : memref<362x32xf32, #tpu.memory_space<vmem>>, vector<8x32xf32>
    %c164_125 = arith.constant 164 : index
    %c0_126 = arith.constant 0 : index
    %129 = tpu.strided_load %arg21[%c164_125, %c0_126] {strides = array<i32: 2, 1>} : memref<362x32xf32, #tpu.memory_space<vmem>>, vector<8x32xf32>
    %c200_127 = arith.constant 200 : index
    %c0_128 = arith.constant 0 : index
    %130 = tpu.strided_load %arg21[%c200_127, %c0_128] {strides = array<i32: 2, 1>} : memref<362x32xf32, #tpu.memory_space<vmem>>, vector<8x32xf32>
    %c236_129 = arith.constant 236 : index
    %c0_130 = arith.constant 0 : index
    %131 = tpu.strided_load %arg21[%c236_129, %c0_130] {strides = array<i32: 2, 1>} : memref<362x32xf32, #tpu.memory_space<vmem>>, vector<8x32xf32>
    %c272_131 = arith.constant 272 : index
    %c0_132 = arith.constant 0 : index
    %132 = tpu.strided_load %arg21[%c272_131, %c0_132] {strides = array<i32: 2, 1>} : memref<362x32xf32, #tpu.memory_space<vmem>>, vector<8x32xf32>
    %c308 = arith.constant 308 : index
    %c0_133 = arith.constant 0 : index
    %133 = tpu.strided_load %arg21[%c308, %c0_133] {strides = array<i32: 2, 1>} : memref<362x32xf32, #tpu.memory_space<vmem>>, vector<8x32xf32>
    %134 = tpu.concatenate %126, %127, %128, %129, %130, %131, %132, %133 in 0 : vector<8x32xf32>, vector<8x32xf32>, vector<8x32xf32>, vector<8x32xf32>, vector<8x32xf32>, vector<8x32xf32>, vector<8x32xf32>, vector<8x32xf32> -> vector<64x32xf32>
    %135 = arith.truncf %134 : vector<64x32xf32> to vector<64x32xbf16>
    %cst_134 = arith.constant dense<0.000000e+00> : vector<64x64xf32>
    %136 = tpu.matmul %135, %39, %cst_134 {dimension_numbers = #tpu.dot_dimension_numbers<[1], [0], [0], [1], [0, 0, 1, 1], [], []>} : vector<64x32xbf16>, vector<32x64xbf16>, vector<64x64xf32> -> vector<64x64xf32>
    %137 = arith.addf %125, %136 : vector<64x64xf32>
    %c57_135 = arith.constant 57 : index
    %c0_136 = arith.constant 0 : index
    %138 = tpu.strided_load %arg21[%c57_135, %c0_136] {strides = array<i32: 2, 1>} : memref<362x32xf32, #tpu.memory_space<vmem>>, vector<8x32xf32>
    %c93_137 = arith.constant 93 : index
    %c0_138 = arith.constant 0 : index
    %139 = tpu.strided_load %arg21[%c93_137, %c0_138] {strides = array<i32: 2, 1>} : memref<362x32xf32, #tpu.memory_space<vmem>>, vector<8x32xf32>
    %c129_139 = arith.constant 129 : index
    %c0_140 = arith.constant 0 : index
    %140 = tpu.strided_load %arg21[%c129_139, %c0_140] {strides = array<i32: 2, 1>} : memref<362x32xf32, #tpu.memory_space<vmem>>, vector<8x32xf32>
    %c165_141 = arith.constant 165 : index
    %c0_142 = arith.constant 0 : index
    %141 = tpu.strided_load %arg21[%c165_141, %c0_142] {strides = array<i32: 2, 1>} : memref<362x32xf32, #tpu.memory_space<vmem>>, vector<8x32xf32>
    %c201_143 = arith.constant 201 : index
    %c0_144 = arith.constant 0 : index
    %142 = tpu.strided_load %arg21[%c201_143, %c0_144] {strides = array<i32: 2, 1>} : memref<362x32xf32, #tpu.memory_space<vmem>>, vector<8x32xf32>
    %c237_145 = arith.constant 237 : index
    %c0_146 = arith.constant 0 : index
    %143 = tpu.strided_load %arg21[%c237_145, %c0_146] {strides = array<i32: 2, 1>} : memref<362x32xf32, #tpu.memory_space<vmem>>, vector<8x32xf32>
    %c273_147 = arith.constant 273 : index
    %c0_148 = arith.constant 0 : index
    %144 = tpu.strided_load %arg21[%c273_147, %c0_148] {strides = array<i32: 2, 1>} : memref<362x32xf32, #tpu.memory_space<vmem>>, vector<8x32xf32>
    %c309 = arith.constant 309 : index
    %c0_149 = arith.constant 0 : index
    %145 = tpu.strided_load %arg21[%c309, %c0_149] {strides = array<i32: 2, 1>} : memref<362x32xf32, #tpu.memory_space<vmem>>, vector<8x32xf32>
    %146 = tpu.concatenate %138, %139, %140, %141, %142, %143, %144, %145 in 0 : vector<8x32xf32>, vector<8x32xf32>, vector<8x32xf32>, vector<8x32xf32>, vector<8x32xf32>, vector<8x32xf32>, vector<8x32xf32>, vector<8x32xf32> -> vector<64x32xf32>
    %147 = arith.truncf %146 : vector<64x32xf32> to vector<64x32xbf16>
    %cst_150 = arith.constant dense<0.000000e+00> : vector<64x64xf32>
    %148 = tpu.matmul %147, %41, %cst_150 {dimension_numbers = #tpu.dot_dimension_numbers<[1], [0], [0], [1], [0, 0, 1, 1], [], []>} : vector<64x32xbf16>, vector<32x64xbf16>, vector<64x64xf32> -> vector<64x64xf32>
    %149 = arith.addf %137, %148 : vector<64x64xf32>
    %150 = vector.broadcast %42 : vector<1x64xf32> to vector<64x64xf32>
    %151 = arith.addf %149, %150 : vector<64x64xf32>
    %cst_151 = arith.constant 0.000000e+00 : f32
    %152 = vector.broadcast %cst_151 : f32 to vector<64x64xf32>
    %153 = arith.maximumf %151, %152 : vector<64x64xf32>
    %154 = vector.extract_strided_slice %153 {offsets = [0, 0], sizes = [8, 64], strides = [1, 1]} : vector<64x64xf32> to vector<8x64xf32>
    %c22 = arith.constant 22 : index
    %c0_152 = arith.constant 0 : index
    %155 = vector.load %arg22[%c22, %c0_152] : memref<122x64xf32, #tpu.memory_space<vmem>>, vector<8x64xf32>
    tpu.vector_store %arg22[%c22, %c0_152], %154 {strides = array<i32>} : memref<122x64xf32, #tpu.memory_space<vmem>>, vector<8x64xf32>,
    %156 = vector.extract_strided_slice %153 {offsets = [8, 0], sizes = [8, 64], strides = [1, 1]} : vector<64x64xf32> to vector<8x64xf32>
    %c32 = arith.constant 32 : index
    %c0_153 = arith.constant 0 : index
    %157 = vector.load %arg22[%c32, %c0_153] : memref<122x64xf32, #tpu.memory_space<vmem>>, vector<8x64xf32>
    tpu.vector_store %arg22[%c32, %c0_153], %156 {strides = array<i32>} : memref<122x64xf32, #tpu.memory_space<vmem>>, vector<8x64xf32>,
    %158 = vector.extract_strided_slice %153 {offsets = [16, 0], sizes = [8, 64], strides = [1, 1]} : vector<64x64xf32> to vector<8x64xf32>
    %c42 = arith.constant 42 : index
    %c0_154 = arith.constant 0 : index
    %159 = vector.load %arg22[%c42, %c0_154] : memref<122x64xf32, #tpu.memory_space<vmem>>, vector<8x64xf32>
    tpu.vector_store %arg22[%c42, %c0_154], %158 {strides = array<i32>} : memref<122x64xf32, #tpu.memory_space<vmem>>, vector<8x64xf32>,
    %160 = vector.extract_strided_slice %153 {offsets = [24, 0], sizes = [8, 64], strides = [1, 1]} : vector<64x64xf32> to vector<8x64xf32>
    %c52 = arith.constant 52 : index
    %c0_155 = arith.constant 0 : index
    %161 = vector.load %arg22[%c52, %c0_155] : memref<122x64xf32, #tpu.memory_space<vmem>>, vector<8x64xf32>
    tpu.vector_store %arg22[%c52, %c0_155], %160 {strides = array<i32>} : memref<122x64xf32, #tpu.memory_space<vmem>>, vector<8x64xf32>,
    %162 = vector.extract_strided_slice %153 {offsets = [32, 0], sizes = [8, 64], strides = [1, 1]} : vector<64x64xf32> to vector<8x64xf32>
    %c62 = arith.constant 62 : index
    %c0_156 = arith.constant 0 : index
    %163 = vector.load %arg22[%c62, %c0_156] : memref<122x64xf32, #tpu.memory_space<vmem>>, vector<8x64xf32>
    tpu.vector_store %arg22[%c62, %c0_156], %162 {strides = array<i32>} : memref<122x64xf32, #tpu.memory_space<vmem>>, vector<8x64xf32>,
    %164 = vector.extract_strided_slice %153 {offsets = [40, 0], sizes = [8, 64], strides = [1, 1]} : vector<64x64xf32> to vector<8x64xf32>
    %c72 = arith.constant 72 : index
    %c0_157 = arith.constant 0 : index
    %165 = vector.load %arg22[%c72, %c0_157] : memref<122x64xf32, #tpu.memory_space<vmem>>, vector<8x64xf32>
    tpu.vector_store %arg22[%c72, %c0_157], %164 {strides = array<i32>} : memref<122x64xf32, #tpu.memory_space<vmem>>, vector<8x64xf32>,
    %166 = vector.extract_strided_slice %153 {offsets = [48, 0], sizes = [8, 64], strides = [1, 1]} : vector<64x64xf32> to vector<8x64xf32>
    %c82 = arith.constant 82 : index
    %c0_158 = arith.constant 0 : index
    %167 = vector.load %arg22[%c82, %c0_158] : memref<122x64xf32, #tpu.memory_space<vmem>>, vector<8x64xf32>
    tpu.vector_store %arg22[%c82, %c0_158], %166 {strides = array<i32>} : memref<122x64xf32, #tpu.memory_space<vmem>>, vector<8x64xf32>,
    %168 = vector.extract_strided_slice %153 {offsets = [56, 0], sizes = [8, 64], strides = [1, 1]} : vector<64x64xf32> to vector<8x64xf32>
    %c92_159 = arith.constant 92 : index
    %c0_160 = arith.constant 0 : index
    %169 = vector.load %arg22[%c92_159, %c0_160] : memref<122x64xf32, #tpu.memory_space<vmem>>, vector<8x64xf32>
    tpu.vector_store %arg22[%c92_159, %c0_160], %168 {strides = array<i32>} : memref<122x64xf32, #tpu.memory_space<vmem>>, vector<8x64xf32>,
    %c0_161 = arith.constant 0 : index
    %c0_162 = arith.constant 0 : index
    %c0_163 = arith.constant 0 : index
    %170 = vector.load %arg6[%c0_161, %c0_162, %c0_163] : memref<9x64x64xbf16, #tpu.memory_space<vmem>>, vector<1x64x64xbf16>
    %171 = vector.shape_cast %170 : vector<1x64x64xbf16> to vector<64x64xbf16>
    %c1_164 = arith.constant 1 : index
    %c0_165 = arith.constant 0 : index
    %c0_166 = arith.constant 0 : index
    %172 = vector.load %arg6[%c1_164, %c0_165, %c0_166] : memref<9x64x64xbf16, #tpu.memory_space<vmem>>, vector<1x64x64xbf16>
    %173 = vector.shape_cast %172 : vector<1x64x64xbf16> to vector<64x64xbf16>
    %c2_167 = arith.constant 2 : index
    %c0_168 = arith.constant 0 : index
    %c0_169 = arith.constant 0 : index
    %174 = vector.load %arg6[%c2_167, %c0_168, %c0_169] : memref<9x64x64xbf16, #tpu.memory_space<vmem>>, vector<1x64x64xbf16>
    %175 = vector.shape_cast %174 : vector<1x64x64xbf16> to vector<64x64xbf16>
    %c3_170 = arith.constant 3 : index
    %c0_171 = arith.constant 0 : index
    %c0_172 = arith.constant 0 : index
    %176 = vector.load %arg6[%c3_170, %c0_171, %c0_172] : memref<9x64x64xbf16, #tpu.memory_space<vmem>>, vector<1x64x64xbf16>
    %177 = vector.shape_cast %176 : vector<1x64x64xbf16> to vector<64x64xbf16>
    %c4_173 = arith.constant 4 : index
    %c0_174 = arith.constant 0 : index
    %c0_175 = arith.constant 0 : index
    %178 = vector.load %arg6[%c4_173, %c0_174, %c0_175] : memref<9x64x64xbf16, #tpu.memory_space<vmem>>, vector<1x64x64xbf16>
    %179 = vector.shape_cast %178 : vector<1x64x64xbf16> to vector<64x64xbf16>
    %c5_176 = arith.constant 5 : index
    %c0_177 = arith.constant 0 : index
    %c0_178 = arith.constant 0 : index
    %180 = vector.load %arg6[%c5_176, %c0_177, %c0_178] : memref<9x64x64xbf16, #tpu.memory_space<vmem>>, vector<1x64x64xbf16>
    %181 = vector.shape_cast %180 : vector<1x64x64xbf16> to vector<64x64xbf16>
    %c6_179 = arith.constant 6 : index
    %c0_180 = arith.constant 0 : index
    %c0_181 = arith.constant 0 : index
    %182 = vector.load %arg6[%c6_179, %c0_180, %c0_181] : memref<9x64x64xbf16, #tpu.memory_space<vmem>>, vector<1x64x64xbf16>
    %183 = vector.shape_cast %182 : vector<1x64x64xbf16> to vector<64x64xbf16>
    %c7_182 = arith.constant 7 : index
    %c0_183 = arith.constant 0 : index
    %c0_184 = arith.constant 0 : index
    %184 = vector.load %arg6[%c7_182, %c0_183, %c0_184] : memref<9x64x64xbf16, #tpu.memory_space<vmem>>, vector<1x64x64xbf16>
    %185 = vector.shape_cast %184 : vector<1x64x64xbf16> to vector<64x64xbf16>
    %c8_185 = arith.constant 8 : index
    %c0_186 = arith.constant 0 : index
    %c0_187 = arith.constant 0 : index
    %186 = vector.load %arg6[%c8_185, %c0_186, %c0_187] : memref<9x64x64xbf16, #tpu.memory_space<vmem>>, vector<1x64x64xbf16>
    %187 = vector.shape_cast %186 : vector<1x64x64xbf16> to vector<64x64xbf16>
    %c0_188 = arith.constant 0 : index
    %c0_189 = arith.constant 0 : index
    %188 = vector.load %arg7[%c0_188, %c0_189] : memref<1x64xf32, #tpu.memory_space<vmem>>, vector<1x64xf32>
    %c0_190 = arith.constant 0 : index
    %c0_191 = arith.constant 0 : index
    %189 = vector.load %arg22[%c0_190, %c0_191] : memref<122x64xf32, #tpu.memory_space<vmem>>, vector<100x64xf32>
    %190 = arith.truncf %189 : vector<100x64xf32> to vector<100x64xbf16>
    %cst_192 = arith.constant dense<0.000000e+00> : vector<100x64xf32>
    %191 = tpu.matmul %190, %171, %cst_192 {dimension_numbers = #tpu.dot_dimension_numbers<[1], [0], [0], [1], [0, 0, 1, 1], [], []>} : vector<100x64xbf16>, vector<64x64xbf16>, vector<100x64xf32> -> vector<100x64xf32>
    %c1_193 = arith.constant 1 : index
    %c0_194 = arith.constant 0 : index
    %192 = vector.load %arg22[%c1_193, %c0_194] : memref<122x64xf32, #tpu.memory_space<vmem>>, vector<100x64xf32>
    %193 = arith.truncf %192 : vector<100x64xf32> to vector<100x64xbf16>
    %cst_195 = arith.constant dense<0.000000e+00> : vector<100x64xf32>
    %194 = tpu.matmul %193, %173, %cst_195 {dimension_numbers = #tpu.dot_dimension_numbers<[1], [0], [0], [1], [0, 0, 1, 1], [], []>} : vector<100x64xbf16>, vector<64x64xbf16>, vector<100x64xf32> -> vector<100x64xf32>
    %195 = arith.addf %191, %194 : vector<100x64xf32>
    %c2_196 = arith.constant 2 : index
    %c0_197 = arith.constant 0 : index
    %196 = vector.load %arg22[%c2_196, %c0_197] : memref<122x64xf32, #tpu.memory_space<vmem>>, vector<100x64xf32>
    %197 = arith.truncf %196 : vector<100x64xf32> to vector<100x64xbf16>
    %cst_198 = arith.constant dense<0.000000e+00> : vector<100x64xf32>
    %198 = tpu.matmul %197, %175, %cst_198 {dimension_numbers = #tpu.dot_dimension_numbers<[1], [0], [0], [1], [0, 0, 1, 1], [], []>} : vector<100x64xbf16>, vector<64x64xbf16>, vector<100x64xf32> -> vector<100x64xf32>
    %199 = arith.addf %195, %198 : vector<100x64xf32>
    %c10 = arith.constant 10 : index
    %c0_199 = arith.constant 0 : index
    %200 = vector.load %arg22[%c10, %c0_199] : memref<122x64xf32, #tpu.memory_space<vmem>>, vector<100x64xf32>
    %201 = arith.truncf %200 : vector<100x64xf32> to vector<100x64xbf16>
    %cst_200 = arith.constant dense<0.000000e+00> : vector<100x64xf32>
    %202 = tpu.matmul %201, %177, %cst_200 {dimension_numbers = #tpu.dot_dimension_numbers<[1], [0], [0], [1], [0, 0, 1, 1], [], []>} : vector<100x64xbf16>, vector<64x64xbf16>, vector<100x64xf32> -> vector<100x64xf32>
    %203 = arith.addf %199, %202 : vector<100x64xf32>
    %c11 = arith.constant 11 : index
    %c0_201 = arith.constant 0 : index
    %204 = vector.load %arg22[%c11, %c0_201] : memref<122x64xf32, #tpu.memory_space<vmem>>, vector<100x64xf32>
    %205 = arith.truncf %204 : vector<100x64xf32> to vector<100x64xbf16>
    %cst_202 = arith.constant dense<0.000000e+00> : vector<100x64xf32>
    %206 = tpu.matmul %205, %179, %cst_202 {dimension_numbers = #tpu.dot_dimension_numbers<[1], [0], [0], [1], [0, 0, 1, 1], [], []>} : vector<100x64xbf16>, vector<64x64xbf16>, vector<100x64xf32> -> vector<100x64xf32>
    %207 = arith.addf %203, %206 : vector<100x64xf32>
    %c12 = arith.constant 12 : index
    %c0_203 = arith.constant 0 : index
    %208 = vector.load %arg22[%c12, %c0_203] : memref<122x64xf32, #tpu.memory_space<vmem>>, vector<100x64xf32>
    %209 = arith.truncf %208 : vector<100x64xf32> to vector<100x64xbf16>
    %cst_204 = arith.constant dense<0.000000e+00> : vector<100x64xf32>
    %210 = tpu.matmul %209, %181, %cst_204 {dimension_numbers = #tpu.dot_dimension_numbers<[1], [0], [0], [1], [0, 0, 1, 1], [], []>} : vector<100x64xbf16>, vector<64x64xbf16>, vector<100x64xf32> -> vector<100x64xf32>
    %211 = arith.addf %207, %210 : vector<100x64xf32>
    %c20_205 = arith.constant 20 : index
    %c0_206 = arith.constant 0 : index
    %212 = vector.load %arg22[%c20_205, %c0_206] : memref<122x64xf32, #tpu.memory_space<vmem>>, vector<100x64xf32>
    %213 = arith.truncf %212 : vector<100x64xf32> to vector<100x64xbf16>
    %cst_207 = arith.constant dense<0.000000e+00> : vector<100x64xf32>
    %214 = tpu.matmul %213, %183, %cst_207 {dimension_numbers = #tpu.dot_dimension_numbers<[1], [0], [0], [1], [0, 0, 1, 1], [], []>} : vector<100x64xbf16>, vector<64x64xbf16>, vector<100x64xf32> -> vector<100x64xf32>
    %215 = arith.addf %211, %214 : vector<100x64xf32>
    %c21_208 = arith.constant 21 : index
    %c0_209 = arith.constant 0 : index
    %216 = vector.load %arg22[%c21_208, %c0_209] : memref<122x64xf32, #tpu.memory_space<vmem>>, vector<100x64xf32>
    %217 = arith.truncf %216 : vector<100x64xf32> to vector<100x64xbf16>
    %cst_210 = arith.constant dense<0.000000e+00> : vector<100x64xf32>
    %218 = tpu.matmul %217, %185, %cst_210 {dimension_numbers = #tpu.dot_dimension_numbers<[1], [0], [0], [1], [0, 0, 1, 1], [], []>} : vector<100x64xbf16>, vector<64x64xbf16>, vector<100x64xf32> -> vector<100x64xf32>
    %219 = arith.addf %215, %218 : vector<100x64xf32>
    %c22_211 = arith.constant 22 : index
    %c0_212 = arith.constant 0 : index
    %220 = vector.load %arg22[%c22_211, %c0_212] : memref<122x64xf32, #tpu.memory_space<vmem>>, vector<100x64xf32>
    %221 = arith.truncf %220 : vector<100x64xf32> to vector<100x64xbf16>
    %cst_213 = arith.constant dense<0.000000e+00> : vector<100x64xf32>
    %222 = tpu.matmul %221, %187, %cst_213 {dimension_numbers = #tpu.dot_dimension_numbers<[1], [0], [0], [1], [0, 0, 1, 1], [], []>} : vector<100x64xbf16>, vector<64x64xbf16>, vector<100x64xf32> -> vector<100x64xf32>
    %223 = arith.addf %219, %222 : vector<100x64xf32>
    %224 = vector.broadcast %188 : vector<1x64xf32> to vector<100x64xf32>
    %225 = arith.addf %223, %224 : vector<100x64xf32>
    %cst_214 = arith.constant 0.000000e+00 : f32
    %226 = vector.broadcast %cst_214 : f32 to vector<100x64xf32>
    %227 = arith.maximumf %225, %226 : vector<100x64xf32>
    %c0_215 = arith.constant 0 : index
    %c0_216 = arith.constant 0 : index
    %228 = vector.load %arg17[%c0_215, %c0_216] : memref<100x1xf32, #tpu.memory_space<vmem>>, vector<100x1xf32>
    %229 = vector.broadcast %228 : vector<100x1xf32> to vector<100x64xf32>
    %230 = arith.mulf %227, %229 : vector<100x64xf32>
    %c11_217 = arith.constant 11 : index
    %c0_218 = arith.constant 0 : index
    %231 = vector.load %arg23[%c11_217, %c0_218] : memref<122x64xf32, #tpu.memory_space<vmem>>, vector<100x64xf32>
    tpu.vector_store %arg23[%c11_217, %c0_218], %230 {strides = array<i32>} : memref<122x64xf32, #tpu.memory_space<vmem>>, vector<100x64xf32>,
    %c0_219 = arith.constant 0 : index
    %c0_220 = arith.constant 0 : index
    %c0_221 = arith.constant 0 : index
    %232 = vector.load %arg8[%c0_219, %c0_220, %c0_221] : memref<9x64x128xbf16, #tpu.memory_space<vmem>>, vector<1x64x128xbf16>
    %233 = vector.shape_cast %232 : vector<1x64x128xbf16> to vector<64x128xbf16>
    %c1_222 = arith.constant 1 : index
    %c0_223 = arith.constant 0 : index
    %c0_224 = arith.constant 0 : index
    %234 = vector.load %arg8[%c1_222, %c0_223, %c0_224] : memref<9x64x128xbf16, #tpu.memory_space<vmem>>, vector<1x64x128xbf16>
    %235 = vector.shape_cast %234 : vector<1x64x128xbf16> to vector<64x128xbf16>
    %c2_225 = arith.constant 2 : index
    %c0_226 = arith.constant 0 : index
    %c0_227 = arith.constant 0 : index
    %236 = vector.load %arg8[%c2_225, %c0_226, %c0_227] : memref<9x64x128xbf16, #tpu.memory_space<vmem>>, vector<1x64x128xbf16>
    %237 = vector.shape_cast %236 : vector<1x64x128xbf16> to vector<64x128xbf16>
    %c3_228 = arith.constant 3 : index
    %c0_229 = arith.constant 0 : index
    %c0_230 = arith.constant 0 : index
    %238 = vector.load %arg8[%c3_228, %c0_229, %c0_230] : memref<9x64x128xbf16, #tpu.memory_space<vmem>>, vector<1x64x128xbf16>
    %239 = vector.shape_cast %238 : vector<1x64x128xbf16> to vector<64x128xbf16>
    %c4_231 = arith.constant 4 : index
    %c0_232 = arith.constant 0 : index
    %c0_233 = arith.constant 0 : index
    %240 = vector.load %arg8[%c4_231, %c0_232, %c0_233] : memref<9x64x128xbf16, #tpu.memory_space<vmem>>, vector<1x64x128xbf16>
    %241 = vector.shape_cast %240 : vector<1x64x128xbf16> to vector<64x128xbf16>
    %c5_234 = arith.constant 5 : index
    %c0_235 = arith.constant 0 : index
    %c0_236 = arith.constant 0 : index
    %242 = vector.load %arg8[%c5_234, %c0_235, %c0_236] : memref<9x64x128xbf16, #tpu.memory_space<vmem>>, vector<1x64x128xbf16>
    %243 = vector.shape_cast %242 : vector<1x64x128xbf16> to vector<64x128xbf16>
    %c6_237 = arith.constant 6 : index
    %c0_238 = arith.constant 0 : index
    %c0_239 = arith.constant 0 : index
    %244 = vector.load %arg8[%c6_237, %c0_238, %c0_239] : memref<9x64x128xbf16, #tpu.memory_space<vmem>>, vector<1x64x128xbf16>
    %245 = vector.shape_cast %244 : vector<1x64x128xbf16> to vector<64x128xbf16>
    %c7_240 = arith.constant 7 : index
    %c0_241 = arith.constant 0 : index
    %c0_242 = arith.constant 0 : index
    %246 = vector.load %arg8[%c7_240, %c0_241, %c0_242] : memref<9x64x128xbf16, #tpu.memory_space<vmem>>, vector<1x64x128xbf16>
    %247 = vector.shape_cast %246 : vector<1x64x128xbf16> to vector<64x128xbf16>
    %c8_243 = arith.constant 8 : index
    %c0_244 = arith.constant 0 : index
    %c0_245 = arith.constant 0 : index
    %248 = vector.load %arg8[%c8_243, %c0_244, %c0_245] : memref<9x64x128xbf16, #tpu.memory_space<vmem>>, vector<1x64x128xbf16>
    %249 = vector.shape_cast %248 : vector<1x64x128xbf16> to vector<64x128xbf16>
    %c0_246 = arith.constant 0 : index
    %c0_247 = arith.constant 0 : index
    %250 = vector.load %arg9[%c0_246, %c0_247] : memref<1x128xf32, #tpu.memory_space<vmem>>, vector<1x128xf32>
    %c11_248 = arith.constant 11 : index
    %c0_249 = arith.constant 0 : index
    %251 = tpu.strided_load %arg23[%c11_248, %c0_249] {strides = array<i32: 2, 1>} : memref<122x64xf32, #tpu.memory_space<vmem>>, vector<4x64xf32>
    %c31 = arith.constant 31 : index
    %c0_250 = arith.constant 0 : index
    %252 = tpu.strided_load %arg23[%c31, %c0_250] {strides = array<i32: 2, 1>} : memref<122x64xf32, #tpu.memory_space<vmem>>, vector<4x64xf32>
    %c51 = arith.constant 51 : index
    %c0_251 = arith.constant 0 : index
    %253 = tpu.strided_load %arg23[%c51, %c0_251] {strides = array<i32: 2, 1>} : memref<122x64xf32, #tpu.memory_space<vmem>>, vector<4x64xf32>
    %c71 = arith.constant 71 : index
    %c0_252 = arith.constant 0 : index
    %254 = tpu.strided_load %arg23[%c71, %c0_252] {strides = array<i32: 2, 1>} : memref<122x64xf32, #tpu.memory_space<vmem>>, vector<4x64xf32>
    %255 = tpu.concatenate %251, %252, %253, %254 in 0 : vector<4x64xf32>, vector<4x64xf32>, vector<4x64xf32>, vector<4x64xf32> -> vector<16x64xf32>
    %256 = arith.truncf %255 : vector<16x64xf32> to vector<16x64xbf16>
    %cst_253 = arith.constant dense<0.000000e+00> : vector<16x128xf32>
    %257 = tpu.matmul %256, %233, %cst_253 {dimension_numbers = #tpu.dot_dimension_numbers<[1], [0], [0], [1], [0, 0, 1, 1], [], []>} : vector<16x64xbf16>, vector<64x128xbf16>, vector<16x128xf32> -> vector<16x128xf32>
    %c12_254 = arith.constant 12 : index
    %c0_255 = arith.constant 0 : index
    %258 = tpu.strided_load %arg23[%c12_254, %c0_255] {strides = array<i32: 2, 1>} : memref<122x64xf32, #tpu.memory_space<vmem>>, vector<4x64xf32>
    %c32_256 = arith.constant 32 : index
    %c0_257 = arith.constant 0 : index
    %259 = tpu.strided_load %arg23[%c32_256, %c0_257] {strides = array<i32: 2, 1>} : memref<122x64xf32, #tpu.memory_space<vmem>>, vector<4x64xf32>
    %c52_258 = arith.constant 52 : index
    %c0_259 = arith.constant 0 : index
    %260 = tpu.strided_load %arg23[%c52_258, %c0_259] {strides = array<i32: 2, 1>} : memref<122x64xf32, #tpu.memory_space<vmem>>, vector<4x64xf32>
    %c72_260 = arith.constant 72 : index
    %c0_261 = arith.constant 0 : index
    %261 = tpu.strided_load %arg23[%c72_260, %c0_261] {strides = array<i32: 2, 1>} : memref<122x64xf32, #tpu.memory_space<vmem>>, vector<4x64xf32>
    %262 = tpu.concatenate %258, %259, %260, %261 in 0 : vector<4x64xf32>, vector<4x64xf32>, vector<4x64xf32>, vector<4x64xf32> -> vector<16x64xf32>
    %263 = arith.truncf %262 : vector<16x64xf32> to vector<16x64xbf16>
    %cst_262 = arith.constant dense<0.000000e+00> : vector<16x128xf32>
    %264 = tpu.matmul %263, %235, %cst_262 {dimension_numbers = #tpu.dot_dimension_numbers<[1], [0], [0], [1], [0, 0, 1, 1], [], []>} : vector<16x64xbf16>, vector<64x128xbf16>, vector<16x128xf32> -> vector<16x128xf32>
    %265 = arith.addf %257, %264 : vector<16x128xf32>
    %c13 = arith.constant 13 : index
    %c0_263 = arith.constant 0 : index
    %266 = tpu.strided_load %arg23[%c13, %c0_263] {strides = array<i32: 2, 1>} : memref<122x64xf32, #tpu.memory_space<vmem>>, vector<4x64xf32>
    %c33 = arith.constant 33 : index
    %c0_264 = arith.constant 0 : index
    %267 = tpu.strided_load %arg23[%c33, %c0_264] {strides = array<i32: 2, 1>} : memref<122x64xf32, #tpu.memory_space<vmem>>, vector<4x64xf32>
    %c53 = arith.constant 53 : index
    %c0_265 = arith.constant 0 : index
    %268 = tpu.strided_load %arg23[%c53, %c0_265] {strides = array<i32: 2, 1>} : memref<122x64xf32, #tpu.memory_space<vmem>>, vector<4x64xf32>
    %c73_266 = arith.constant 73 : index
    %c0_267 = arith.constant 0 : index
    %269 = tpu.strided_load %arg23[%c73_266, %c0_267] {strides = array<i32: 2, 1>} : memref<122x64xf32, #tpu.memory_space<vmem>>, vector<4x64xf32>
    %270 = tpu.concatenate %266, %267, %268, %269 in 0 : vector<4x64xf32>, vector<4x64xf32>, vector<4x64xf32>, vector<4x64xf32> -> vector<16x64xf32>
    %271 = arith.truncf %270 : vector<16x64xf32> to vector<16x64xbf16>
    %cst_268 = arith.constant dense<0.000000e+00> : vector<16x128xf32>
    %272 = tpu.matmul %271, %237, %cst_268 {dimension_numbers = #tpu.dot_dimension_numbers<[1], [0], [0], [1], [0, 0, 1, 1], [], []>} : vector<16x64xbf16>, vector<64x128xbf16>, vector<16x128xf32> -> vector<16x128xf32>
    %273 = arith.addf %265, %272 : vector<16x128xf32>
    %c21_269 = arith.constant 21 : index
    %c0_270 = arith.constant 0 : index
    %274 = tpu.strided_load %arg23[%c21_269, %c0_270] {strides = array<i32: 2, 1>} : memref<122x64xf32, #tpu.memory_space<vmem>>, vector<4x64xf32>
    %c41 = arith.constant 41 : index
    %c0_271 = arith.constant 0 : index
    %275 = tpu.strided_load %arg23[%c41, %c0_271] {strides = array<i32: 2, 1>} : memref<122x64xf32, #tpu.memory_space<vmem>>, vector<4x64xf32>
    %c61 = arith.constant 61 : index
    %c0_272 = arith.constant 0 : index
    %276 = tpu.strided_load %arg23[%c61, %c0_272] {strides = array<i32: 2, 1>} : memref<122x64xf32, #tpu.memory_space<vmem>>, vector<4x64xf32>
    %c81 = arith.constant 81 : index
    %c0_273 = arith.constant 0 : index
    %277 = tpu.strided_load %arg23[%c81, %c0_273] {strides = array<i32: 2, 1>} : memref<122x64xf32, #tpu.memory_space<vmem>>, vector<4x64xf32>
    %278 = tpu.concatenate %274, %275, %276, %277 in 0 : vector<4x64xf32>, vector<4x64xf32>, vector<4x64xf32>, vector<4x64xf32> -> vector<16x64xf32>
    %279 = arith.truncf %278 : vector<16x64xf32> to vector<16x64xbf16>
    %cst_274 = arith.constant dense<0.000000e+00> : vector<16x128xf32>
    %280 = tpu.matmul %279, %239, %cst_274 {dimension_numbers = #tpu.dot_dimension_numbers<[1], [0], [0], [1], [0, 0, 1, 1], [], []>} : vector<16x64xbf16>, vector<64x128xbf16>, vector<16x128xf32> -> vector<16x128xf32>
    %281 = arith.addf %273, %280 : vector<16x128xf32>
    %c22_275 = arith.constant 22 : index
    %c0_276 = arith.constant 0 : index
    %282 = tpu.strided_load %arg23[%c22_275, %c0_276] {strides = array<i32: 2, 1>} : memref<122x64xf32, #tpu.memory_space<vmem>>, vector<4x64xf32>
    %c42_277 = arith.constant 42 : index
    %c0_278 = arith.constant 0 : index
    %283 = tpu.strided_load %arg23[%c42_277, %c0_278] {strides = array<i32: 2, 1>} : memref<122x64xf32, #tpu.memory_space<vmem>>, vector<4x64xf32>
    %c62_279 = arith.constant 62 : index
    %c0_280 = arith.constant 0 : index
    %284 = tpu.strided_load %arg23[%c62_279, %c0_280] {strides = array<i32: 2, 1>} : memref<122x64xf32, #tpu.memory_space<vmem>>, vector<4x64xf32>
    %c82_281 = arith.constant 82 : index
    %c0_282 = arith.constant 0 : index
    %285 = tpu.strided_load %arg23[%c82_281, %c0_282] {strides = array<i32: 2, 1>} : memref<122x64xf32, #tpu.memory_space<vmem>>, vector<4x64xf32>
    %286 = tpu.concatenate %282, %283, %284, %285 in 0 : vector<4x64xf32>, vector<4x64xf32>, vector<4x64xf32>, vector<4x64xf32> -> vector<16x64xf32>
    %287 = arith.truncf %286 : vector<16x64xf32> to vector<16x64xbf16>
    %cst_283 = arith.constant dense<0.000000e+00> : vector<16x128xf32>
    %288 = tpu.matmul %287, %241, %cst_283 {dimension_numbers = #tpu.dot_dimension_numbers<[1], [0], [0], [1], [0, 0, 1, 1], [], []>} : vector<16x64xbf16>, vector<64x128xbf16>, vector<16x128xf32> -> vector<16x128xf32>
    %289 = arith.addf %281, %288 : vector<16x128xf32>
    %c23 = arith.constant 23 : index
    %c0_284 = arith.constant 0 : index
    %290 = tpu.strided_load %arg23[%c23, %c0_284] {strides = array<i32: 2, 1>} : memref<122x64xf32, #tpu.memory_space<vmem>>, vector<4x64xf32>
    %c43 = arith.constant 43 : index
    %c0_285 = arith.constant 0 : index
    %291 = tpu.strided_load %arg23[%c43, %c0_285] {strides = array<i32: 2, 1>} : memref<122x64xf32, #tpu.memory_space<vmem>>, vector<4x64xf32>
    %c63 = arith.constant 63 : index
    %c0_286 = arith.constant 0 : index
    %292 = tpu.strided_load %arg23[%c63, %c0_286] {strides = array<i32: 2, 1>} : memref<122x64xf32, #tpu.memory_space<vmem>>, vector<4x64xf32>
    %c83 = arith.constant 83 : index
    %c0_287 = arith.constant 0 : index
    %293 = tpu.strided_load %arg23[%c83, %c0_287] {strides = array<i32: 2, 1>} : memref<122x64xf32, #tpu.memory_space<vmem>>, vector<4x64xf32>
    %294 = tpu.concatenate %290, %291, %292, %293 in 0 : vector<4x64xf32>, vector<4x64xf32>, vector<4x64xf32>, vector<4x64xf32> -> vector<16x64xf32>
    %295 = arith.truncf %294 : vector<16x64xf32> to vector<16x64xbf16>
    %cst_288 = arith.constant dense<0.000000e+00> : vector<16x128xf32>
    %296 = tpu.matmul %295, %243, %cst_288 {dimension_numbers = #tpu.dot_dimension_numbers<[1], [0], [0], [1], [0, 0, 1, 1], [], []>} : vector<16x64xbf16>, vector<64x128xbf16>, vector<16x128xf32> -> vector<16x128xf32>
    %297 = arith.addf %289, %296 : vector<16x128xf32>
    %c31_289 = arith.constant 31 : index
    %c0_290 = arith.constant 0 : index
    %298 = tpu.strided_load %arg23[%c31_289, %c0_290] {strides = array<i32: 2, 1>} : memref<122x64xf32, #tpu.memory_space<vmem>>, vector<4x64xf32>
    %c51_291 = arith.constant 51 : index
    %c0_292 = arith.constant 0 : index
    %299 = tpu.strided_load %arg23[%c51_291, %c0_292] {strides = array<i32: 2, 1>} : memref<122x64xf32, #tpu.memory_space<vmem>>, vector<4x64xf32>
    %c71_293 = arith.constant 71 : index
    %c0_294 = arith.constant 0 : index
    %300 = tpu.strided_load %arg23[%c71_293, %c0_294] {strides = array<i32: 2, 1>} : memref<122x64xf32, #tpu.memory_space<vmem>>, vector<4x64xf32>
    %c91_295 = arith.constant 91 : index
    %c0_296 = arith.constant 0 : index
    %301 = tpu.strided_load %arg23[%c91_295, %c0_296] {strides = array<i32: 2, 1>} : memref<122x64xf32, #tpu.memory_space<vmem>>, vector<4x64xf32>
    %302 = tpu.concatenate %298, %299, %300, %301 in 0 : vector<4x64xf32>, vector<4x64xf32>, vector<4x64xf32>, vector<4x64xf32> -> vector<16x64xf32>
    %303 = arith.truncf %302 : vector<16x64xf32> to vector<16x64xbf16>
    %cst_297 = arith.constant dense<0.000000e+00> : vector<16x128xf32>
    %304 = tpu.matmul %303, %245, %cst_297 {dimension_numbers = #tpu.dot_dimension_numbers<[1], [0], [0], [1], [0, 0, 1, 1], [], []>} : vector<16x64xbf16>, vector<64x128xbf16>, vector<16x128xf32> -> vector<16x128xf32>
    %305 = arith.addf %297, %304 : vector<16x128xf32>
    %c32_298 = arith.constant 32 : index
    %c0_299 = arith.constant 0 : index
    %306 = tpu.strided_load %arg23[%c32_298, %c0_299] {strides = array<i32: 2, 1>} : memref<122x64xf32, #tpu.memory_space<vmem>>, vector<4x64xf32>
    %c52_300 = arith.constant 52 : index
    %c0_301 = arith.constant 0 : index
    %307 = tpu.strided_load %arg23[%c52_300, %c0_301] {strides = array<i32: 2, 1>} : memref<122x64xf32, #tpu.memory_space<vmem>>, vector<4x64xf32>
    %c72_302 = arith.constant 72 : index
    %c0_303 = arith.constant 0 : index
    %308 = tpu.strided_load %arg23[%c72_302, %c0_303] {strides = array<i32: 2, 1>} : memref<122x64xf32, #tpu.memory_space<vmem>>, vector<4x64xf32>
    %c92_304 = arith.constant 92 : index
    %c0_305 = arith.constant 0 : index
    %309 = tpu.strided_load %arg23[%c92_304, %c0_305] {strides = array<i32: 2, 1>} : memref<122x64xf32, #tpu.memory_space<vmem>>, vector<4x64xf32>
    %310 = tpu.concatenate %306, %307, %308, %309 in 0 : vector<4x64xf32>, vector<4x64xf32>, vector<4x64xf32>, vector<4x64xf32> -> vector<16x64xf32>
    %311 = arith.truncf %310 : vector<16x64xf32> to vector<16x64xbf16>
    %cst_306 = arith.constant dense<0.000000e+00> : vector<16x128xf32>
    %312 = tpu.matmul %311, %247, %cst_306 {dimension_numbers = #tpu.dot_dimension_numbers<[1], [0], [0], [1], [0, 0, 1, 1], [], []>} : vector<16x64xbf16>, vector<64x128xbf16>, vector<16x128xf32> -> vector<16x128xf32>
    %313 = arith.addf %305, %312 : vector<16x128xf32>
    %c33_307 = arith.constant 33 : index
    %c0_308 = arith.constant 0 : index
    %314 = tpu.strided_load %arg23[%c33_307, %c0_308] {strides = array<i32: 2, 1>} : memref<122x64xf32, #tpu.memory_space<vmem>>, vector<4x64xf32>
    %c53_309 = arith.constant 53 : index
    %c0_310 = arith.constant 0 : index
    %315 = tpu.strided_load %arg23[%c53_309, %c0_310] {strides = array<i32: 2, 1>} : memref<122x64xf32, #tpu.memory_space<vmem>>, vector<4x64xf32>
    %c73_311 = arith.constant 73 : index
    %c0_312 = arith.constant 0 : index
    %316 = tpu.strided_load %arg23[%c73_311, %c0_312] {strides = array<i32: 2, 1>} : memref<122x64xf32, #tpu.memory_space<vmem>>, vector<4x64xf32>
    %c93_313 = arith.constant 93 : index
    %c0_314 = arith.constant 0 : index
    %317 = tpu.strided_load %arg23[%c93_313, %c0_314] {strides = array<i32: 2, 1>} : memref<122x64xf32, #tpu.memory_space<vmem>>, vector<4x64xf32>
    %318 = tpu.concatenate %314, %315, %316, %317 in 0 : vector<4x64xf32>, vector<4x64xf32>, vector<4x64xf32>, vector<4x64xf32> -> vector<16x64xf32>
    %319 = arith.truncf %318 : vector<16x64xf32> to vector<16x64xbf16>
    %cst_315 = arith.constant dense<0.000000e+00> : vector<16x128xf32>
    %320 = tpu.matmul %319, %249, %cst_315 {dimension_numbers = #tpu.dot_dimension_numbers<[1], [0], [0], [1], [0, 0, 1, 1], [], []>} : vector<16x64xbf16>, vector<64x128xbf16>, vector<16x128xf32> -> vector<16x128xf32>
    %321 = arith.addf %313, %320 : vector<16x128xf32>
    %322 = vector.broadcast %250 : vector<1x128xf32> to vector<16x128xf32>
    %323 = arith.addf %321, %322 : vector<16x128xf32>
    %cst_316 = arith.constant 0.000000e+00 : f32
    %324 = vector.broadcast %cst_316 : f32 to vector<16x128xf32>
    %325 = arith.maximumf %323, %324 : vector<16x128xf32>
    %326 = vector.extract_strided_slice %325 {offsets = [0, 0], sizes = [4, 128], strides = [1, 1]} : vector<16x128xf32> to vector<4x128xf32>
    %c14 = arith.constant 14 : index
    %c0_317 = arith.constant 0 : index
    %327 = vector.load %arg24[%c14, %c0_317] : memref<50x128xf32, #tpu.memory_space<vmem>>, vector<4x128xf32>
    tpu.vector_store %arg24[%c14, %c0_317], %326 {strides = array<i32>} : memref<50x128xf32, #tpu.memory_space<vmem>>, vector<4x128xf32>,
    %328 = vector.extract_strided_slice %325 {offsets = [4, 0], sizes = [4, 128], strides = [1, 1]} : vector<16x128xf32> to vector<4x128xf32>
    %c20_318 = arith.constant 20 : index
    %c0_319 = arith.constant 0 : index
    %329 = vector.load %arg24[%c20_318, %c0_319] : memref<50x128xf32, #tpu.memory_space<vmem>>, vector<4x128xf32>
    tpu.vector_store %arg24[%c20_318, %c0_319], %328 {strides = array<i32>} : memref<50x128xf32, #tpu.memory_space<vmem>>, vector<4x128xf32>,
    %330 = vector.extract_strided_slice %325 {offsets = [8, 0], sizes = [4, 128], strides = [1, 1]} : vector<16x128xf32> to vector<4x128xf32>
    %c26 = arith.constant 26 : index
    %c0_320 = arith.constant 0 : index
    %331 = vector.load %arg24[%c26, %c0_320] : memref<50x128xf32, #tpu.memory_space<vmem>>, vector<4x128xf32>
    tpu.vector_store %arg24[%c26, %c0_320], %330 {strides = array<i32>} : memref<50x128xf32, #tpu.memory_space<vmem>>, vector<4x128xf32>,
    %332 = vector.extract_strided_slice %325 {offsets = [12, 0], sizes = [4, 128], strides = [1, 1]} : vector<16x128xf32> to vector<4x128xf32>
    %c32_321 = arith.constant 32 : index
    %c0_322 = arith.constant 0 : index
    %333 = vector.load %arg24[%c32_321, %c0_322] : memref<50x128xf32, #tpu.memory_space<vmem>>, vector<4x128xf32>
    tpu.vector_store %arg24[%c32_321, %c0_322], %332 {strides = array<i32>} : memref<50x128xf32, #tpu.memory_space<vmem>>, vector<4x128xf32>,
    %c0_323 = arith.constant 0 : index
    %c0_324 = arith.constant 0 : index
    %c0_325 = arith.constant 0 : index
    %334 = vector.load %arg10[%c0_323, %c0_324, %c0_325] : memref<9x128x128xbf16, #tpu.memory_space<vmem>>, vector<1x128x128xbf16>
    %335 = vector.shape_cast %334 : vector<1x128x128xbf16> to vector<128x128xbf16>
    %c1_326 = arith.constant 1 : index
    %c0_327 = arith.constant 0 : index
    %c0_328 = arith.constant 0 : index
    %336 = vector.load %arg10[%c1_326, %c0_327, %c0_328] : memref<9x128x128xbf16, #tpu.memory_space<vmem>>, vector<1x128x128xbf16>
    %337 = vector.shape_cast %336 : vector<1x128x128xbf16> to vector<128x128xbf16>
    %c2_329 = arith.constant 2 : index
    %c0_330 = arith.constant 0 : index
    %c0_331 = arith.constant 0 : index
    %338 = vector.load %arg10[%c2_329, %c0_330, %c0_331] : memref<9x128x128xbf16, #tpu.memory_space<vmem>>, vector<1x128x128xbf16>
    %339 = vector.shape_cast %338 : vector<1x128x128xbf16> to vector<128x128xbf16>
    %c3_332 = arith.constant 3 : index
    %c0_333 = arith.constant 0 : index
    %c0_334 = arith.constant 0 : index
    %340 = vector.load %arg10[%c3_332, %c0_333, %c0_334] : memref<9x128x128xbf16, #tpu.memory_space<vmem>>, vector<1x128x128xbf16>
    %341 = vector.shape_cast %340 : vector<1x128x128xbf16> to vector<128x128xbf16>
    %c4_335 = arith.constant 4 : index
    %c0_336 = arith.constant 0 : index
    %c0_337 = arith.constant 0 : index
    %342 = vector.load %arg10[%c4_335, %c0_336, %c0_337] : memref<9x128x128xbf16, #tpu.memory_space<vmem>>, vector<1x128x128xbf16>
    %343 = vector.shape_cast %342 : vector<1x128x128xbf16> to vector<128x128xbf16>
    %c5_338 = arith.constant 5 : index
    %c0_339 = arith.constant 0 : index
    %c0_340 = arith.constant 0 : index
    %344 = vector.load %arg10[%c5_338, %c0_339, %c0_340] : memref<9x128x128xbf16, #tpu.memory_space<vmem>>, vector<1x128x128xbf16>
    %345 = vector.shape_cast %344 : vector<1x128x128xbf16> to vector<128x128xbf16>
    %c6_341 = arith.constant 6 : index
    %c0_342 = arith.constant 0 : index
    %c0_343 = arith.constant 0 : index
    %346 = vector.load %arg10[%c6_341, %c0_342, %c0_343] : memref<9x128x128xbf16, #tpu.memory_space<vmem>>, vector<1x128x128xbf16>
    %347 = vector.shape_cast %346 : vector<1x128x128xbf16> to vector<128x128xbf16>
    %c7_344 = arith.constant 7 : index
    %c0_345 = arith.constant 0 : index
    %c0_346 = arith.constant 0 : index
    %348 = vector.load %arg10[%c7_344, %c0_345, %c0_346] : memref<9x128x128xbf16, #tpu.memory_space<vmem>>, vector<1x128x128xbf16>
    %349 = vector.shape_cast %348 : vector<1x128x128xbf16> to vector<128x128xbf16>
    %c8_347 = arith.constant 8 : index
    %c0_348 = arith.constant 0 : index
    %c0_349 = arith.constant 0 : index
    %350 = vector.load %arg10[%c8_347, %c0_348, %c0_349] : memref<9x128x128xbf16, #tpu.memory_space<vmem>>, vector<1x128x128xbf16>
    %351 = vector.shape_cast %350 : vector<1x128x128xbf16> to vector<128x128xbf16>
    %c0_350 = arith.constant 0 : index
    %c0_351 = arith.constant 0 : index
    %352 = vector.load %arg11[%c0_350, %c0_351] : memref<1x128xf32, #tpu.memory_space<vmem>>, vector<1x128xf32>
    %c0_352 = arith.constant 0 : index
    %c0_353 = arith.constant 0 : index
    %353 = vector.load %arg24[%c0_352, %c0_353] : memref<50x128xf32, #tpu.memory_space<vmem>>, vector<36x128xf32>
    %354 = arith.truncf %353 : vector<36x128xf32> to vector<36x128xbf16>
    %cst_354 = arith.constant dense<0.000000e+00> : vector<36x128xf32>
    %355 = tpu.matmul %354, %335, %cst_354 {dimension_numbers = #tpu.dot_dimension_numbers<[1], [0], [0], [1], [0, 0, 1, 1], [], []>} : vector<36x128xbf16>, vector<128x128xbf16>, vector<36x128xf32> -> vector<36x128xf32>
    %c1_355 = arith.constant 1 : index
    %c0_356 = arith.constant 0 : index
    %356 = vector.load %arg24[%c1_355, %c0_356] : memref<50x128xf32, #tpu.memory_space<vmem>>, vector<36x128xf32>
    %357 = arith.truncf %356 : vector<36x128xf32> to vector<36x128xbf16>
    %cst_357 = arith.constant dense<0.000000e+00> : vector<36x128xf32>
    %358 = tpu.matmul %357, %337, %cst_357 {dimension_numbers = #tpu.dot_dimension_numbers<[1], [0], [0], [1], [0, 0, 1, 1], [], []>} : vector<36x128xbf16>, vector<128x128xbf16>, vector<36x128xf32> -> vector<36x128xf32>
    %359 = arith.addf %355, %358 : vector<36x128xf32>
    %c2_358 = arith.constant 2 : index
    %c0_359 = arith.constant 0 : index
    %360 = vector.load %arg24[%c2_358, %c0_359] : memref<50x128xf32, #tpu.memory_space<vmem>>, vector<36x128xf32>
    %361 = arith.truncf %360 : vector<36x128xf32> to vector<36x128xbf16>
    %cst_360 = arith.constant dense<0.000000e+00> : vector<36x128xf32>
    %362 = tpu.matmul %361, %339, %cst_360 {dimension_numbers = #tpu.dot_dimension_numbers<[1], [0], [0], [1], [0, 0, 1, 1], [], []>} : vector<36x128xbf16>, vector<128x128xbf16>, vector<36x128xf32> -> vector<36x128xf32>
    %363 = arith.addf %359, %362 : vector<36x128xf32>
    %c6_361 = arith.constant 6 : index
    %c0_362 = arith.constant 0 : index
    %364 = vector.load %arg24[%c6_361, %c0_362] : memref<50x128xf32, #tpu.memory_space<vmem>>, vector<36x128xf32>
    %365 = arith.truncf %364 : vector<36x128xf32> to vector<36x128xbf16>
    %cst_363 = arith.constant dense<0.000000e+00> : vector<36x128xf32>
    %366 = tpu.matmul %365, %341, %cst_363 {dimension_numbers = #tpu.dot_dimension_numbers<[1], [0], [0], [1], [0, 0, 1, 1], [], []>} : vector<36x128xbf16>, vector<128x128xbf16>, vector<36x128xf32> -> vector<36x128xf32>
    %367 = arith.addf %363, %366 : vector<36x128xf32>
    %c7_364 = arith.constant 7 : index
    %c0_365 = arith.constant 0 : index
    %368 = vector.load %arg24[%c7_364, %c0_365] : memref<50x128xf32, #tpu.memory_space<vmem>>, vector<36x128xf32>
    %369 = arith.truncf %368 : vector<36x128xf32> to vector<36x128xbf16>
    %cst_366 = arith.constant dense<0.000000e+00> : vector<36x128xf32>
    %370 = tpu.matmul %369, %343, %cst_366 {dimension_numbers = #tpu.dot_dimension_numbers<[1], [0], [0], [1], [0, 0, 1, 1], [], []>} : vector<36x128xbf16>, vector<128x128xbf16>, vector<36x128xf32> -> vector<36x128xf32>
    %371 = arith.addf %367, %370 : vector<36x128xf32>
    %c8_367 = arith.constant 8 : index
    %c0_368 = arith.constant 0 : index
    %372 = vector.load %arg24[%c8_367, %c0_368] : memref<50x128xf32, #tpu.memory_space<vmem>>, vector<36x128xf32>
    %373 = arith.truncf %372 : vector<36x128xf32> to vector<36x128xbf16>
    %cst_369 = arith.constant dense<0.000000e+00> : vector<36x128xf32>
    %374 = tpu.matmul %373, %345, %cst_369 {dimension_numbers = #tpu.dot_dimension_numbers<[1], [0], [0], [1], [0, 0, 1, 1], [], []>} : vector<36x128xbf16>, vector<128x128xbf16>, vector<36x128xf32> -> vector<36x128xf32>
    %375 = arith.addf %371, %374 : vector<36x128xf32>
    %c12_370 = arith.constant 12 : index
    %c0_371 = arith.constant 0 : index
    %376 = vector.load %arg24[%c12_370, %c0_371] : memref<50x128xf32, #tpu.memory_space<vmem>>, vector<36x128xf32>
    %377 = arith.truncf %376 : vector<36x128xf32> to vector<36x128xbf16>
    %cst_372 = arith.constant dense<0.000000e+00> : vector<36x128xf32>
    %378 = tpu.matmul %377, %347, %cst_372 {dimension_numbers = #tpu.dot_dimension_numbers<[1], [0], [0], [1], [0, 0, 1, 1], [], []>} : vector<36x128xbf16>, vector<128x128xbf16>, vector<36x128xf32> -> vector<36x128xf32>
    %379 = arith.addf %375, %378 : vector<36x128xf32>
    %c13_373 = arith.constant 13 : index
    %c0_374 = arith.constant 0 : index
    %380 = vector.load %arg24[%c13_373, %c0_374] : memref<50x128xf32, #tpu.memory_space<vmem>>, vector<36x128xf32>
    %381 = arith.truncf %380 : vector<36x128xf32> to vector<36x128xbf16>
    %cst_375 = arith.constant dense<0.000000e+00> : vector<36x128xf32>
    %382 = tpu.matmul %381, %349, %cst_375 {dimension_numbers = #tpu.dot_dimension_numbers<[1], [0], [0], [1], [0, 0, 1, 1], [], []>} : vector<36x128xbf16>, vector<128x128xbf16>, vector<36x128xf32> -> vector<36x128xf32>
    %383 = arith.addf %379, %382 : vector<36x128xf32>
    %c14_376 = arith.constant 14 : index
    %c0_377 = arith.constant 0 : index
    %384 = vector.load %arg24[%c14_376, %c0_377] : memref<50x128xf32, #tpu.memory_space<vmem>>, vector<36x128xf32>
    %385 = arith.truncf %384 : vector<36x128xf32> to vector<36x128xbf16>
    %cst_378 = arith.constant dense<0.000000e+00> : vector<36x128xf32>
    %386 = tpu.matmul %385, %351, %cst_378 {dimension_numbers = #tpu.dot_dimension_numbers<[1], [0], [0], [1], [0, 0, 1, 1], [], []>} : vector<36x128xbf16>, vector<128x128xbf16>, vector<36x128xf32> -> vector<36x128xf32>
    %387 = arith.addf %383, %386 : vector<36x128xf32>
    %388 = vector.broadcast %352 : vector<1x128xf32> to vector<36x128xf32>
    %389 = arith.addf %387, %388 : vector<36x128xf32>
    %cst_379 = arith.constant 0.000000e+00 : f32
    %390 = vector.broadcast %cst_379 : f32 to vector<36x128xf32>
    %391 = arith.maximumf %389, %390 : vector<36x128xf32>
    %c0_380 = arith.constant 0 : index
    %c0_381 = arith.constant 0 : index
    %392 = vector.load %arg18[%c0_380, %c0_381] : memref<36x1xf32, #tpu.memory_space<vmem>>, vector<36x1xf32>
    %393 = vector.broadcast %392 : vector<36x1xf32> to vector<36x128xf32>
    %394 = arith.mulf %391, %393 : vector<36x128xf32>
    %c7_382 = arith.constant 7 : index
    %c0_383 = arith.constant 0 : index
    %395 = vector.load %arg25[%c7_382, %c0_383] : memref<50x128xf32, #tpu.memory_space<vmem>>, vector<36x128xf32>
    tpu.vector_store %arg25[%c7_382, %c0_383], %394 {strides = array<i32>} : memref<50x128xf32, #tpu.memory_space<vmem>>, vector<36x128xf32>,
    %c0_384 = arith.constant 0 : index
    %c0_385 = arith.constant 0 : index
    %c0_386 = arith.constant 0 : index
    %396 = vector.load %arg12[%c0_384, %c0_385, %c0_386] : memref<9x128x128xbf16, #tpu.memory_space<vmem>>, vector<1x128x128xbf16>
    %397 = vector.shape_cast %396 : vector<1x128x128xbf16> to vector<128x128xbf16>
    %c1_387 = arith.constant 1 : index
    %c0_388 = arith.constant 0 : index
    %c0_389 = arith.constant 0 : index
    %398 = vector.load %arg12[%c1_387, %c0_388, %c0_389] : memref<9x128x128xbf16, #tpu.memory_space<vmem>>, vector<1x128x128xbf16>
    %399 = vector.shape_cast %398 : vector<1x128x128xbf16> to vector<128x128xbf16>
    %c2_390 = arith.constant 2 : index
    %c0_391 = arith.constant 0 : index
    %c0_392 = arith.constant 0 : index
    %400 = vector.load %arg12[%c2_390, %c0_391, %c0_392] : memref<9x128x128xbf16, #tpu.memory_space<vmem>>, vector<1x128x128xbf16>
    %401 = vector.shape_cast %400 : vector<1x128x128xbf16> to vector<128x128xbf16>
    %c3_393 = arith.constant 3 : index
    %c0_394 = arith.constant 0 : index
    %c0_395 = arith.constant 0 : index
    %402 = vector.load %arg12[%c3_393, %c0_394, %c0_395] : memref<9x128x128xbf16, #tpu.memory_space<vmem>>, vector<1x128x128xbf16>
    %403 = vector.shape_cast %402 : vector<1x128x128xbf16> to vector<128x128xbf16>
    %c4_396 = arith.constant 4 : index
    %c0_397 = arith.constant 0 : index
    %c0_398 = arith.constant 0 : index
    %404 = vector.load %arg12[%c4_396, %c0_397, %c0_398] : memref<9x128x128xbf16, #tpu.memory_space<vmem>>, vector<1x128x128xbf16>
    %405 = vector.shape_cast %404 : vector<1x128x128xbf16> to vector<128x128xbf16>
    %c5_399 = arith.constant 5 : index
    %c0_400 = arith.constant 0 : index
    %c0_401 = arith.constant 0 : index
    %406 = vector.load %arg12[%c5_399, %c0_400, %c0_401] : memref<9x128x128xbf16, #tpu.memory_space<vmem>>, vector<1x128x128xbf16>
    %407 = vector.shape_cast %406 : vector<1x128x128xbf16> to vector<128x128xbf16>
    %c6_402 = arith.constant 6 : index
    %c0_403 = arith.constant 0 : index
    %c0_404 = arith.constant 0 : index
    %408 = vector.load %arg12[%c6_402, %c0_403, %c0_404] : memref<9x128x128xbf16, #tpu.memory_space<vmem>>, vector<1x128x128xbf16>
    %409 = vector.shape_cast %408 : vector<1x128x128xbf16> to vector<128x128xbf16>
    %c7_405 = arith.constant 7 : index
    %c0_406 = arith.constant 0 : index
    %c0_407 = arith.constant 0 : index
    %410 = vector.load %arg12[%c7_405, %c0_406, %c0_407] : memref<9x128x128xbf16, #tpu.memory_space<vmem>>, vector<1x128x128xbf16>
    %411 = vector.shape_cast %410 : vector<1x128x128xbf16> to vector<128x128xbf16>
    %c8_408 = arith.constant 8 : index
    %c0_409 = arith.constant 0 : index
    %c0_410 = arith.constant 0 : index
    %412 = vector.load %arg12[%c8_408, %c0_409, %c0_410] : memref<9x128x128xbf16, #tpu.memory_space<vmem>>, vector<1x128x128xbf16>
    %413 = vector.shape_cast %412 : vector<1x128x128xbf16> to vector<128x128xbf16>
    %c0_411 = arith.constant 0 : index
    %c0_412 = arith.constant 0 : index
    %414 = vector.load %arg13[%c0_411, %c0_412] : memref<1x128xf32, #tpu.memory_space<vmem>>, vector<1x128xf32>
    %c7_413 = arith.constant 7 : index
    %c0_414 = arith.constant 0 : index
    %415 = tpu.strided_load %arg25[%c7_413, %c0_414] {strides = array<i32: 2, 1>} : memref<50x128xf32, #tpu.memory_space<vmem>>, vector<2x128xf32>
    %c19_415 = arith.constant 19 : index
    %c0_416 = arith.constant 0 : index
    %416 = tpu.strided_load %arg25[%c19_415, %c0_416] {strides = array<i32: 2, 1>} : memref<50x128xf32, #tpu.memory_space<vmem>>, vector<2x128xf32>
    %417 = tpu.concatenate %415, %416 in 0 : vector<2x128xf32>, vector<2x128xf32> -> vector<4x128xf32>
    %418 = arith.truncf %417 : vector<4x128xf32> to vector<4x128xbf16>
    %cst_417 = arith.constant dense<0.000000e+00> : vector<4x128xf32>
    %419 = tpu.matmul %418, %397, %cst_417 {dimension_numbers = #tpu.dot_dimension_numbers<[1], [0], [0], [1], [0, 0, 1, 1], [], []>} : vector<4x128xbf16>, vector<128x128xbf16>, vector<4x128xf32> -> vector<4x128xf32>
    %c8_418 = arith.constant 8 : index
    %c0_419 = arith.constant 0 : index
    %420 = tpu.strided_load %arg25[%c8_418, %c0_419] {strides = array<i32: 2, 1>} : memref<50x128xf32, #tpu.memory_space<vmem>>, vector<2x128xf32>
    %c20_420 = arith.constant 20 : index
    %c0_421 = arith.constant 0 : index
    %421 = tpu.strided_load %arg25[%c20_420, %c0_421] {strides = array<i32: 2, 1>} : memref<50x128xf32, #tpu.memory_space<vmem>>, vector<2x128xf32>
    %422 = tpu.concatenate %420, %421 in 0 : vector<2x128xf32>, vector<2x128xf32> -> vector<4x128xf32>
    %423 = arith.truncf %422 : vector<4x128xf32> to vector<4x128xbf16>
    %cst_422 = arith.constant dense<0.000000e+00> : vector<4x128xf32>
    %424 = tpu.matmul %423, %399, %cst_422 {dimension_numbers = #tpu.dot_dimension_numbers<[1], [0], [0], [1], [0, 0, 1, 1], [], []>} : vector<4x128xbf16>, vector<128x128xbf16>, vector<4x128xf32> -> vector<4x128xf32>
    %425 = arith.addf %419, %424 : vector<4x128xf32>
    %c9 = arith.constant 9 : index
    %c0_423 = arith.constant 0 : index
    %426 = tpu.strided_load %arg25[%c9, %c0_423] {strides = array<i32: 2, 1>} : memref<50x128xf32, #tpu.memory_space<vmem>>, vector<2x128xf32>
    %c21_424 = arith.constant 21 : index
    %c0_425 = arith.constant 0 : index
    %427 = tpu.strided_load %arg25[%c21_424, %c0_425] {strides = array<i32: 2, 1>} : memref<50x128xf32, #tpu.memory_space<vmem>>, vector<2x128xf32>
    %428 = tpu.concatenate %426, %427 in 0 : vector<2x128xf32>, vector<2x128xf32> -> vector<4x128xf32>
    %429 = arith.truncf %428 : vector<4x128xf32> to vector<4x128xbf16>
    %cst_426 = arith.constant dense<0.000000e+00> : vector<4x128xf32>
    %430 = tpu.matmul %429, %401, %cst_426 {dimension_numbers = #tpu.dot_dimension_numbers<[1], [0], [0], [1], [0, 0, 1, 1], [], []>} : vector<4x128xbf16>, vector<128x128xbf16>, vector<4x128xf32> -> vector<4x128xf32>
    %431 = arith.addf %425, %430 : vector<4x128xf32>
    %c13_427 = arith.constant 13 : index
    %c0_428 = arith.constant 0 : index
    %432 = tpu.strided_load %arg25[%c13_427, %c0_428] {strides = array<i32: 2, 1>} : memref<50x128xf32, #tpu.memory_space<vmem>>, vector<2x128xf32>
    %c25 = arith.constant 25 : index
    %c0_429 = arith.constant 0 : index
    %433 = tpu.strided_load %arg25[%c25, %c0_429] {strides = array<i32: 2, 1>} : memref<50x128xf32, #tpu.memory_space<vmem>>, vector<2x128xf32>
    %434 = tpu.concatenate %432, %433 in 0 : vector<2x128xf32>, vector<2x128xf32> -> vector<4x128xf32>
    %435 = arith.truncf %434 : vector<4x128xf32> to vector<4x128xbf16>
    %cst_430 = arith.constant dense<0.000000e+00> : vector<4x128xf32>
    %436 = tpu.matmul %435, %403, %cst_430 {dimension_numbers = #tpu.dot_dimension_numbers<[1], [0], [0], [1], [0, 0, 1, 1], [], []>} : vector<4x128xbf16>, vector<128x128xbf16>, vector<4x128xf32> -> vector<4x128xf32>
    %437 = arith.addf %431, %436 : vector<4x128xf32>
    %c14_431 = arith.constant 14 : index
    %c0_432 = arith.constant 0 : index
    %438 = tpu.strided_load %arg25[%c14_431, %c0_432] {strides = array<i32: 2, 1>} : memref<50x128xf32, #tpu.memory_space<vmem>>, vector<2x128xf32>
    %c26_433 = arith.constant 26 : index
    %c0_434 = arith.constant 0 : index
    %439 = tpu.strided_load %arg25[%c26_433, %c0_434] {strides = array<i32: 2, 1>} : memref<50x128xf32, #tpu.memory_space<vmem>>, vector<2x128xf32>
    %440 = tpu.concatenate %438, %439 in 0 : vector<2x128xf32>, vector<2x128xf32> -> vector<4x128xf32>
    %441 = arith.truncf %440 : vector<4x128xf32> to vector<4x128xbf16>
    %cst_435 = arith.constant dense<0.000000e+00> : vector<4x128xf32>
    %442 = tpu.matmul %441, %405, %cst_435 {dimension_numbers = #tpu.dot_dimension_numbers<[1], [0], [0], [1], [0, 0, 1, 1], [], []>} : vector<4x128xbf16>, vector<128x128xbf16>, vector<4x128xf32> -> vector<4x128xf32>
    %443 = arith.addf %437, %442 : vector<4x128xf32>
    %c15 = arith.constant 15 : index
    %c0_436 = arith.constant 0 : index
    %444 = tpu.strided_load %arg25[%c15, %c0_436] {strides = array<i32: 2, 1>} : memref<50x128xf32, #tpu.memory_space<vmem>>, vector<2x128xf32>
    %c27 = arith.constant 27 : index
    %c0_437 = arith.constant 0 : index
    %445 = tpu.strided_load %arg25[%c27, %c0_437] {strides = array<i32: 2, 1>} : memref<50x128xf32, #tpu.memory_space<vmem>>, vector<2x128xf32>
    %446 = tpu.concatenate %444, %445 in 0 : vector<2x128xf32>, vector<2x128xf32> -> vector<4x128xf32>
    %447 = arith.truncf %446 : vector<4x128xf32> to vector<4x128xbf16>
    %cst_438 = arith.constant dense<0.000000e+00> : vector<4x128xf32>
    %448 = tpu.matmul %447, %407, %cst_438 {dimension_numbers = #tpu.dot_dimension_numbers<[1], [0], [0], [1], [0, 0, 1, 1], [], []>} : vector<4x128xbf16>, vector<128x128xbf16>, vector<4x128xf32> -> vector<4x128xf32>
    %449 = arith.addf %443, %448 : vector<4x128xf32>
    %c19_439 = arith.constant 19 : index
    %c0_440 = arith.constant 0 : index
    %450 = tpu.strided_load %arg25[%c19_439, %c0_440] {strides = array<i32: 2, 1>} : memref<50x128xf32, #tpu.memory_space<vmem>>, vector<2x128xf32>
    %c31_441 = arith.constant 31 : index
    %c0_442 = arith.constant 0 : index
    %451 = tpu.strided_load %arg25[%c31_441, %c0_442] {strides = array<i32: 2, 1>} : memref<50x128xf32, #tpu.memory_space<vmem>>, vector<2x128xf32>
    %452 = tpu.concatenate %450, %451 in 0 : vector<2x128xf32>, vector<2x128xf32> -> vector<4x128xf32>
    %453 = arith.truncf %452 : vector<4x128xf32> to vector<4x128xbf16>
    %cst_443 = arith.constant dense<0.000000e+00> : vector<4x128xf32>
    %454 = tpu.matmul %453, %409, %cst_443 {dimension_numbers = #tpu.dot_dimension_numbers<[1], [0], [0], [1], [0, 0, 1, 1], [], []>} : vector<4x128xbf16>, vector<128x128xbf16>, vector<4x128xf32> -> vector<4x128xf32>
    %455 = arith.addf %449, %454 : vector<4x128xf32>
    %c20_444 = arith.constant 20 : index
    %c0_445 = arith.constant 0 : index
    %456 = tpu.strided_load %arg25[%c20_444, %c0_445] {strides = array<i32: 2, 1>} : memref<50x128xf32, #tpu.memory_space<vmem>>, vector<2x128xf32>
    %c32_446 = arith.constant 32 : index
    %c0_447 = arith.constant 0 : index
    %457 = tpu.strided_load %arg25[%c32_446, %c0_447] {strides = array<i32: 2, 1>} : memref<50x128xf32, #tpu.memory_space<vmem>>, vector<2x128xf32>
    %458 = tpu.concatenate %456, %457 in 0 : vector<2x128xf32>, vector<2x128xf32> -> vector<4x128xf32>
    %459 = arith.truncf %458 : vector<4x128xf32> to vector<4x128xbf16>
    %cst_448 = arith.constant dense<0.000000e+00> : vector<4x128xf32>
    %460 = tpu.matmul %459, %411, %cst_448 {dimension_numbers = #tpu.dot_dimension_numbers<[1], [0], [0], [1], [0, 0, 1, 1], [], []>} : vector<4x128xbf16>, vector<128x128xbf16>, vector<4x128xf32> -> vector<4x128xf32>
    %461 = arith.addf %455, %460 : vector<4x128xf32>
    %c21_449 = arith.constant 21 : index
    %c0_450 = arith.constant 0 : index
    %462 = tpu.strided_load %arg25[%c21_449, %c0_450] {strides = array<i32: 2, 1>} : memref<50x128xf32, #tpu.memory_space<vmem>>, vector<2x128xf32>
    %c33_451 = arith.constant 33 : index
    %c0_452 = arith.constant 0 : index
    %463 = tpu.strided_load %arg25[%c33_451, %c0_452] {strides = array<i32: 2, 1>} : memref<50x128xf32, #tpu.memory_space<vmem>>, vector<2x128xf32>
    %464 = tpu.concatenate %462, %463 in 0 : vector<2x128xf32>, vector<2x128xf32> -> vector<4x128xf32>
    %465 = arith.truncf %464 : vector<4x128xf32> to vector<4x128xbf16>
    %cst_453 = arith.constant dense<0.000000e+00> : vector<4x128xf32>
    %466 = tpu.matmul %465, %413, %cst_453 {dimension_numbers = #tpu.dot_dimension_numbers<[1], [0], [0], [1], [0, 0, 1, 1], [], []>} : vector<4x128xbf16>, vector<128x128xbf16>, vector<4x128xf32> -> vector<4x128xf32>
    %467 = arith.addf %461, %466 : vector<4x128xf32>
    %468 = vector.broadcast %414 : vector<1x128xf32> to vector<4x128xf32>
    %469 = arith.addf %467, %468 : vector<4x128xf32>
    %cst_454 = arith.constant 0.000000e+00 : f32
    %470 = vector.broadcast %cst_454 : f32 to vector<4x128xf32>
    %471 = arith.maximumf %469, %470 : vector<4x128xf32>
    %472 = vector.extract_strided_slice %471 {offsets = [0, 0], sizes = [2, 128], strides = [1, 1]} : vector<4x128xf32> to vector<2x128xf32>
    %c10_455 = arith.constant 10 : index
    %c0_456 = arith.constant 0 : index
    %473 = vector.load %arg26[%c10_455, %c0_456] : memref<26x128xf32, #tpu.memory_space<vmem>>, vector<2x128xf32>
    tpu.vector_store %arg26[%c10_455, %c0_456], %472 {strides = array<i32>} : memref<26x128xf32, #tpu.memory_space<vmem>>, vector<2x128xf32>,
    %474 = vector.extract_strided_slice %471 {offsets = [2, 0], sizes = [2, 128], strides = [1, 1]} : vector<4x128xf32> to vector<2x128xf32>
    %c14_457 = arith.constant 14 : index
    %c0_458 = arith.constant 0 : index
    %475 = vector.load %arg26[%c14_457, %c0_458] : memref<26x128xf32, #tpu.memory_space<vmem>>, vector<2x128xf32>
    tpu.vector_store %arg26[%c14_457, %c0_458], %474 {strides = array<i32>} : memref<26x128xf32, #tpu.memory_space<vmem>>, vector<2x128xf32>,
    %c0_459 = arith.constant 0 : index
    %c0_460 = arith.constant 0 : index
    %c0_461 = arith.constant 0 : index
    %476 = vector.load %arg14[%c0_459, %c0_460, %c0_461] : memref<9x128x128xbf16, #tpu.memory_space<vmem>>, vector<1x128x128xbf16>
    %477 = vector.shape_cast %476 : vector<1x128x128xbf16> to vector<128x128xbf16>
    %c1_462 = arith.constant 1 : index
    %c0_463 = arith.constant 0 : index
    %c0_464 = arith.constant 0 : index
    %478 = vector.load %arg14[%c1_462, %c0_463, %c0_464] : memref<9x128x128xbf16, #tpu.memory_space<vmem>>, vector<1x128x128xbf16>
    %479 = vector.shape_cast %478 : vector<1x128x128xbf16> to vector<128x128xbf16>
    %c2_465 = arith.constant 2 : index
    %c0_466 = arith.constant 0 : index
    %c0_467 = arith.constant 0 : index
    %480 = vector.load %arg14[%c2_465, %c0_466, %c0_467] : memref<9x128x128xbf16, #tpu.memory_space<vmem>>, vector<1x128x128xbf16>
    %481 = vector.shape_cast %480 : vector<1x128x128xbf16> to vector<128x128xbf16>
    %c3_468 = arith.constant 3 : index
    %c0_469 = arith.constant 0 : index
    %c0_470 = arith.constant 0 : index
    %482 = vector.load %arg14[%c3_468, %c0_469, %c0_470] : memref<9x128x128xbf16, #tpu.memory_space<vmem>>, vector<1x128x128xbf16>
    %483 = vector.shape_cast %482 : vector<1x128x128xbf16> to vector<128x128xbf16>
    %c4_471 = arith.constant 4 : index
    %c0_472 = arith.constant 0 : index
    %c0_473 = arith.constant 0 : index
    %484 = vector.load %arg14[%c4_471, %c0_472, %c0_473] : memref<9x128x128xbf16, #tpu.memory_space<vmem>>, vector<1x128x128xbf16>
    %485 = vector.shape_cast %484 : vector<1x128x128xbf16> to vector<128x128xbf16>
    %c5_474 = arith.constant 5 : index
    %c0_475 = arith.constant 0 : index
    %c0_476 = arith.constant 0 : index
    %486 = vector.load %arg14[%c5_474, %c0_475, %c0_476] : memref<9x128x128xbf16, #tpu.memory_space<vmem>>, vector<1x128x128xbf16>
    %487 = vector.shape_cast %486 : vector<1x128x128xbf16> to vector<128x128xbf16>
    %c6_477 = arith.constant 6 : index
    %c0_478 = arith.constant 0 : index
    %c0_479 = arith.constant 0 : index
    %488 = vector.load %arg14[%c6_477, %c0_478, %c0_479] : memref<9x128x128xbf16, #tpu.memory_space<vmem>>, vector<1x128x128xbf16>
    %489 = vector.shape_cast %488 : vector<1x128x128xbf16> to vector<128x128xbf16>
    %c7_480 = arith.constant 7 : index
    %c0_481 = arith.constant 0 : index
    %c0_482 = arith.constant 0 : index
    %490 = vector.load %arg14[%c7_480, %c0_481, %c0_482] : memref<9x128x128xbf16, #tpu.memory_space<vmem>>, vector<1x128x128xbf16>
    %491 = vector.shape_cast %490 : vector<1x128x128xbf16> to vector<128x128xbf16>
    %c8_483 = arith.constant 8 : index
    %c0_484 = arith.constant 0 : index
    %c0_485 = arith.constant 0 : index
    %492 = vector.load %arg14[%c8_483, %c0_484, %c0_485] : memref<9x128x128xbf16, #tpu.memory_space<vmem>>, vector<1x128x128xbf16>
    %493 = vector.shape_cast %492 : vector<1x128x128xbf16> to vector<128x128xbf16>
    %c0_486 = arith.constant 0 : index
    %c0_487 = arith.constant 0 : index
    %494 = vector.load %arg15[%c0_486, %c0_487] : memref<1x128xf32, #tpu.memory_space<vmem>>, vector<1x128xf32>
    %c0_488 = arith.constant 0 : index
    %c0_489 = arith.constant 0 : index
    %495 = vector.load %arg26[%c0_488, %c0_489] : memref<26x128xf32, #tpu.memory_space<vmem>>, vector<16x128xf32>
    %496 = arith.truncf %495 : vector<16x128xf32> to vector<16x128xbf16>
    %cst_490 = arith.constant dense<0.000000e+00> : vector<16x128xf32>
    %497 = tpu.matmul %496, %477, %cst_490 {dimension_numbers = #tpu.dot_dimension_numbers<[1], [0], [0], [1], [0, 0, 1, 1], [], []>} : vector<16x128xbf16>, vector<128x128xbf16>, vector<16x128xf32> -> vector<16x128xf32>
    %c1_491 = arith.constant 1 : index
    %c0_492 = arith.constant 0 : index
    %498 = vector.load %arg26[%c1_491, %c0_492] : memref<26x128xf32, #tpu.memory_space<vmem>>, vector<16x128xf32>
    %499 = arith.truncf %498 : vector<16x128xf32> to vector<16x128xbf16>
    %cst_493 = arith.constant dense<0.000000e+00> : vector<16x128xf32>
    %500 = tpu.matmul %499, %479, %cst_493 {dimension_numbers = #tpu.dot_dimension_numbers<[1], [0], [0], [1], [0, 0, 1, 1], [], []>} : vector<16x128xbf16>, vector<128x128xbf16>, vector<16x128xf32> -> vector<16x128xf32>
    %501 = arith.addf %497, %500 : vector<16x128xf32>
    %c2_494 = arith.constant 2 : index
    %c0_495 = arith.constant 0 : index
    %502 = vector.load %arg26[%c2_494, %c0_495] : memref<26x128xf32, #tpu.memory_space<vmem>>, vector<16x128xf32>
    %503 = arith.truncf %502 : vector<16x128xf32> to vector<16x128xbf16>
    %cst_496 = arith.constant dense<0.000000e+00> : vector<16x128xf32>
    %504 = tpu.matmul %503, %481, %cst_496 {dimension_numbers = #tpu.dot_dimension_numbers<[1], [0], [0], [1], [0, 0, 1, 1], [], []>} : vector<16x128xbf16>, vector<128x128xbf16>, vector<16x128xf32> -> vector<16x128xf32>
    %505 = arith.addf %501, %504 : vector<16x128xf32>
    %c4_497 = arith.constant 4 : index
    %c0_498 = arith.constant 0 : index
    %506 = vector.load %arg26[%c4_497, %c0_498] : memref<26x128xf32, #tpu.memory_space<vmem>>, vector<16x128xf32>
    %507 = arith.truncf %506 : vector<16x128xf32> to vector<16x128xbf16>
    %cst_499 = arith.constant dense<0.000000e+00> : vector<16x128xf32>
    %508 = tpu.matmul %507, %483, %cst_499 {dimension_numbers = #tpu.dot_dimension_numbers<[1], [0], [0], [1], [0, 0, 1, 1], [], []>} : vector<16x128xbf16>, vector<128x128xbf16>, vector<16x128xf32> -> vector<16x128xf32>
    %509 = arith.addf %505, %508 : vector<16x128xf32>
    %c5_500 = arith.constant 5 : index
    %c0_501 = arith.constant 0 : index
    %510 = vector.load %arg26[%c5_500, %c0_501] : memref<26x128xf32, #tpu.memory_space<vmem>>, vector<16x128xf32>
    %511 = arith.truncf %510 : vector<16x128xf32> to vector<16x128xbf16>
    %cst_502 = arith.constant dense<0.000000e+00> : vector<16x128xf32>
    %512 = tpu.matmul %511, %485, %cst_502 {dimension_numbers = #tpu.dot_dimension_numbers<[1], [0], [0], [1], [0, 0, 1, 1], [], []>} : vector<16x128xbf16>, vector<128x128xbf16>, vector<16x128xf32> -> vector<16x128xf32>
    %513 = arith.addf %509, %512 : vector<16x128xf32>
    %c6_503 = arith.constant 6 : index
    %c0_504 = arith.constant 0 : index
    %514 = vector.load %arg26[%c6_503, %c0_504] : memref<26x128xf32, #tpu.memory_space<vmem>>, vector<16x128xf32>
    %515 = arith.truncf %514 : vector<16x128xf32> to vector<16x128xbf16>
    %cst_505 = arith.constant dense<0.000000e+00> : vector<16x128xf32>
    %516 = tpu.matmul %515, %487, %cst_505 {dimension_numbers = #tpu.dot_dimension_numbers<[1], [0], [0], [1], [0, 0, 1, 1], [], []>} : vector<16x128xbf16>, vector<128x128xbf16>, vector<16x128xf32> -> vector<16x128xf32>
    %517 = arith.addf %513, %516 : vector<16x128xf32>
    %c8_506 = arith.constant 8 : index
    %c0_507 = arith.constant 0 : index
    %518 = vector.load %arg26[%c8_506, %c0_507] : memref<26x128xf32, #tpu.memory_space<vmem>>, vector<16x128xf32>
    %519 = arith.truncf %518 : vector<16x128xf32> to vector<16x128xbf16>
    %cst_508 = arith.constant dense<0.000000e+00> : vector<16x128xf32>
    %520 = tpu.matmul %519, %489, %cst_508 {dimension_numbers = #tpu.dot_dimension_numbers<[1], [0], [0], [1], [0, 0, 1, 1], [], []>} : vector<16x128xbf16>, vector<128x128xbf16>, vector<16x128xf32> -> vector<16x128xf32>
    %521 = arith.addf %517, %520 : vector<16x128xf32>
    %c9_509 = arith.constant 9 : index
    %c0_510 = arith.constant 0 : index
    %522 = vector.load %arg26[%c9_509, %c0_510] : memref<26x128xf32, #tpu.memory_space<vmem>>, vector<16x128xf32>
    %523 = arith.truncf %522 : vector<16x128xf32> to vector<16x128xbf16>
    %cst_511 = arith.constant dense<0.000000e+00> : vector<16x128xf32>
    %524 = tpu.matmul %523, %491, %cst_511 {dimension_numbers = #tpu.dot_dimension_numbers<[1], [0], [0], [1], [0, 0, 1, 1], [], []>} : vector<16x128xbf16>, vector<128x128xbf16>, vector<16x128xf32> -> vector<16x128xf32>
    %525 = arith.addf %521, %524 : vector<16x128xf32>
    %c10_512 = arith.constant 10 : index
    %c0_513 = arith.constant 0 : index
    %526 = vector.load %arg26[%c10_512, %c0_513] : memref<26x128xf32, #tpu.memory_space<vmem>>, vector<16x128xf32>
    %527 = arith.truncf %526 : vector<16x128xf32> to vector<16x128xbf16>
    %cst_514 = arith.constant dense<0.000000e+00> : vector<16x128xf32>
    %528 = tpu.matmul %527, %493, %cst_514 {dimension_numbers = #tpu.dot_dimension_numbers<[1], [0], [0], [1], [0, 0, 1, 1], [], []>} : vector<16x128xbf16>, vector<128x128xbf16>, vector<16x128xf32> -> vector<16x128xf32>
    %529 = arith.addf %525, %528 : vector<16x128xf32>
    %530 = vector.broadcast %494 : vector<1x128xf32> to vector<16x128xf32>
    %531 = arith.addf %529, %530 : vector<16x128xf32>
    %cst_515 = arith.constant 0.000000e+00 : f32
    %532 = vector.broadcast %cst_515 : f32 to vector<16x128xf32>
    %533 = arith.maximumf %531, %532 : vector<16x128xf32>
    %c0_516 = arith.constant 0 : index
    %c0_517 = arith.constant 0 : index
    %534 = vector.load %arg19[%c0_516, %c0_517] : memref<16x1xf32, #tpu.memory_space<vmem>>, vector<16x1xf32>
    %535 = vector.broadcast %534 : vector<16x1xf32> to vector<16x128xf32>
    %536 = arith.mulf %533, %535 : vector<16x128xf32>
    %cst_518 = arith.constant dense<0.000000e+00> : vector<128xf32>
    %537 = vector.multi_reduction <add>, %536, %cst_518 [0] : vector<16x128xf32> to vector<128xf32>
    %538 = vector.shape_cast %537 : vector<128xf32> to vector<1x128xf32>
    %cst_519 = arith.constant 2.500000e-01 : f32
    %539 = vector.broadcast %cst_519 : f32 to vector<1x128xf32>
    %540 = arith.mulf %538, %539 : vector<1x128xf32>
    %c0_520 = arith.constant 0 : index
    %c0_521 = arith.constant 0 : index
    %c0_522 = arith.constant 0 : index
    %541 = vector.load %arg20[%c0_520, %c0_521, %c0_522] : memref<1x1x128xf32, #tpu.memory_space<vmem>>, vector<1x1x128xf32>
    %542 = vector.shape_cast %541 : vector<1x1x128xf32> to vector<1x128xf32>
    %543 = vector.shape_cast %540 : vector<1x128xf32> to vector<1x1x128xf32>
    tpu.vector_store %arg20[%c0_520, %c0_521, %c0_522], %543 {strides = array<i32>} : memref<1x1x128xf32, #tpu.memory_space<vmem>>, vector<1x1x128xf32>,
    return
  }
  func.func @transform_0(%arg0: i32) -> (i32, i32, i32) {
    %c0_i32 = arith.constant 0 : i32
    %c0_i32_0 = arith.constant 0 : i32
    %c0_i32_1 = arith.constant 0 : i32
    return %arg0, %c0_i32, %c0_i32_0 : i32, i32, i32
  }
  func.func @transform_1(%arg0: i32) -> (i32, i32) {
    %c0_i32 = arith.constant 0 : i32
    %c0_i32_0 = arith.constant 0 : i32
    %c0_i32_1 = arith.constant 0 : i32
    return %c0_i32, %c0_i32_0 : i32, i32
  }
  func.func @transform_2(%arg0: i32) -> (i32, i32) {
    %c0_i32 = arith.constant 0 : i32
    %c0_i32_0 = arith.constant 0 : i32
    %c0_i32_1 = arith.constant 0 : i32
    return %c0_i32, %c0_i32_0 : i32, i32
  }
  func.func @transform_3(%arg0: i32) -> (i32, i32, i32) {
    %c0_i32 = arith.constant 0 : i32
    %c0_i32_0 = arith.constant 0 : i32
    %c0_i32_1 = arith.constant 0 : i32
    %c0_i32_2 = arith.constant 0 : i32
    return %c0_i32, %c0_i32_0, %c0_i32_1 : i32, i32, i32
  }
  func.func @transform_4(%arg0: i32) -> (i32, i32) {
    %c0_i32 = arith.constant 0 : i32
    %c0_i32_0 = arith.constant 0 : i32
    %c0_i32_1 = arith.constant 0 : i32
    return %c0_i32, %c0_i32_0 : i32, i32
  }
  func.func @transform_5(%arg0: i32) -> (i32, i32, i32) {
    %c0_i32 = arith.constant 0 : i32
    %c0_i32_0 = arith.constant 0 : i32
    %c0_i32_1 = arith.constant 0 : i32
    %c0_i32_2 = arith.constant 0 : i32
    return %c0_i32, %c0_i32_0, %c0_i32_1 : i32, i32, i32
  }
  func.func @transform_6(%arg0: i32) -> (i32, i32) {
    %c0_i32 = arith.constant 0 : i32
    %c0_i32_0 = arith.constant 0 : i32
    %c0_i32_1 = arith.constant 0 : i32
    return %c0_i32, %c0_i32_0 : i32, i32
  }
  func.func @transform_7(%arg0: i32) -> (i32, i32, i32) {
    %c0_i32 = arith.constant 0 : i32
    %c0_i32_0 = arith.constant 0 : i32
    %c0_i32_1 = arith.constant 0 : i32
    %c0_i32_2 = arith.constant 0 : i32
    return %c0_i32, %c0_i32_0, %c0_i32_1 : i32, i32, i32
  }
  func.func @transform_8(%arg0: i32) -> (i32, i32) {
    %c0_i32 = arith.constant 0 : i32
    %c0_i32_0 = arith.constant 0 : i32
    %c0_i32_1 = arith.constant 0 : i32
    return %c0_i32, %c0_i32_0 : i32, i32
  }
  func.func @transform_9(%arg0: i32) -> (i32, i32, i32) {
    %c0_i32 = arith.constant 0 : i32
    %c0_i32_0 = arith.constant 0 : i32
    %c0_i32_1 = arith.constant 0 : i32
    %c0_i32_2 = arith.constant 0 : i32
    return %c0_i32, %c0_i32_0, %c0_i32_1 : i32, i32, i32
  }
  func.func @transform_10(%arg0: i32) -> (i32, i32) {
    %c0_i32 = arith.constant 0 : i32
    %c0_i32_0 = arith.constant 0 : i32
    %c0_i32_1 = arith.constant 0 : i32
    return %c0_i32, %c0_i32_0 : i32, i32
  }
  func.func @transform_11(%arg0: i32) -> (i32, i32, i32) {
    %c0_i32 = arith.constant 0 : i32
    %c0_i32_0 = arith.constant 0 : i32
    %c0_i32_1 = arith.constant 0 : i32
    %c0_i32_2 = arith.constant 0 : i32
    return %c0_i32, %c0_i32_0, %c0_i32_1 : i32, i32, i32
  }
  func.func @transform_12(%arg0: i32) -> (i32, i32) {
    %c0_i32 = arith.constant 0 : i32
    %c0_i32_0 = arith.constant 0 : i32
    %c0_i32_1 = arith.constant 0 : i32
    return %c0_i32, %c0_i32_0 : i32, i32
  }
  func.func @transform_13(%arg0: i32) -> (i32, i32, i32) {
    %c0_i32 = arith.constant 0 : i32
    %c0_i32_0 = arith.constant 0 : i32
    %c0_i32_1 = arith.constant 0 : i32
    %c0_i32_2 = arith.constant 0 : i32
    return %c0_i32, %c0_i32_0, %c0_i32_1 : i32, i32, i32
  }
  func.func @transform_14(%arg0: i32) -> (i32, i32) {
    %c0_i32 = arith.constant 0 : i32
    %c0_i32_0 = arith.constant 0 : i32
    %c0_i32_1 = arith.constant 0 : i32
    return %c0_i32, %c0_i32_0 : i32, i32
  }
  func.func @transform_15(%arg0: i32) -> (i32, i32) {
    %c0_i32 = arith.constant 0 : i32
    %c0_i32_0 = arith.constant 0 : i32
    %c0_i32_1 = arith.constant 0 : i32
    return %c0_i32, %c0_i32_0 : i32, i32
  }
  func.func @transform_16(%arg0: i32) -> (i32, i32) {
    %c0_i32 = arith.constant 0 : i32
    %c0_i32_0 = arith.constant 0 : i32
    %c0_i32_1 = arith.constant 0 : i32
    return %c0_i32, %c0_i32_0 : i32, i32
  }
  func.func @transform_17(%arg0: i32) -> (i32, i32) {
    %c0_i32 = arith.constant 0 : i32
    %c0_i32_0 = arith.constant 0 : i32
    %c0_i32_1 = arith.constant 0 : i32
    return %c0_i32, %c0_i32_0 : i32, i32
  }
  func.func @transform_18(%arg0: i32) -> (i32, i32) {
    %c0_i32 = arith.constant 0 : i32
    %c0_i32_0 = arith.constant 0 : i32
    %c0_i32_1 = arith.constant 0 : i32
    return %c0_i32, %c0_i32_0 : i32, i32
  }
  func.func @transform_19(%arg0: i32) -> (i32, i32, i32) {
    %c0_i32 = arith.constant 0 : i32
    %c0_i32_0 = arith.constant 0 : i32
    %c0_i32_1 = arith.constant 0 : i32
    return %arg0, %c0_i32, %c0_i32_0 : i32, i32, i32
  }
}

</mosaic_0001>

<bundles_post_ra>
// kernel: qfcnn_forward.1
= control target key start
LH: loop header
LB: loop body
LE: loop exit
PB: predicated region body
PF: predicated region fallthrough
CT: control target
= control target key end

     0   :  { %s11374_s0 = inlined_call_operand.vmem [shape: f32[2,324,32], index: 0, kind: input, shape index: {}]   ;;  %s11375_s1 = inlined_call_operand.vmem [shape: bf16[32,32], index: 1, kind: input, shape index: {}]   ;;  %s11376_s2 = inlined_call_operand.vmem [shape: f32[1,32], index: 2, kind: input, shape index: {}]   ;;  %s11377_s3 = inlined_call_operand.vmem [shape: bf16[9,32,64], index: 3, kind: input, shape index: {}]   ;;  %s11378_s4 = inlined_call_operand.vmem [shape: f32[1,64], index: 4, kind: input, shape index: {}]   ;;  %s11379_s5 = inlined_call_operand.vmem [shape: bf16[9,64,64], index: 5, kind: input, shape index: {}]   ;;  %s11380_s6 = inlined_call_operand.vmem [shape: f32[1,64], index: 6, kind: input, shape index: {}]   ;;  %s11381_s7 = inlined_call_operand.vmem [shape: bf16[9,64,128], index: 7, kind: input, shape index: {}]   ;;  %s11382_s8 = inlined_call_operand.vmem [shape: f32[1,128], index: 8, kind: input, shape index: {}]   ;;  %s11383_s9 = inlined_call_operand.vmem [shape: bf16[9,128,128], index: 9, kind: input, shape index: {}]   ;;  %s11384_s10 = inlined_call_operand.vmem [shape: f32[1,128], index: 10, kind: input, shape index: {}]   ;;  %s11385_s11 = inlined_call_operand.vmem [shape: bf16[9,128,128], index: 11, kind: input, shape index: {}]   ;;  %s11386_s12 = inlined_call_operand.vmem [shape: f32[1,128], index: 12, kind: input, shape index: {}]   ;;  %s11387_s13 = inlined_call_operand.vmem [shape: bf16[9,128,128], index: 13, kind: input, shape index: {}]   ;;  %s11388_s14 = inlined_call_operand.vmem [shape: f32[1,128], index: 14, kind: input, shape index: {}]   ;;  %s11389_s15 = inlined_call_operand.vmem [shape: f32[324,1], index: 15, kind: input, shape index: {}]   ;;  %s11390_s16 = inlined_call_operand.vmem [shape: f32[100,1], index: 16, kind: input, shape index: {}]   ;;  %s11391_s17 = inlined_call_operand.vmem [shape: f32[36,1], index: 17, kind: input, shape index: {}]   ;;  %s11392_s18 = inlined_call_operand.vmem [shape: f32[16,1], index: 18, kind: input, shape index: {}]   ;;  %s11393_s19 = inlined_call_operand.hbm [shape: f32[2,1,128], index: 19, kind: output, shape index: {}]  }
   0x1   :  { %11404 = sst [smem:[#allocation19_spill]] %s11374_s0 }
   0x2   :  { %11405 = sst [smem:[#allocation20_spill]] %s11375_s1 }
   0x3   :  { %11406 = sst [smem:[#allocation21_spill]] %s11376_s2 }
   0x4   :  { %11407 = sst [smem:[#allocation22_spill]] %s11377_s3 }
   0x5   :  { %11408 = sst [smem:[#allocation23_spill]] %s11378_s4 }
   0x6   :  { %11409 = sst [smem:[#allocation24_spill]] %s11379_s5 }
   0x7   :  { %11410 = sst [smem:[#allocation25_spill]] %s11380_s6 }
   0x8   :  { %24 = vsyncpa [#allocation9], 0 }
   0x9   :  { %26 = vsyncpa [#allocation9 + $0x1], 0  ;;  %s8955_s0 = smov 0   ;;  %s8957_s30 = smov 0  }
   0xa   :  { %s8959_s20 = smov 0   ;;  %s8961_s21 = smov 0  }
   0xb LB: > { %11411 = sst [smem:[#allocation11_spill]] %s8839_s0  ;;  %s8976_s1 = sadd.s32 4294967295, %s8851_s21   ;;  %s8851_s21 = sphi %s8961_s21, %s11433_s21   ;;  %s8847_s20 = sphi %s8959_s20, %s11435_s20   ;;  %s8843_s30 = sphi %s8957_s30, %s11437_s30   ;;  %s8839_s0 = sphi %s8955_s0, %s11436_s0  }
   0xc   : > { %11412 = sst [smem:[#allocation12_spill]] %s8847_s20  ;;  %s6514_s22 = sadd.s32 4294967294, %s8851_s21  }
   0xd   : > { %11413 = sst [smem:[#allocation13_spill]] %s8851_s21  ;;  %s8980_s2 = sadd.s32 1, %s8851_s21  }
   0xe   : > { %11414 = sst [smem:[#allocation14_spill]] %s8980_s2  ;;  %s443_s23 = sadd.s32 1, %s8847_s20 }
   0xf   : > { %s440_s24 = ssub.s32 %s8851_s21, %s8980_s2  ;;  %p453_p0 = scmp.ne.s32.totalorder %s8847_s20, %s8843_s30 }
  0x10   : > { %p441_p1 = scmp.eq.s32.totalorder %s440_s24, 0  ;;  %p454_p2 = scmp.eq.s32.totalorder %s8976_s1, 1 }
  0x11   : > { %p459_p3 = scmp.ne.s32.totalorder %s8843_s30, %s8839_s0  ;;  %p460_p4 = scmp.eq.s32.totalorder %s6514_s22, 1 }
  0x12   : > { %s8991_s25 = scalar_select %p441_p1, %s8847_s20, %s443_s23  }
  0x13   : > { %p8993_p5 = por %p454_p2, %p453_p0  ;;  %p8997_p6 = por %p460_p4, %p459_p3 }
  0x14   : > { %11415 = sst [smem:[#allocation15_spill]] %s8991_s25  ;;  %p6517_p7 = scmp.ge.s32.totalorder %s8851_s21, 1 }
  0x15   : > { %s11416_s3 = scalar_select %p8993_p5, 1, 0 }
  0x16   : > { %s11418_s26 = scalar_select %p8997_p6, 1, 0 }
  0x17   : > { %11417 = sst [smem:[#allocation16_spill]] %s11416_s3  ;;  %p540_p8 = scmp.lt.s32.totalorder %s8851_s21, 3 }
  0x18   : > { %11419 = sst [smem:[#allocation17_spill]] %s11418_s26 }
  0x19   : > { %p541_p9 = pnand %p6517_p7, %p540_p8 }
  0x1b   : > { %544 = sbr.rel (%p541_p9) target bundleno = 1974 (0x7b6), region = 96 }
  0x20   : > { %v959_v0 = vld [vmem:[%s11389_s15] sm:$0xff]  ;;  %s11420_s23 = sld [smem:[#allocation20_spill]]  ;;  %p595_p10 = scmp.lt.s32.totalorder %s8976_s1, 1  ;;  %v8853_v2 = vmov 0   ;;  %v960_v5 = vld [vmem:[%s11389_s15 + $0x8] sm:$0xff]  ;;  %vm601_vm0 = vcmask 261120  }
  0x21   : > { %8776 = vset.pattern.permute.xlu0 %v8853_v2  ;;  %8777 = vset.pattern.permute.xlu1 %v8853_v2  ;;  %v963_v3 = vld [vmem:[%s11389_s15 + $0x20] sm:$0xff]  ;;  %s11421_s26 = sld [smem:[#allocation19_spill]]  ;;  %v964_v9 = vld [vmem:[%s11389_s15 + $0x28] sm:$0xff]  ;;  %v965_v10 = vld [vmem:[%s11389_s15 + $0x30] sm:$0xff]  ;;  %v8854_v52 = vmov 0.0   ;;  %vm649_vm1 = vcmask 523264   ;;  %s6455_s3 = scalar_lea.hbm %s11393_s19, %s8976_s1 }
  0x22   : > { %1002 = vperm.xlu0 %8776, %v959_v0   ;;  %s596_s27 = scalar_select %p595_p10, %s8976_s1, 1  ;;  %1022 = vperm.xlu1 %8777, %v963_v3   ;;  %v968_v11 = vld [vmem:[%s11389_s15 + $0x48] sm:$0xff]  ;;  %v969_v12 = vld [vmem:[%s11389_s15 + $0x50] sm:$0xff]  ;;  %v974_v18 = vld [vmem:[%s11389_s15 + $0x78] sm:$0xff]  ;;  %604 = vst.msk [vmem:[#allocation2 + $0x10] sm:$0xff] %vm601_vm0, %v8854_v52  ;;  %vm665_vm2 = vcmask 517120  }
  0x23   : > { %8778 = vset.pattern.permute.xlu2 %v8853_v2  ;;  %v961_v13 = vld [vmem:[%s11389_s15 + $0x10] sm:$0xff]  ;;  %v972_v19 = vld [vmem:[%s11389_s15 + $0x68] sm:$0xff]  ;;  %v978_v21 = vld [vmem:[%s11389_s15 + $0x98] sm:$0xff]  ;;  %605 = vst.msk [vmem:[#allocation2 + $0x18] sm:$0xff] %vm601_vm0, %v8854_v52  ;;  %s11423_s29 = sld [smem:[#allocation22_spill]]  ;;  %vm3404_vm3 = vcmask 1043456  }
  0x24   : > { %s8734_s28 = smul.u32 328, %s596_s27  ;;  %1032 = vperm.xlu2 %8778, %v965_v10   ;;  %v973_v17 = vld [vmem:[%s11389_s15 + $0x70] sm:$0xff]  ;;  %v970_v22 = vld [vmem:[%s11389_s15 + $0x58] sm:$0xff]  ;;  %v983_v27 = vld [vmem:[%s11389_s15 + $0xc0] sm:$0xff]  ;;  %606 = vst.msk [vmem:[#allocation2 + $0x20] sm:$0xff] %vm601_vm0, %v8854_v52  ;;  %s11425_s5 = sld [smem:[#allocation24_spill]] }
  0x25   : > { %v977_v20 = vld [vmem:[%s11389_s15 + $0x90] sm:$0xff]  ;;  %v982_v26 = vld [vmem:[%s11389_s15 + $0xb8] sm:$0xff]  ;;  %v987_v30 = vld [vmem:[%s11389_s15 + $0xe0] sm:$0xff]  ;;  %607 = vst.msk [vmem:[#allocation2 + $0x28] sm:$0xff] %vm601_vm0, %v8854_v52  ;;  %s11426_s4 = sld [smem:[#allocation23_spill]]  ;;  %vm5032_vm4 = vcmask 1041408  }
  0x26   : > { %v8427_v1 = vld [vmem:[%s11420_s23 + $0x8] sm:$0xff]  ;;  %v8426_v4 = vld [vmem:[%s11420_s23] sm:$0xff]  ;;  %v981_v28 = vld [vmem:[%s11389_s15 + $0xb0] sm:$0xff]  ;;  %608 = vst.msk [vmem:[#allocation2 + $0x30] sm:$0xff] %vm601_vm0, %v8854_v52  ;;  %s11427_s6 = sld [smem:[#allocation25_spill]]  ;;  %s593_s2 = sand.u32 1, %s8843_s30  }
  0x27   : > { %852 = vmatpush.bf16.msra.mxu0 %v8427_v1  ;;  %s9020_s0 = scalar_lea.vmem %s11421_s26, %s8734_s28  ;;  %v986_v29 = vld [vmem:[%s11389_s15 + $0xd8] sm:$0xff]  ;;  %v979_v31 = vld [vmem:[%s11389_s15 + $0xa0] sm:$0xff]  ;;  %v992_v36 = vld [vmem:[%s11389_s15 + $0x108] sm:$0xff]  ;;  %609 = vst.msk [vmem:[#allocation2 + $0x38] sm:$0xff] %vm601_vm0, %v8854_v52  ;;  %s11422_s28 = sld [smem:[#allocation21_spill]] }
  0x28   : > { %v701_v6 = vld [vmem:[%s9020_s0] sm:$0xff]  ;;  %v702_v7 = vld [vmem:[%s9020_s0 + $0x8] sm:$0xff]  ;;  %v703_v14 = vld [vmem:[%s9020_s0 + $0x10] sm:$0xff]  ;;  %610 = vst.msk [vmem:[#allocation2 + $0x40] sm:$0xff] %vm601_vm0, %v8854_v52  ;;  %s6459_s27 = sshll.u32 %s6455_s3, 4  ;;  %s8809_s1 = scalar_lea.hbm %s11393_s19, 2  ;;  %s6460_s27 = int_to_ptr.hbm [resolvable:$true] %s6459_s27 }
  0x29   : > { %v742_v8 = vpack.c.bf16 %v702_v7, %v701_v6  ;;  %v704_v15 = vld [vmem:[%s9020_s0 + $0x18] sm:$0xff]  ;;  %v705_v23 = vld [vmem:[%s9020_s0 + $0x20] sm:$0xff]  ;;  %v706_v24 = vld [vmem:[%s9020_s0 + $0x28] sm:$0xff]  ;;  %611 = vst.msk [vmem:[#allocation2 + $0x48] sm:$0xff] %vm601_vm0, %v8854_v52  ;;  %s8803_s22 = sshra.s32 %s6460_s27, 4  ;;  %s8804_s22 = int_to_ptr.hbm [resolvable:$true] %s8803_s22 }
  0x2a   : > { %1007 = vperm.xlu0 %8776, %v960_v5   ;;  %1027 = vperm.xlu1 %8777, %v964_v9   ;;  %v743_v16 = vpack.c.bf16 %v704_v15, %v703_v14  ;;  %v744_v25 = vpack.c.bf16 %v706_v24, %v705_v23  ;;  %v707_v32 = vld [vmem:[%s9020_s0 + $0x30] sm:$0xff]  ;;  %v708_v33 = vld [vmem:[%s9020_s0 + $0x38] sm:$0xff]  ;;  %v991_v35 = vld [vmem:[%s11389_s15 + $0x100] sm:$0xff]  ;;  %612 = vst.msk [vmem:[#allocation2 + $0x50] sm:$0xff] %vm601_vm0, %v8854_v52  ;;  %s8805_s20 = scalar_lea.hbm %s8804_s22, 1  ;;  %p8810_p0 = scmp.lt.s32.totalorder %s8804_s22, %s11393_s19 }
  0x2b   : > { %853 = vmatpush.bf16.msra.mxu0 %v8426_v4  ;;  %v745_v34 = vpack.c.bf16 %v708_v33, %v707_v32  ;;  %v990_v37 = vld [vmem:[%s11389_s15 + $0xf8] sm:$0xff]  ;;  %v988_v40 = vld [vmem:[%s11389_s15 + $0xe8] sm:$0xff]  ;;  %v709_v41 = vld [vmem:[%s9020_s0 + $0x40] sm:$0xff]  ;;  %613 = vst.msk [vmem:[#allocation2 + $0x58] sm:$0xff] %vm601_vm0, %v8854_v52  ;;  %p8806_p11 = scmp.ne.s32.totalorder %s8804_s22, %s8805_s20  ;;  %p8811_p1 = scmp.lt.s32.totalorder %s8809_s1, %s8805_s20 }
  0x2c   : > { %1012 = vperm.xlu2 %8778, %v961_v13   ;;  %v962_v38 = vld [vmem:[%s11389_s15 + $0x18] sm:$0xff]  ;;  %v710_v42 = vld [vmem:[%s9020_s0 + $0x48] sm:$0xff]  ;;  %v967_v44 = vld [vmem:[%s11389_s15 + $0x40] sm:$0xff]  ;;  %614 = vst.msk [vmem:[#allocation2 + $0x60] sm:$0xff] %vm601_vm0, %v8854_v52 }
  0x2d   : > { %v966_v39 = vld [vmem:[%s11389_s15 + $0x38] sm:$0xff]  ;;  %v746_v43 = vpack.c.bf16 %v710_v42, %v709_v41  ;;  %v711_v45 = vld [vmem:[%s9020_s0 + $0x50] sm:$0xff]  ;;  %v971_v47 = vld [vmem:[%s11389_s15 + $0x60] sm:$0xff]  ;;  %615 = vst.msk [vmem:[#allocation2 + $0x68] sm:$0xff] %vm601_vm0, %v8854_v52  ;;  %p8807_p12 = pnand %p8806_p11, %p8993_p5  ;;  %p8812_p2 = por %p8811_p1, %p8810_p0 }
  0x2e   : > { %6527 = vmatmul.msk.bf16.vlgmr.msra.gmra.mxu0 %vm601_vm0, %v742_v8  ;;  %v712_v46 = vld [vmem:[%s9020_s0 + $0x58] sm:$0xff]  ;;  %v713_v49 = vld [vmem:[%s9020_s0 + $0x60] sm:$0xff]  ;;  %v714_v50 = vld [vmem:[%s9020_s0 + $0x68] sm:$0xff]  ;;  %616 = vst.msk [vmem:[#allocation2 + $0x70] sm:$0xff] %vm601_vm0, %v8854_v52 }
  0x2f   : > { %v747_v48 = vpack.c.bf16 %v712_v46, %v711_v45  ;;  %v748_v51 = vpack.c.bf16 %v714_v50, %v713_v49  ;;  %v715_v53 = vld [vmem:[%s9020_s0 + $0x70] sm:$0xff]  ;;  %v716_v54 = vld [vmem:[%s9020_s0 + $0x78] sm:$0xff]  ;;  %617 = vst.msk [vmem:[#allocation2 + $0x78] sm:$0xff] %vm601_vm0, %v8854_v52  ;;  %v717_v61 = vld [vmem:[%s9020_s0 + $0x80] sm:$0xff]  ;;  %p8808_p13 = pneg %p8807_p12 }
  0x30   : > { %v749_v57 = vpack.c.bf16 %v716_v54, %v715_v53  ;;  %618 = vst.msk [vmem:[#allocation2 + $0x80] sm:$0xff] %vm601_vm0, %v8854_v52  ;;  %v718_v62 = vld [vmem:[%s9020_s0 + $0x88] sm:$0xff]  ;;  %v9191_v1 = vld [vmem:[%s11422_s28] ss:$0 sm:$0xff]  ;;  %v719_v15 = vld [vmem:[%s9020_s0 + $0x90] sm:$0xff]  ;;  %s6447_s28 = scalar_lea.sflag [#allocation9], %s593_s2 }
  0x31   : > { %619 = vst.msk [vmem:[#allocation2 + $0x88] sm:$0xff] %vm601_vm0, %v8854_v52  ;;  %v750_v3 = vpack.c.bf16 %v718_v62, %v717_v61  ;;  %v975_v4 = vld [vmem:[%s11389_s15 + $0x80] sm:$0xff]  ;;  %v980_v5 = vld [vmem:[%s11389_s15 + $0xa8] sm:$0xff]  ;;  %v3207_v41 = vld [vmem:[%s11390_s16 + $0x18] sm:$0xff]  ;;  %p8813_p3 = pnand %p8812_p2, %p8808_p13 }
  0x32   : > { %1047 = vperm.xlu0 %8776, %v968_v11   ;;  %1052 = vperm.xlu1 %8777, %v969_v12   ;;  %620 = vst.msk [vmem:[#allocation2 + $0x90] sm:$0xff] %vm601_vm0, %v8854_v52  ;;  %v984_v11 = vld [vmem:[%s11389_s15 + $0xc8] sm:$0xff]  ;;  %v989_v12 = vld [vmem:[%s11389_s15 + $0xf0] sm:$0xff]  ;;  %v3212_v42 = vld [vmem:[%s11390_s16 + $0x40] sm:$0xff] }
  0x33   : > { %621 = vst.msk [vmem:[#allocation2 + $0x98] sm:$0xff] %vm601_vm0, %v8854_v52  ;;  %v8430_v45 = vld [vmem:[%s11423_s29 + $0x10] sm:$0xff]  ;;  %v8428_v46 = vld [vmem:[%s11423_s29] sm:$0xff] }
  0x34   : > { %1067 = vperm.xlu2 %8778, %v972_v19   ;;  %622 = vst.msk [vmem:[#allocation2 + $0xa0] sm:$0xff] %vm601_vm0, %v8854_v52  ;;  %v995_v19 = vld [vmem:[%s11389_s15 + $0x120] sm:$0xff]  ;;  %v997_v53 = vld [vmem:[%s11389_s15 + $0x130] sm:$0xff] }
  0x35   : > { %623 = vst.msk [vmem:[#allocation2 + $0xa8] sm:$0xff] %vm601_vm0, %v8854_v52 }
  0x36   : > { %624 = vst.msk [vmem:[#allocation2 + $0xb0] sm:$0xff] %vm601_vm0, %v8854_v52 }
  0x37   : > { %625 = vst.msk [vmem:[#allocation2 + $0xb8] sm:$0xff] %vm601_vm0, %v8854_v52 }
  0x38   : > { %626 = vst.msk [vmem:[#allocation2 + $0xc0] sm:$0xff] %vm601_vm0, %v8854_v52 }
  0x39   : > { %627 = vst.msk [vmem:[#allocation2 + $0xc8] sm:$0xff] %vm601_vm0, %v8854_v52 }
  0x3a   : > { %1072 = vperm.xlu0 %8776, %v973_v17   ;;  %1077 = vperm.xlu1 %8777, %v974_v18   ;;  %628 = vst.msk [vmem:[#allocation2 + $0xd0] sm:$0xff] %vm601_vm0, %v8854_v52  ;;  %v993_v18 = vld [vmem:[%s11389_s15 + $0x110] sm:$0xff] }
  0x3b   : > { %629 = vst.msk [vmem:[#allocation2 + $0xd8] sm:$0xff] %vm601_vm0, %v8854_v52 }
  0x3c   : > { %1057 = vperm.xlu2 %8778, %v970_v22   ;;  %630 = vst.msk [vmem:[#allocation2 + $0xe0] sm:$0xff] %vm601_vm0, %v8854_v52 }
  0x3d   : > { %631 = vst.msk [vmem:[#allocation2 + $0xe8] sm:$0xff] %vm601_vm0, %v8854_v52 }
  0x3e   : > { %6528 = vmatmul.msk.bf16.gmra.mxu0 %vm601_vm0, %v743_v16  ;;  %632 = vst.msk [vmem:[#allocation2 + $0xf0] sm:$0xff] %vm601_vm0, %v8854_v52  ;;  %v720_v16 = vld [vmem:[%s9020_s0 + $0x98] sm:$0xff] }
  0x3f   : > { %633 = vst.msk [vmem:[#allocation2 + $0xf8] sm:$0xff] %vm601_vm0, %v8854_v52  ;;  %v751_v22 = vpack.c.bf16 %v720_v16, %v719_v15 }
  0x40   : > { %634 = vst.msk [vmem:[#allocation2 + $0x100] sm:$0xff] %vm601_vm0, %v8854_v52 }
  0x41   : > { %635 = vst.msk [vmem:[#allocation2 + $0x108] sm:$0xff] %vm601_vm0, %v8854_v52 }
  0x42   : > { %1092 = vperm.xlu0 %8776, %v977_v20   ;;  %1097 = vperm.xlu1 %8777, %v978_v21   ;;  %636 = vst.msk [vmem:[#allocation2 + $0x110] sm:$0xff] %vm601_vm0, %v8854_v52  ;;  %v976_v20 = vld [vmem:[%s11389_s15 + $0x88] sm:$0xff] }
  0x43   : > { %637 = vst.msk [vmem:[#allocation2 + $0x118] sm:$0xff] %vm601_vm0, %v8854_v52 }
  0x44   : > { %1112 = vperm.xlu2 %8778, %v981_v28   ;;  %638 = vst.msk [vmem:[#allocation2 + $0x120] sm:$0xff] %vm601_vm0, %v8854_v52  ;;  %v985_v28 = vld [vmem:[%s11389_s15 + $0xd0] sm:$0xff] }
  0x45   : > { %639 = vst.msk [vmem:[#allocation2 + $0x128] sm:$0xff] %vm601_vm0, %v8854_v52 }
  0x46   : > { %640 = vst.msk [vmem:[#allocation2 + $0x130] sm:$0xff] %vm601_vm0, %v8854_v52 }
  0x47   : > { %641 = vst.msk [vmem:[#allocation2 + $0x138] sm:$0xff] %vm601_vm0, %v8854_v52 }
  0x48   : > { %642 = vst.msk [vmem:[#allocation2 + $0x140] sm:$0xff] %vm601_vm0, %v8854_v52 }
  0x49   : > { %683 = vst [vmem:[#allocation5] sm:$0xff] %v8854_v52 }
  0x4a   : > { %1117 = vperm.xlu0 %8776, %v982_v26   ;;  %1122 = vperm.xlu1 %8777, %v983_v27   ;;  %684 = vst [vmem:[#allocation5 + $0x8] sm:$0xff] %v8854_v52  ;;  %v996_v26 = vld [vmem:[%s11389_s15 + $0x128] sm:$0xff]  ;;  %v3206_v27 = vld [vmem:[%s11390_s16 + $0x10] sm:$0xff] }
  0x4b   : > { %685 = vst [vmem:[#allocation5 + $0x10] sm:$0xff] %v8854_v52 }
  0x4c   : > { %1102 = vperm.xlu2 %8778, %v979_v31   ;;  %686 = vst [vmem:[#allocation5 + $0x18] sm:$0xff] %v8854_v52  ;;  %v8433_v31 = vld [vmem:[%s11423_s29 + $0x28] sm:$0xff] }
  0x4d   : > { %687 = vst [vmem:[#allocation5 + $0x20] sm:$0xff] %v8854_v52  ;;  %1529 = vmatpush.bf16.msra.mxu3 %v8433_v31 }
  0x4e   : > { %6529 = vmatmul.msk.bf16.gmra.mxu0 %vm601_vm0, %v744_v25  ;;  %688 = vst [vmem:[#allocation5 + $0x28] sm:$0xff] %v8854_v52 }
  0x4f   : > { %689 = vst [vmem:[#allocation5 + $0x30] sm:$0x3] %v8854_v52 }
  0x50   : > { %690 = vst [vmem:[#allocation6] sm:$0xff] %v8854_v52 }
  0x51   : > { %691 = vst [vmem:[#allocation6 + $0x8] sm:$0xff] %v8854_v52 }
  0x52   : > { %1137 = vperm.xlu0 %8776, %v986_v29   ;;  %1142 = vperm.xlu1 %8777, %v987_v30   ;;  %v8431_v29 = vld [vmem:[%s11423_s29 + $0x18] sm:$0xff]  ;;  %v8429_v30 = vld [vmem:[%s11423_s29 + $0x8] sm:$0xff]  ;;  %692 = vst [vmem:[#allocation6 + $0x10] sm:$0xff] %v8854_v52 }
  0x53   : > { %693 = vst [vmem:[#allocation6 + $0x18] sm:$0xff] %v8854_v52  ;;  %1403 = vmatpush.bf16.msra.mxu1 %v8431_v29  ;;  %1456 = vmatpush.bf16.msra.mxu2 %v8429_v30  ;;  %v726_v29 = vld [vmem:[%s9020_s0 + $0xc8] sm:$0xff] }
  0x54   : > { %1157 = vperm.xlu2 %8778, %v990_v37   ;;  %694 = vst [vmem:[#allocation6 + $0x20] sm:$0xff] %v8854_v52 }
  0x55   : > { %697 = vst [vmem:[#allocation7] sm:$0xff] %v8854_v52 }
  0x56   : > { %698 = vst [vmem:[#allocation7 + $0x8] sm:$0xff] %v8854_v52 }
  0x57   : > { %699 = vst [vmem:[#allocation7 + $0x10] sm:$0xff] %v8854_v52  ;;  %1404 = vmatpush.bf16.msra.mxu1 %v8430_v45  ;;  %1457 = vmatpush.bf16.msra.mxu2 %v8428_v46  ;;  %v4835_v45 = vld [vmem:[%s11391_s17 + $0x18] sm:$0xff] }
  0x58   : > { %700 = vst [vmem:[#allocation7 + $0x18] sm:$0x3] %v8854_v52 }
  0x5a   : > { %1162 = vperm.xlu0 %8776, %v991_v35   ;;  %1167 = vperm.xlu1 %8777, %v992_v36  }
  0x5c   : > { %1147 = vperm.xlu2 %8778, %v988_v40   ;;  %v722_v40 = vld [vmem:[%s9020_s0 + $0xa8] sm:$0xff] }
  0x5e   : > { %6530 = vmatmul.msk.bf16.gmra.mxu0 %vm601_vm0, %v745_v34 }
  0x62   : > { %1017 = vperm.xlu0 %8776, %v962_v38   ;;  %1037 = vperm.xlu1 %8777, %v966_v39   ;;  %v721_v38 = vld [vmem:[%s9020_s0 + $0xa0] sm:$0xff] }
  0x64   : > { %1042 = vperm.xlu2 %8778, %v967_v44   ;;  %v994_v44 = vld [vmem:[%s11389_s15 + $0x118] sm:$0xff] }
  0x6a   : > { %1062 = vperm.xlu0 %8776, %v971_v47   ;;  %1082 = vperm.xlu1 %8777, %v975_v4   ;;  %v8432_v47 = vld [vmem:[%s11423_s29 + $0x20] sm:$0xff]  ;;  %v723_v4 = vld [vmem:[%s9020_s0 + $0xb0] sm:$0xff] }
  0x6b   : > { %1530 = vmatpush.bf16.msra.mxu3 %v8432_v47 }
  0x6c   : > { %1087 = vperm.xlu2 %8778, %v976_v20   ;;  %v4833_v20 = vld [vmem:[%s11391_s17 + $0x8] sm:$0xff] }
  0x6e   : > { %6531 = vmatmul.msk.bf16.gmra.mxu0 %vm601_vm0, %v746_v43 }
  0x72   : > { %1107 = vperm.xlu0 %8776, %v980_v5   ;;  %1127 = vperm.xlu1 %8777, %v984_v11   ;;  %v724_v5 = vld [vmem:[%s9020_s0 + $0xb8] sm:$0xff] }
  0x74   : > { %1132 = vperm.xlu2 %8778, %v985_v28   ;;  %v725_v28 = vld [vmem:[%s9020_s0 + $0xc0] sm:$0xff] }
  0x75   : > { %v754_v46 = vpack.c.bf16 %v726_v29, %v725_v28 }
  0x7a   : > { %1152 = vperm.xlu0 %8776, %v989_v12   ;;  %1172 = vperm.xlu1 %8777, %v993_v18  }
  0x7c   : > { %1177 = vperm.xlu2 %8778, %v994_v44   ;;  %v3208_v44 = vld [vmem:[%s11390_s16 + $0x20] sm:$0xff] }
  0x7e   : > { %6532 = vmatmul.msk.bf16.gmra.mxu0 %vm601_vm0, %v747_v48  ;;  %v9155_v58 = vpop.permute.xlu2 %1032  ;;  %v752_v48 = vpack.c.bf16 %v722_v40, %v721_v38 }
  0x82   : > { %1182 = vperm.xlu0 %8776, %v995_v19   ;;  %1187 = vperm.xlu1 %8777, %v996_v26   ;;  %v3214_v19 = vld [vmem:[%s11390_s16 + $0x50] sm:$0xff] }
  0x84   : > { %1192 = vperm.xlu2 %8778, %v997_v53   ;;  %v6423_v53 = vld [vmem:[%s11392_s18] sm:$0xff] }
  0x86   : > { %v9184_v63 = vpop.permute.xlu2 %1012 }
  0x8a   : > { %3229 = vperm.xlu0 %8776, %v3206_v27   ;;  %3234 = vperm.xlu1 %8777, %v3207_v41  }
  0x8e   : > { %6533 = vmatmul.msk.bf16.gmra.mxu0 %vm601_vm0, %v748_v51  ;;  %v9219_v9 = vpop.permute.xlu2 %1067 }
  0x92   : > { %3259 = vperm.xlu0 %8776, %v3212_v42   ;;  %v4832_v42 = vld [vmem:[%s11391_s17] sm:$0xff] }
  0x94   : > { %v1003_v55 = vpop.permute.xlu0 %1002  ;;  %v9143_v56 = vpop.permute.xlu1 %1022 }
  0x96   : > { %v9258_v21 = vpop.permute.xlu2 %1057 }
  0x9c   : > { %v9162_v59 = vpop.permute.xlu0 %1007  ;;  %v9168_v60 = vpop.permute.xlu1 %1027 }
  0x9e   : > { %6534 = vmatmul.msk.bf16.gmra.mxu0 %vm601_vm0, %v749_v57  ;;  %v9295_v35 = vpop.permute.xlu2 %1112  ;;  %v3204_v57 = vld [vmem:[%s11390_s16] sm:$0xff] }
  0x9f   : > { %3219 = vperm.xlu1 %8777, %v3204_v57   ;;  %v998_v57 = vld [vmem:[%s11389_s15 + $0x138] sm:$0xff] }
  0xa4   : > { %v9186_v0 = vpop.permute.xlu0 %1047  ;;  %v9197_v2 = vpop.permute.xlu1 %1052 }
  0xa6   : > { %v9331_v51 = vpop.permute.xlu2 %1102 }
  0xab   : > { %v855_v6 = vpop.f32.mrf.mxu0 }
  0xac   : > { %v856_v7 = vadd.f32 %v9191_v1, %v855_v6  ;;  %v9222_v10 = vpop.permute.xlu0 %1072  ;;  %v9232_v13 = vpop.permute.xlu1 %1077 }
  0xae   : > { %v1205_v8 = vmul.f32 %v1003_v55, %v856_v7  ;;  %6535 = vmatmul.msk.bf16.gmra.mxu0 %vm601_vm0, %v750_v3  ;;  %v9352_v3 = vpop.permute.xlu2 %1157  ;;  %v3210_v7 = vld [vmem:[%s11390_s16 + $0x30] sm:$0xff] }
  0xaf   : > { %3249 = vperm.xlu1 %8777, %v3210_v7  }
  0xb0   : > { %1246 = vst.msk [vmem:[#allocation2 + $0x13] sm:$0xff] %vm601_vm0, %v1205_v8  ;;  %v3213_v8 = vld [vmem:[%s11390_s16 + $0x48] sm:$0xff] }
  0xb3   : > { %v857_v14 = vpop.f32.mrf.mxu0 }
  0xb4   : > { %v9246_v17 = vpop.permute.xlu0 %1092  ;;  %v9262_v24 = vpop.permute.xlu1 %1097  ;;  %v858_v32 = vadd.f32 %v9191_v1, %v857_v14  ;;  %v753_v14 = vpack.c.bf16 %v724_v5, %v723_v4  ;;  %v999_v4 = vld [vmem:[%s11389_s15 + $0x140] sm:$0xf]  ;;  %v4834_v5 = vld [vmem:[%s11391_s17 + $0x10] sm:$0xff] }
  0xb6   : > { %v1206_v37 = vmul.f32 %v9162_v59, %v858_v32 }
  0xb7   : > { %3269 = vperm.xlu1 %8777, %v3214_v19   ;;  %v730_v19 = vld [vmem:[%s9020_s0 + $0xe8] sm:$0xff] }
  0xb8   : > { %1247 = vst.msk [vmem:[#allocation2 + $0x1b] sm:$0xff] %vm601_vm0, %v1206_v37 }
  0xbb   : > { %v860_v23 = vpop.f32.mrf.mxu0 }
  0xbc   : > { %v9270_v25 = vpop.permute.xlu0 %1117  ;;  %v861_v33 = vadd.f32 %v9191_v1, %v860_v23  ;;  %v9298_v36 = vpop.permute.xlu1 %1122 }
  0xbd   : > { %v9382_v23 = vpop.permute.xlu2 %1147 }
  0xbe   : > { %6536 = vmatmul.msk.bf16.gmra.mxu0 %vm601_vm0, %v751_v22  ;;  %v1207_v39 = vmul.f32 %v9184_v63, %v861_v33  ;;  %v3209_v22 = vld [vmem:[%s11390_s16 + $0x28] sm:$0xff] }
  0xbf   : > { %v1354_v31 = vld [vmem:[#allocation2 + $0x14] ss:$2 sm:$0xff]  ;;  %v1334_v32 = vld [vmem:[#allocation2 + $0x13] ss:$2 sm:$0xff]  ;;  %4839 = vperm.xlu1 %8777, %v4832_v42  }
  0xc0   : > { %1248 = vst.msk [vmem:[#allocation2 + $0x23] sm:$0xff] %vm601_vm0, %v1207_v39  ;;  %v732_v42 = vld [vmem:[%s9020_s0 + $0xf8] sm:$0xff] }
  0xc3   : > { %v862_v34 = vpop.f32.mrf.mxu0 }
  0xc4   : > { %v9313_v43 = vpop.permute.xlu0 %1137  ;;  %v9338_v54 = vpop.permute.xlu1 %1142  ;;  %v863_v63 = vadd.f32 %v9191_v1, %v862_v34 }
  0xc7   : > { %v1480_v33 = vld [vmem:[#allocation2 + $0x15] ss:$2 sm:$0xff]  ;;  %6427 = vperm.xlu1 %8777, %v6423_v53  }
  0xcb   : > { %v865_v49 = vpop.f32.mrf.mxu0 }
  0xcc   : > { %v866_v50 = vadd.f32 %v9191_v1, %v865_v49  ;;  %v9341_v55 = vpop.permute.xlu0 %1162  ;;  %v9366_v12 = vpop.permute.xlu1 %1167 }
  0xce   : > { %v1209_v52 = vmul.f32 %v9143_v56, %v866_v50  ;;  %6537 = vmatmul.msk.bf16.gmra.mxu0 %vm601_vm0, %v752_v48  ;;  %v3205_v56 = vld [vmem:[%s11390_s16 + $0x8] sm:$0xff]  ;;  %v1043_v48 = vpop.permute.xlu2 %1042 }
  0xcf   : > { %3224 = vperm.xlu0 %8776, %v3205_v56   ;;  %1202 = vperm.xlu1 %8777, %v999_v4  }
  0xd0   : > { %1250 = vst.msk [vmem:[#allocation2 + $0x33] sm:$0xff] %vm601_vm0, %v1209_v52  ;;  %v3215_v52 = vld [vmem:[%s11390_s16 + $0x58] sm:$0xff] }
  0xd3   : > { %v867_v59 = vpop.f32.mrf.mxu0 }
  0xd4   : > { %v868_v61 = vadd.f32 %v9191_v1, %v867_v59  ;;  %v1018_v6 = vpop.permute.xlu0 %1017  ;;  %v1038_v26 = vpop.permute.xlu1 %1037 }
  0xd5   : > { %v1208_v11 = vmul.f32 %v1018_v6, %v863_v63  ;;  %v728_v63 = vld [vmem:[%s9020_s0 + $0xd8] sm:$0xff]  ;;  %v4836_v6 = vld [vmem:[%s11391_s17 + $0x20] sm:$0xf] }
  0xd6   : > { %v1210_v62 = vmul.f32 %v9168_v60, %v868_v61  ;;  %v3211_v60 = vld [vmem:[%s11390_s16 + $0x38] sm:$0xff] }
  0xd7   : > { %3254 = vperm.xlu2 %8778, %v3211_v60   ;;  %1249 = vst.msk [vmem:[#allocation2 + $0x2b] sm:$0xff] %vm601_vm0, %v1208_v11  ;;  %3264 = vperm.xlu0 %8776, %v3213_v8   ;;  %v6424_v11 = vld [vmem:[%s11392_s18 + $0x8] sm:$0xff] }
  0xd8   : > { %1251 = vst.msk [vmem:[#allocation2 + $0x3b] sm:$0xff] %vm601_vm0, %v1210_v62  ;;  %v727_v62 = vld [vmem:[%s9020_s0 + $0xd0] sm:$0xff] }
  0xdb   : > { %v870_v15 = vpop.f32.mrf.mxu0 }
  0xdc   : > { %v871_v16 = vadd.f32 %v9191_v1, %v870_v15  ;;  %v1063_v28 = vpop.permute.xlu0 %1062 }
  0xde   : > { %v1211_v18 = vmul.f32 %v9155_v58, %v871_v16  ;;  %6538 = vmatmul.msk.bf16.gmra.mxu0 %vm601_vm0, %v753_v14 }
  0xdf   : > { %3244 = vperm.xlu2 %8778, %v3209_v22   ;;  %4844 = vperm.xlu0 %8776, %v4833_v20  }
  0xe0   : > { %1252 = vst.msk [vmem:[#allocation2 + $0x43] sm:$0xff] %vm601_vm0, %v1211_v18  ;;  %v729_v18 = vld [vmem:[%s9020_s0 + $0xe0] sm:$0xff] }
  0xe3   : > { %v872_v58 = vpop.f32.mrf.mxu0 }
  0xe4   : > { %v873_v27 = vadd.f32 %v9191_v1, %v872_v58 }
  0xe6   : > { %v1212_v30 = vmul.f32 %v1038_v26, %v873_v27  ;;  %v756_v26 = vpack.c.bf16 %v730_v19, %v729_v18 }
  0xe7   : > { %v9387_v34 = vld [vmem:[#allocation2 + $0x38] ss:$2 sm:$0xff]  ;;  %v9389_v37 = vld [vmem:[#allocation2 + $0x37] ss:$2 sm:$0xff]  ;;  %3239 = vperm.xlu2 %8778, %v3208_v44   ;;  %4854 = vperm.xlu0 %8776, %v4835_v45  }
  0xe8   : > { %v9391_v38 = vld [vmem:[#allocation2 + $0x39] ss:$2 sm:$0xff]  ;;  %1253 = vst.msk [vmem:[#allocation2 + $0x4b] sm:$0xff] %vm601_vm0, %v1212_v30  ;;  %v1369_v39 = vpack.c.bf16 %v9387_v34, %v1354_v31  ;;  %v1349_v40 = vpack.c.bf16 %v9389_v37, %v1334_v32 }
  0xe9   : > { %v1495_v41 = vpack.c.bf16 %v9391_v38, %v1480_v33 }
  0xea   : > { %6588 = vmatmul.msk.bf16.vlgmr.msra.gmra.mxu1 %vm601_vm0, %v1369_v39  ;;  %6600 = vmatmul.msk.bf16.vlgmr.msra.gmra.mxu2 %vm601_vm0, %v1349_v40 }
  0xeb   : > { %6612 = vmatmul.msk.bf16.vlgmr.msra.gmra.mxu3 %vm601_vm0, %v1495_v41  ;;  %v875_v47 = vpop.f32.mrf.mxu0  ;;  %v731_v41 = vld [vmem:[%s9020_s0 + $0xf0] sm:$0xff] }
  0xec   : > { %v876_v49 = vadd.f32 %v9191_v1, %v875_v47  ;;  %v757_v44 = vpack.c.bf16 %v732_v42, %v731_v41 }
  0xee   : > { %v1213_v50 = vmul.f32 %v1043_v48, %v876_v49  ;;  %6539 = vmatmul.msk.bf16.gmra.mxu0 %vm601_vm0, %v754_v46 }
  0xef   : > { %3274 = vperm.xlu2 %8778, %v3215_v52   ;;  %1197 = vperm.xlu0 %8776, %v998_v57   ;;  %v734_v52 = vld [vmem:[%s9020_s0 + $0x108] sm:$0xff] }
  0xf0   : > { %1254 = vst.msk [vmem:[#allocation2 + $0x53] sm:$0xff] %vm601_vm0, %v1213_v50 }
  0xf3   : > { %v877_v56 = vpop.f32.mrf.mxu0 }
  0xf4   : > { %v878_v59 = vadd.f32 %v9191_v1, %v877_v56  ;;  %v1083_v56 = vpop.permute.xlu1 %1082 }
  0xf6   : > { %v1214_v61 = vmul.f32 %v9186_v0, %v878_v59  ;;  %v755_v0 = vpack.c.bf16 %v728_v63, %v727_v62 }
  0xf7   : > { %4849 = vperm.xlu2 %8778, %v4834_v5   ;;  %4859 = vperm.xlu0 %8776, %v4836_v6  }
  0xf8   : > { %1255 = vst.msk [vmem:[#allocation2 + $0x5b] sm:$0xff] %vm601_vm0, %v1214_v61 }
  0xfb   : > { %v880_v7 = vpop.f32.mrf.mxu0 }
  0xfc   : > { %v881_v8 = vadd.f32 %v9191_v1, %v880_v7  ;;  %v1088_v7 = vpop.permute.xlu2 %1087 }
  0xfe   : > { %v1215_v60 = vmul.f32 %v9197_v2, %v881_v8  ;;  %6540 = vmatmul.msk.bf16.gmra.mxu0 %vm601_vm0, %v755_v0  ;;  %v3216_v2 = vld [vmem:[%s11390_s16 + $0x60] sm:$0xf] }
  0xff   : > { %6432 = vperm.xlu2 %8778, %v6424_v11   ;;  %v736_v11 = vld [vmem:[%s9020_s0 + $0x118] sm:$0xff] }
 0x100   : > { %1256 = vst.msk [vmem:[#allocation2 + $0x63] sm:$0xff] %vm601_vm0, %v1215_v60  ;;  %v735_v60 = vld [vmem:[%s9020_s0 + $0x110] sm:$0xff] }
 0x103   : > { %v882_v14 = vpop.f32.mrf.mxu0 }
 0x104   : > { %v883_v15 = vadd.f32 %v9191_v1, %v882_v14  ;;  %v759_v14 = vpack.c.bf16 %v736_v11, %v735_v60 }
 0x106   : > { %v1216_v16 = vmul.f32 %v9258_v21, %v883_v15 }
 0x107   : > { %v9446_v20 = vld [vmem:[#allocation2 + $0x5c] ss:$2 sm:$0xff]  ;;  %v9448_v22 = vld [vmem:[#allocation2 + $0x5b] ss:$2 sm:$0xff]  ;;  %3279 = vperm.xlu2 %8778, %v3216_v2  }
 0x108   : > { %1257 = vst.msk [vmem:[#allocation2 + $0x6b] sm:$0xff] %vm601_vm0, %v1216_v16  ;;  %v1872_v58 = vpack.c.bf16 %v9446_v20, %v9387_v34  ;;  %v1805_v21 = vpack.c.bf16 %v9448_v22, %v9389_v37  ;;  %v8449_v37 = vld [vmem:[%s11425_s5 + $0x18] sm:$0xff] }
 0x10b   : > { %v885_v27 = vpop.f32.mrf.mxu0 }
 0x10c   : > { %v886_v29 = vadd.f32 %v9191_v1, %v885_v27  ;;  %v737_v27 = vld [vmem:[%s9020_s0 + $0x120] sm:$0xff] }
 0x10e   : > { %v1217_v30 = vmul.f32 %v1063_v28, %v886_v29  ;;  %6541 = vmatmul.msk.bf16.gmra.mxu0 %vm601_vm0, %v756_v26  ;;  %v738_v28 = vld [vmem:[%s9020_s0 + $0x128] sm:$0xff] }
 0x10f   : > { %v9460_v31 = vld [vmem:[#allocation2 + $0x5d] ss:$2 sm:$0xff]  ;;  %v760_v29 = vpack.c.bf16 %v738_v28, %v737_v27 }
 0x110   : > { %1258 = vst.msk [vmem:[#allocation2 + $0x73] sm:$0xff] %vm601_vm0, %v1217_v30  ;;  %v1939_v32 = vpack.c.bf16 %v9460_v31, %v9391_v38  ;;  %v8439_v28 = vld [vmem:[%s11423_s29 + $0x58] sm:$0xff] }
 0x111   : > { %1772 = vmatpush.bf16.msrb.mxu3 %v8439_v28 }
 0x113   : > { %v887_v33 = vpop.f32.mrf.mxu0 }
 0x114   : > { %v888_v39 = vadd.f32 %v9191_v1, %v887_v33 }
 0x116   : > { %v1218_v40 = vmul.f32 %v9219_v9, %v888_v39  ;;  %v733_v9 = vld [vmem:[%s9020_s0 + $0x100] sm:$0xff] }
 0x117   : > { %v758_v53 = vpack.c.bf16 %v734_v52, %v733_v9 }
 0x118   : > { %1259 = vst.msk [vmem:[#allocation2 + $0x7b] sm:$0xff] %vm601_vm0, %v1218_v40 }
 0x11b   : > { %v890_v45 = vpop.f32.mrf.mxu0 }
 0x11c   : > { %v891_v46 = vadd.f32 %v9191_v1, %v890_v45  ;;  %v1108_v45 = vpop.permute.xlu0 %1107 }
 0x11e   : > { %v1219_v47 = vmul.f32 %v9222_v10, %v891_v46  ;;  %6542 = vmatmul.msk.bf16.gmra.mxu0 %vm601_vm0, %v757_v44  ;;  %v739_v46 = vld [vmem:[%s9020_s0 + $0x130] sm:$0xff] }
 0x120   : > { %1260 = vst.msk [vmem:[#allocation2 + $0x83] sm:$0xff] %vm601_vm0, %v1219_v47  ;;  %v740_v47 = vld [vmem:[%s9020_s0 + $0x138] sm:$0xff] }
 0x123   : > { %v892_v48 = vpop.f32.mrf.mxu0 }
 0x124   : > { %v893_v49 = vadd.f32 %v9191_v1, %v892_v48 }
 0x126   : > { %v1220_v50 = vmul.f32 %v9232_v13, %v893_v49 }
 0x128   : > { %1261 = vst.msk [vmem:[#allocation2 + $0x8b] sm:$0xff] %vm601_vm0, %v1220_v50  ;;  %v761_v50 = vpack.c.bf16 %v740_v47, %v739_v46 }
 0x12b   : > { %v895_v57 = vpop.f32.mrf.mxu0 }
 0x12c   : > { %v896_v59 = vadd.f32 %v9191_v1, %v895_v57 }
 0x12e   : > { %v1221_v61 = vmul.f32 %v1083_v56, %v896_v59  ;;  %6543 = vmatmul.msk.bf16.gmra.mxu0 %vm601_vm0, %v758_v53 }
 0x12f   : > { %v9481_v10 = vld [vmem:[#allocation2 + $0x80] ss:$2 sm:$0xff]  ;;  %v9483_v62 = vld [vmem:[#allocation2 + $0x7f] ss:$2 sm:$0xff] }
 0x130   : > { %v9485_v63 = vld [vmem:[#allocation2 + $0x81] ss:$2 sm:$0xff]  ;;  %1262 = vst.msk [vmem:[#allocation2 + $0x93] sm:$0xff] %vm601_vm0, %v1221_v61  ;;  %v1370_v13 = vpack.c.bf16 %v9481_v10, %v9446_v20  ;;  %v1350_v4 = vpack.c.bf16 %v9483_v62, %v9448_v22 }
 0x131   : > { %v1496_v5 = vpack.c.bf16 %v9485_v63, %v9460_v31  ;;  %v741_v61 = vld [vmem:[%s9020_s0 + $0x140] sm:$0xf]  ;;  %s594_s0 = scalar_lea.vmem [#allocation8], %s593_s2 }
 0x132   : > { %6589 = vmatmul.msk.bf16.gmra.mxu1 %vm601_vm0, %v1370_v13  ;;  %6601 = vmatmul.msk.bf16.gmra.mxu2 %vm601_vm0, %v1350_v4  ;;  %v762_v13 = vpack.c.bf16 %v741_v61, %v741_v61  ;;  %v8434_v61 = vld [vmem:[%s11423_s29 + $0x30] sm:$0xff]  ;;  %s6457_s24 = sshll.u32 %s594_s0, 4  ;;  %s6458_s24 = int_to_ptr.vmem [resolvable:$true] %s6457_s24 }
 0x133   : > { %6613 = vmatmul.msk.bf16.gmra.mxu3 %vm601_vm0, %v1496_v5  ;;  %v897_v6 = vpop.f32.mrf.mxu0 }
 0x134   : > { %v898_v0 = vadd.f32 %v9191_v1, %v897_v6 }
 0x136   : > { %v1222_v8 = vmul.f32 %v1088_v7, %v898_v0 }
 0x138   : > { %1263 = vst.msk [vmem:[#allocation2 + $0x9b] sm:$0xff] %vm601_vm0, %v1222_v8 }
 0x13b   : > { %v900_v15 = vpop.f32.mrf.mxu0 }
 0x13c   : > { %v901_v16 = vadd.f32 %v9191_v1, %v900_v15  ;;  %v1128_v15 = vpop.permute.xlu1 %1127 }
 0x13e   : > { %v1223_v18 = vmul.f32 %v9246_v17, %v901_v16  ;;  %6544 = vmatmul.msk.bf16.gmra.mxu0 %vm601_vm0, %v759_v14 }
 0x140   : > { %1264 = vst.msk [vmem:[#allocation2 + $0xa3] sm:$0xff] %vm601_vm0, %v1223_v18 }
 0x143   : > { %v902_v19 = vpop.f32.mrf.mxu0 }
 0x144   : > { %v903_v2 = vadd.f32 %v9191_v1, %v902_v19 }
 0x146   : > { %v1224_v26 = vmul.f32 %v9262_v24, %v903_v2 }
 0x148   : > { %1265 = vst.msk [vmem:[#allocation2 + $0xab] sm:$0xff] %vm601_vm0, %v1224_v26 }
 0x14b   : > { %v905_v30 = vpop.f32.mrf.mxu0 }
 0x14c   : > { %v906_v33 = vadd.f32 %v9191_v1, %v905_v30 }
 0x14e   : > { %v1225_v17 = vmul.f32 %v9331_v51, %v906_v33  ;;  %6545 = vmatmul.msk.bf16.gmra.mxu0 %vm601_vm0, %v760_v29  ;;  %v8435_v29 = vld [vmem:[%s11423_s29 + $0x38] sm:$0xff] }
 0x14f   : > { %v9513_v39 = vld [vmem:[#allocation2 + $0xa4] ss:$2 sm:$0xff]  ;;  %v9515_v40 = vld [vmem:[#allocation2 + $0xa3] ss:$2 sm:$0xff]  ;;  %1610 = vmatpush.bf16.msrb.mxu1 %v8435_v29 }
 0x150   : > { %1266 = vst.msk [vmem:[#allocation2 + $0xb3] sm:$0xff] %vm601_vm0, %v1225_v17  ;;  %v1806_v24 = vpack.c.bf16 %v9515_v40, %v9483_v62  ;;  %v1873_v41 = vpack.c.bf16 %v9513_v39, %v9481_v10  ;;  %v1133_v17 = vpop.permute.xlu2 %1132  ;;  %v8453_v62 = vld [vmem:[%s11425_s5 + $0x38] sm:$0xff] }
 0x153   : > { %v907_v42 = vpop.f32.mrf.mxu0  ;;  %1611 = vmatpush.bf16.msrb.mxu1 %v8434_v61 }
 0x154   : > { %v908_v44 = vadd.f32 %v9191_v1, %v907_v42 }
 0x156   : > { %v1226_v51 = vmul.f32 %v1108_v45, %v908_v44 }
 0x157   : > { %v9525_v48 = vld [vmem:[#allocation2 + $0xa5] ss:$2 sm:$0xff] }
 0x158   : > { %1267 = vst.msk [vmem:[#allocation2 + $0xbb] sm:$0xff] %vm601_vm0, %v1226_v51  ;;  %v1940_v49 = vpack.c.bf16 %v9525_v48, %v9485_v63 }
 0x15b   : > { %v910_v9 = vpop.f32.mrf.mxu0 }
 0x15c   : > { %v911_v52 = vadd.f32 %v9191_v1, %v910_v9  ;;  %v8436_v9 = vld [vmem:[%s11423_s29 + $0x40] sm:$0xff] }
 0x15e   : > { %v1227_v53 = vmul.f32 %v9295_v35, %v911_v52  ;;  %6546 = vmatmul.msk.bf16.gmra.mxu0 %vm601_vm0, %v761_v50 }
 0x160   : > { %1268 = vst.msk [vmem:[#allocation2 + $0xc3] sm:$0xff] %vm601_vm0, %v1227_v53 }
 0x163   : > { %v912_v57 = vpop.f32.mrf.mxu0 }
 0x164   : > { %v913_v56 = vadd.f32 %v9191_v1, %v912_v57  ;;  %v1153_v57 = vpop.permute.xlu0 %1152 }
 0x166   : > { %v1228_v59 = vmul.f32 %v9270_v25, %v913_v56  ;;  %v8437_v25 = vld [vmem:[%s11423_s29 + $0x48] sm:$0xff] }
 0x167   : > { %v1406_v6 = vpop.f32.mrf.mxu1  ;;  %1691 = vmatpush.bf16.msrb.mxu2 %v8437_v25 }
 0x168   : > { %1269 = vst.msk [vmem:[#allocation2 + $0xcb] sm:$0xff] %vm601_vm0, %v1228_v59 }
 0x16b   : > { %v915_v4 = vpop.f32.mrf.mxu0  ;;  %1692 = vmatpush.bf16.msrb.mxu2 %v8436_v9  ;;  %v8445_v9 = vld [vmem:[%s11423_s29 + $0x88] sm:$0xff] }
 0x16c   : > { %v916_v5 = vadd.f32 %v9191_v1, %v915_v4 }
 0x16d   : > { %v1459_v0 = vpop.f32.mrf.mxu2 }
 0x16e   : > { %v1229_v35 = vmul.f32 %v9298_v36, %v916_v5  ;;  %v1460_v7 = vadd.f32 %v1459_v0, %v1406_v6  ;;  %6547 = vmatmul.msk.bf16.gmra.mxu0 %vm601_vm0, %v762_v13  ;;  %v1532_v8 = vpop.f32.mrf.mxu3  ;;  %v1173_v6 = vpop.permute.xlu1 %1172 }
 0x170   : > { %1270 = vst.msk [vmem:[#allocation2 + $0xd3] sm:$0xff] %vm601_vm0, %v1229_v35  ;;  %v9542_v60 = vadd.f32 %v1532_v8, %v1460_v7  ;;  %v1183_v35 = vpop.permute.xlu0 %1182 }
 0x173   : > { %v917_v11 = vpop.f32.mrf.mxu0 }
 0x174   : > { %v918_v14 = vadd.f32 %v9191_v1, %v917_v11 }
 0x175   : > { %v9614_v28 = vpop.f32.mrf.mxu2 }
 0x176   : > { %v1230_v16 = vmul.f32 %v1128_v15, %v918_v14  ;;  %v9606_v15 = vpop.permute.xlu1 %1187 }
 0x177   : > { %v9548_v18 = vld [vmem:[#allocation2 + $0xc8] ss:$2 sm:$0xff]  ;;  %v9550_v36 = vld [vmem:[#allocation2 + $0xc7] ss:$2 sm:$0xff] }
 0x178   : > { %v9552_v19 = vld [vmem:[#allocation2 + $0xc9] ss:$2 sm:$0xff]  ;;  %1271 = vst.msk [vmem:[#allocation2 + $0xdb] sm:$0xff] %vm601_vm0, %v1230_v16  ;;  %v1371_v2 = vpack.c.bf16 %v9548_v18, %v9513_v39  ;;  %v1351_v26 = vpack.c.bf16 %v9550_v36, %v9515_v40  ;;  %v9609_v16 = vpop.permute.xlu0 %3229 }
 0x179   : > { %v1497_v27 = vpack.c.bf16 %v9552_v19, %v9525_v48 }
 0x17a   : > { %6590 = vmatmul.msk.bf16.gmra.mxu1 %vm601_vm0, %v1371_v2  ;;  %6602 = vmatmul.msk.bf16.gmra.mxu2 %vm601_vm0, %v1351_v26 }
 0x17b   : > { %6614 = vmatmul.msk.bf16.gmra.mxu3 %vm601_vm0, %v1497_v27  ;;  %v920_v30 = vpop.f32.mrf.mxu0  ;;  %v9612_v27 = vpop.f32.mrf.mxu1 }
 0x17c   : > { %v921_v33 = vadd.f32 %v9191_v1, %v920_v30  ;;  %v9617_v30 = vpop.f32.mrf.mxu3 }
 0x17e   : > { %v1231_v42 = vmul.f32 %v1133_v17, %v921_v33 }
 0x180   : > { %1272 = vst.msk [vmem:[#allocation2 + $0xe3] sm:$0xff] %vm601_vm0, %v1231_v42  ;;  %v9622_v33 = vpop.permute.xlu0 %3259  ;;  %v8443_v42 = vld [vmem:[%s11423_s29 + $0x78] sm:$0xff] }
 0x181   : > { %1906 = vmatpush.bf16.msra.mxu2 %v8443_v42 }
 0x183   : > { %v922_v44 = vpop.f32.mrf.mxu0 }
 0x184   : > { %v923_v45 = vadd.f32 %v9191_v1, %v922_v44 }
 0x186   : > { %v1232_v51 = vmul.f32 %v9313_v43, %v923_v45 }
 0x188   : > { %1273 = vst.msk [vmem:[#allocation2 + $0xeb] sm:$0xff] %vm601_vm0, %v1232_v51 }
 0x18b   : > { %v925_v46 = vpop.f32.mrf.mxu0 }
 0x18c   : > { %v926_v47 = vadd.f32 %v9191_v1, %v925_v46 }
 0x18e   : > { %v1233_v50 = vmul.f32 %v9338_v54, %v926_v47  ;;  %v8438_v54 = vld [vmem:[%s11423_s29 + $0x50] sm:$0xff] }
 0x18f   : > { %1773 = vmatpush.bf16.msrb.mxu3 %v8438_v54 }
 0x190   : > { %1274 = vst.msk [vmem:[#allocation2 + $0xf3] sm:$0xff] %vm601_vm0, %v1233_v50 }
 0x193   : > { %v927_v52 = vpop.f32.mrf.mxu0  ;;  %1973 = vmatpush.bf16.msra.mxu3 %v8445_v9  ;;  %v1561_v9 = vld [vmem:[#allocation2 + $0x25] ss:$2 sm:$0xff] }
 0x194   : > { %v928_v53 = vadd.f32 %v9191_v1, %v927_v52  ;;  %v8441_v52 = vld [vmem:[%s11423_s29 + $0x68] sm:$0xff] }
 0x195   : > { %1839 = vmatpush.bf16.msra.mxu1 %v8441_v52  ;;  %v1642_v52 = vld [vmem:[#allocation2 + $0x26] ss:$2 sm:$0xff] }
 0x196   : > { %v1234_v43 = vmul.f32 %v9382_v23, %v928_v53 }
 0x197   : > { %v9583_v56 = vld [vmem:[#allocation2 + $0xec] ss:$2 sm:$0xff]  ;;  %v9585_v59 = vld [vmem:[#allocation2 + $0xeb] ss:$2 sm:$0xff] }
 0x198   : > { %1275 = vst.msk [vmem:[#allocation2 + $0xfb] sm:$0xff] %vm601_vm0, %v1234_v43  ;;  %v1807_v13 = vpack.c.bf16 %v9585_v59, %v9550_v36  ;;  %v1874_v23 = vpack.c.bf16 %v9583_v56, %v9548_v18  ;;  %v9641_v43 = vpop.permute.xlu0 %3224 }
 0x19b   : > { %v930_v4 = vpop.f32.mrf.mxu0 }
 0x19c   : > { %v931_v5 = vadd.f32 %v9191_v1, %v930_v4 }
 0x19e   : > { %v1235_v0 = vmul.f32 %v1153_v57, %v931_v5 }
 0x19f   : > { %v9599_v7 = vld [vmem:[#allocation2 + $0xed] ss:$2 sm:$0xff] }
 0x1a0   : > { %1276 = vst.msk [vmem:[#allocation2 + $0x103] sm:$0xff] %vm601_vm0, %v1235_v0  ;;  %v1941_v8 = vpack.c.bf16 %v9599_v7, %v9552_v19 }
 0x1a3   : > { %v932_v25 = vpop.f32.mrf.mxu0 }
 0x1a4   : > { %v933_v11 = vadd.f32 %v9191_v1, %v932_v25 }
 0x1a6   : > { %v1236_v14 = vmul.f32 %v9352_v3, %v933_v11  ;;  %v9620_v3 = vpop.permute.xlu1 %3234 }
 0x1a8   : > { %1277 = vst.msk [vmem:[#allocation2 + $0x10b] sm:$0xff] %vm601_vm0, %v1236_v14 }
 0x1ab   : > { %v935_v2 = vpop.f32.mrf.mxu0 }
 0x1ac   : > { %v936_v26 = vadd.f32 %v9191_v1, %v935_v2  ;;  %v1178_v2 = vpop.permute.xlu2 %1177 }
 0x1ae   : > { %v1237_v29 = vmul.f32 %v9341_v55, %v936_v26  ;;  %v9638_v53 = vpop.permute.xlu1 %3219 }
 0x1af   : > { %v1411_v45 = vpop.f32.mrf.mxu1 }
 0x1b0   : > { %1278 = vst.msk [vmem:[#allocation2 + $0x113] sm:$0xff] %vm601_vm0, %v1237_v29 }
 0x1b3   : > { %v937_v17 = vpop.f32.mrf.mxu0 }
 0x1b4   : > { %v938_v44 = vadd.f32 %v9191_v1, %v937_v17  ;;  %v9662_v17 = vpop.permute.xlu0 %3264 }
 0x1b5   : > { %v1464_v51 = vpop.f32.mrf.mxu2 }
 0x1b6   : > { %v1238_v55 = vmul.f32 %v9366_v12, %v938_v44  ;;  %v1465_v46 = vadd.f32 %v1464_v51, %v1411_v45  ;;  %v1537_v47 = vpop.f32.mrf.mxu3  ;;  %v9660_v26 = vpop.permute.xlu1 %3249  ;;  %v1563_v45 = vld [vmem:[#allocation2 + $0x49] ss:$2 sm:$0xff]  ;;  %v1644_v51 = vld [vmem:[#allocation2 + $0x4a] ss:$2 sm:$0xff] }
 0x1b8   : > { %1279 = vst.msk [vmem:[#allocation2 + $0x11b] sm:$0xff] %vm601_vm0, %v1238_v55  ;;  %v9630_v50 = vadd.f32 %v1537_v47, %v1465_v46  ;;  %v1725_v46 = vld [vmem:[#allocation2 + $0x4b] ss:$2 sm:$0xff] }
 0x1bb   : > { %v940_v57 = vpop.f32.mrf.mxu0 }
 0x1bc   : > { %v941_v12 = vadd.f32 %v9191_v1, %v940_v57  ;;  %v1576_v57 = vpack.c.bf16 %v1563_v45, %v1561_v9  ;;  %v1648_v9 = vld [vmem:[#allocation2 + $0x92] ss:$2 sm:$0xff] }
 0x1be   : > { %v1239_v54 = vmul.f32 %v1173_v6, %v941_v12  ;;  %v9666_v47 = vpop.permute.xlu1 %3269  ;;  %v1657_v12 = vpack.c.bf16 %v1644_v51, %v1642_v52 }
 0x1bf   : > { %v9643_v61 = vld [vmem:[#allocation2 + $0x110] ss:$2 sm:$0xff]  ;;  %v9645_v4 = vld [vmem:[#allocation2 + $0x10f] ss:$2 sm:$0xff] }
 0x1c0   : > { %v9647_v5 = vld [vmem:[#allocation2 + $0x111] ss:$2 sm:$0xff]  ;;  %1280 = vst.msk [vmem:[#allocation2 + $0x123] sm:$0xff] %vm601_vm0, %v1239_v54  ;;  %v1372_v0 = vpack.c.bf16 %v9643_v61, %v9583_v56  ;;  %v1352_v25 = vpack.c.bf16 %v9645_v4, %v9585_v59 }
 0x1c1   : > { %v1498_v11 = vpack.c.bf16 %v9647_v5, %v9599_v7  ;;  %v1723_v54 = vld [vmem:[#allocation2 + $0x27] ss:$2 sm:$0xff] }
 0x1c2   : > { %6591 = vmatmul.msk.bf16.gmra.mxu1 %vm601_vm0, %v1372_v0  ;;  %6603 = vmatmul.msk.bf16.gmra.mxu2 %vm601_vm0, %v1352_v25  ;;  %v9669_v0 = vpop.permute.xlu0 %4844  ;;  %v1738_v25 = vpack.c.bf16 %v1725_v46, %v1723_v54  ;;  %v1567_v46 = vld [vmem:[#allocation2 + $0x91] ss:$2 sm:$0xff]  ;;  %v1646_v54 = vld [vmem:[#allocation2 + $0x6e] ss:$2 sm:$0xff] }
 0x1c3   : > { %6615 = vmatmul.msk.bf16.gmra.mxu3 %vm601_vm0, %v1498_v11  ;;  %v942_v6 = vpop.f32.mrf.mxu0  ;;  %v8442_v11 = vld [vmem:[%s11423_s29 + $0x70] sm:$0xff]  ;;  %v8447_v7 = vld [vmem:[%s11425_s5 + $0x8] sm:$0xff] }
 0x1c4   : > { %v943_v14 = vadd.f32 %v9191_v1, %v942_v6  ;;  %v8444_v6 = vld [vmem:[%s11423_s29 + $0x80] sm:$0xff]  ;;  %1907 = vmatpush.bf16.msra.mxu2 %v8442_v11  ;;  %v8452_v56 = vld [vmem:[%s11425_s5 + $0x30] sm:$0xff] }
 0x1c5   : > { %1974 = vmatpush.bf16.msra.mxu3 %v8444_v6 }
 0x1c6   : > { %v1240_v29 = vmul.f32 %v1178_v2, %v943_v14  ;;  %v8440_v14 = vld [vmem:[%s11423_s29 + $0x60] sm:$0xff] }
 0x1c7   : > { %1840 = vmatpush.bf16.msra.mxu1 %v8440_v14 }
 0x1c8   : > { %1281 = vst.msk [vmem:[#allocation2 + $0x12b] sm:$0xff] %vm601_vm0, %v1240_v29 }
 0x1cb   : > { %v945_v42 = vpop.f32.mrf.mxu0 }
 0x1cc   : > { %v946_v44 = vadd.f32 %v9191_v1, %v945_v42  ;;  %v9686_v42 = vpop.permute.xlu1 %4839 }
 0x1ce   : > { %v1241_v55 = vmul.f32 %v1183_v35, %v946_v44  ;;  %v9688_v44 = vpop.permute.xlu0 %4854 }
 0x1d0   : > { %1282 = vst.msk [vmem:[#allocation2 + $0x133] sm:$0xff] %vm601_vm0, %v1241_v55  ;;  %v1193_v55 = vpop.permute.xlu2 %1192 }
 0x1d2   : > { %6624 = vmatmul.msk.bf16.vlgmr.msrb.gmra.mxu1 %vm601_vm0, %v1576_v57  ;;  %6636 = vmatmul.msk.bf16.vlgmr.msrb.gmra.mxu2 %vm601_vm0, %v1657_v12  ;;  %v1729_v57 = vld [vmem:[#allocation2 + $0x93] ss:$2 sm:$0xff] }
 0x1d3   : > { %6648 = vmatmul.msk.bf16.vlgmr.msrb.gmra.mxu3 %vm601_vm0, %v1738_v25  ;;  %v947_v35 = vpop.f32.mrf.mxu0  ;;  %v1565_v12 = vld [vmem:[#allocation2 + $0x6d] ss:$2 sm:$0xff]  ;;  %v1658_v25 = vpack.c.bf16 %v1648_v9, %v1646_v54  ;;  %2289 = vmatpush.bf16.msrb.mxu2 %v8449_v37  ;;  %v8454_v37 = vld [vmem:[%s11425_s5 + $0x40] sm:$0xff] }
 0x1d4   : > { %v948_v2 = vadd.f32 %v9191_v1, %v947_v35  ;;  %v1727_v35 = vld [vmem:[#allocation2 + $0x6f] ss:$2 sm:$0xff]  ;;  %v9694_v6 = vpop.permute.xlu1 %6427  ;;  %2201 = vmatpush.bf16.msrb.mxu1 %v8453_v62 }
 0x1d5   : > { %v1739_v11 = vpack.c.bf16 %v1729_v57, %v1727_v35  ;;  %11424 = vst [vmem:[#allocation18_spill] sm:$0xff] %v9694_v6  ;;  %v1731_v57 = vld [vmem:[#allocation2 + $0xb7] ss:$2 sm:$0xff]  ;;  %v9702_v35 = vpop.f32.mrf.mxu2 }
 0x1d6   : > { %v1242_v29 = vmul.f32 %v9606_v15, %v948_v2  ;;  %v1577_v15 = vpack.c.bf16 %v1567_v46, %v1565_v12  ;;  %v1198_v14 = vpop.permute.xlu0 %1197  ;;  %v1650_v46 = vld [vmem:[#allocation2 + $0xb6] ss:$2 sm:$0xff] }
 0x1d8   : > { %1283 = vst.msk [vmem:[#allocation2 + $0x13b] sm:$0xff] %vm601_vm0, %v1242_v29  ;;  %2202 = vmatpush.bf16.msrb.mxu1 %v8452_v56 }
 0x1db   : > { %v950_v45 = vpop.f32.mrf.mxu0 }
 0x1dc   : > { %v951_v51 = vadd.f32 %v9191_v1, %v950_v45  ;;  %v1203_v29 = vpop.permute.xlu1 %1202  ;;  %v1571_v45 = vld [vmem:[#allocation2 + $0xd9] ss:$2 sm:$0xff] }
 0x1dd   : > { %v1656_v29 = vld [vmem:[#allocation2 + $0x122] ss:$2 sm:$0xff] }
 0x1de   : > { %v1243_v52 = vmul.f32 %v1193_v55, %v951_v51  ;;  %v1652_v51 = vld [vmem:[#allocation2 + $0xda] ss:$2 sm:$0xff]  ;;  %v1733_v55 = vld [vmem:[#allocation2 + $0xdb] ss:$2 sm:$0xff] }
 0x1df   : > { %v1659_v12 = vpack.c.bf16 %v1652_v51, %v1650_v46  ;;  %v1740_v54 = vpack.c.bf16 %v1733_v55, %v1731_v57  ;;  %v1737_v51 = vld [vmem:[#allocation2 + $0x123] ss:$2 sm:$0xff]  ;;  %v1654_v46 = vld [vmem:[#allocation2 + $0xfe] ss:$2 sm:$0xff]  ;;  %v1804_v20 = vld [vmem:[#allocation2 + $0x133] ss:$2 sm:$0xff] }
 0x1e0   : > { %1284 = vst.msk [vmem:[#allocation2 + $0x143] sm:$0xff] %vm601_vm0, %v1243_v52  ;;  %v1569_v52 = vld [vmem:[#allocation2 + $0xb5] ss:$2 sm:$0xff]  ;;  %v1660_v57 = vpack.c.bf16 %v1656_v29, %v1654_v46  ;;  %v1871_v22 = vld [vmem:[#allocation2 + $0x134] ss:$2 sm:$0xff] }
 0x1e1   : > { %v1578_v9 = vpack.c.bf16 %v1571_v45, %v1569_v52  ;;  %v1573_v52 = vld [vmem:[#allocation2 + $0xfd] ss:$2 sm:$0xff]  ;;  %v1875_v10 = vpack.c.bf16 %v1871_v22, %v9643_v61 }
 0x1e2   : > { %6625 = vmatmul.msk.bf16.gmra.mxu1 %vm601_vm0, %v1577_v15  ;;  %6637 = vmatmul.msk.bf16.gmra.mxu2 %vm601_vm0, %v1658_v25  ;;  %v9700_v25 = vpop.f32.mrf.mxu1 }
 0x1e3   : > { %6649 = vmatmul.msk.bf16.gmra.mxu3 %vm601_vm0, %v1739_v11  ;;  %v952_v1 = vpop.f32.mrf.mxu0  ;;  %v9704_v11 = vpop.f32.mrf.mxu3 }
 0x1eb   : > { %v955_v2 = vpop.f32.mrf.mxu0 }
 0x1ec   : > { %v1575_v2 = vld [vmem:[#allocation2 + $0x121] ss:$2 sm:$0xff] }
 0x1f2   : > { %6626 = vmatmul.msk.bf16.gmra.mxu1 %vm601_vm0, %v1578_v9  ;;  %6638 = vmatmul.msk.bf16.gmra.mxu2 %vm601_vm0, %v1659_v12  ;;  %v1579_v12 = vpack.c.bf16 %v1575_v2, %v1573_v52  ;;  %v8456_v52 = vld [vmem:[%s11425_s5 + $0x50] sm:$0xff] }
 0x1f3   : > { %6650 = vmatmul.msk.bf16.gmra.mxu3 %vm601_vm0, %v1740_v54  ;;  %v957_v15 = vpop.f32.mrf.mxu0  ;;  %v1735_v54 = vld [vmem:[#allocation2 + $0xff] ss:$2 sm:$0xff] }
 0x1f4   : > { %v1741_v15 = vpack.c.bf16 %v1737_v51, %v1735_v54  ;;  %v8457_v51 = vld [vmem:[%s11425_s5 + $0x58] sm:$0xff]  ;;  %v8455_v54 = vld [vmem:[%s11425_s5 + $0x48] sm:$0xff] }
 0x1f5   : > { %2397 = vmatpush.bf16.msrb.mxu3 %v8457_v51 }
 0x1f7   : > { %v1416_v1 = vpop.f32.mrf.mxu1 }
 0x1f9   : > { %2398 = vmatpush.bf16.msrb.mxu3 %v8456_v52  ;;  %v8461_v52 = vld [vmem:[%s11425_s5 + $0x78] sm:$0xff] }
 0x1fd   : > { %v1469_v14 = vpop.f32.mrf.mxu2  ;;  %2399 = vmatpush.bf16.msrb.mxu3 %v8455_v54 }
 0x1fe   : > { %v1470_v45 = vadd.f32 %v1469_v14, %v1416_v1  ;;  %v1542_v55 = vpop.f32.mrf.mxu3  ;;  %v8473_v1 = vld [vmem:[%s11425_s5 + $0xd8] sm:$0xff]  ;;  %v8472_v14 = vld [vmem:[%s11425_s5 + $0xd0] sm:$0xff] }
 0x1ff   : > { %2881 = vmatpush.bf16.msrb.mxu0 %v8473_v1  ;;  %v9750_v34 = vpop.f32.mrf.mxu1  ;;  %v9832_v1 = vld [vmem:[#allocation5] sm:$0xff] }
 0x200   : > { %v9706_v9 = vadd.f32 %v1542_v55, %v1470_v45  ;;  %v8446_v55 = vld [vmem:[%s11425_s5] sm:$0xff]  ;;  %650 = vst.msk [vmem:[#allocation3] sm:$0xff] %vm649_vm1, %v9832_v1 }
 0x201   : > { %651 = vst.msk [vmem:[#allocation3 + $0x8] sm:$0xff] %vm649_vm1, %v9832_v1  ;;  %2400 = vmatpush.bf16.msrb.mxu3 %v8454_v37 }
 0x202   : > { %6627 = vmatmul.msk.bf16.gmra.mxu1 %vm601_vm0, %v1579_v12  ;;  %6639 = vmatmul.msk.bf16.gmra.mxu2 %vm601_vm0, %v1660_v57  ;;  %652 = vst.msk [vmem:[#allocation3 + $0x10] sm:$0xff] %vm649_vm1, %v9832_v1 }
 0x203   : > { %6651 = vmatmul.msk.bf16.gmra.mxu3 %vm601_vm0, %v1741_v15  ;;  %2882 = vmatpush.bf16.msrb.mxu0 %v8472_v14  ;;  %v8450_v15 = vld [vmem:[%s11425_s5 + $0x20] sm:$0xff]  ;;  %653 = vst.msk [vmem:[#allocation3 + $0x18] sm:$0xff] %vm649_vm1, %v9832_v1 }
 0x204   : > { %654 = vst.msk [vmem:[#allocation3 + $0x20] sm:$0xff] %vm649_vm1, %v9832_v1 }
 0x205   : > { %v9755_v38 = vpop.f32.mrf.mxu2  ;;  %655 = vst.msk [vmem:[#allocation3 + $0x28] sm:$0xff] %vm649_vm1, %v9832_v1 }
 0x206   : > { %656 = vst.msk [vmem:[#allocation3 + $0x30] sm:$0xff] %vm649_vm1, %v9832_v1 }
 0x207   : > { %657 = vst.msk [vmem:[#allocation3 + $0x38] sm:$0xff] %vm649_vm1, %v9832_v1 }
 0x208   : > { %658 = vst.msk [vmem:[#allocation3 + $0x40] sm:$0xff] %vm649_vm1, %v9832_v1 }
 0x209   : > { %659 = vst.msk [vmem:[#allocation3 + $0x48] sm:$0xff] %vm649_vm1, %v9832_v1  ;;  %v2133_v56 = vld [vmem:[#allocation3 + $0x9] sm:$0xff] }
 0x20a   : > { %660 = vst.msk [vmem:[#allocation3 + $0x50] sm:$0xff] %vm649_vm1, %v9832_v1 }
 0x20b   : > { %661 = vst.msk [vmem:[#allocation3 + $0x58] sm:$0xff] %vm649_vm1, %v9832_v1 }
 0x20c   : > { %662 = vst.msk [vmem:[#allocation3 + $0x60] sm:$0xff] %vm649_vm1, %v9832_v1 }
 0x20d   : > { %663 = vst.msk [vmem:[#allocation3 + $0x68] sm:$0xff] %vm649_vm1, %v9832_v1 }
 0x20e   : > { %664 = vst.msk [vmem:[#allocation3 + $0x70] sm:$0xff] %vm649_vm1, %v9832_v1 }
 0x20f   : > { %668 = vst.msk [vmem:[#allocation4 + $0x8] sm:$0xff] %vm649_vm1, %v9832_v1 }
 0x210   : > { %669 = vst.msk [vmem:[#allocation4 + $0x10] sm:$0xff] %vm649_vm1, %v9832_v1 }
 0x211   : > { %670 = vst.msk [vmem:[#allocation4 + $0x18] sm:$0xff] %vm649_vm1, %v9832_v1 }
 0x212   : > { %6660 = vmatmul.msk.bf16.vlgmr.msra.gmra.mxu1 %vm601_vm0, %v1805_v21  ;;  %6672 = vmatmul.msk.bf16.vlgmr.msra.gmra.mxu2 %vm601_vm0, %v1872_v58  ;;  %v9757_v58 = vpop.f32.mrf.mxu3  ;;  %v1938_v21 = vld [vmem:[#allocation2 + $0x135] ss:$2 sm:$0xff]  ;;  %671 = vst.msk [vmem:[#allocation4 + $0x20] sm:$0xff] %vm649_vm1, %v9832_v1 }
 0x213   : > { %6684 = vmatmul.msk.bf16.vlgmr.msra.gmra.mxu3 %vm601_vm0, %v1939_v32  ;;  %v1808_v32 = vpack.c.bf16 %v1804_v20, %v9645_v4  ;;  %v1942_v63 = vpack.c.bf16 %v1938_v21, %v9647_v5  ;;  %v8451_v5 = vld [vmem:[%s11425_s5 + $0x28] sm:$0xff]  ;;  %672 = vst.msk [vmem:[#allocation4 + $0x28] sm:$0xff] %vm649_vm1, %v9832_v1 }
 0x214   : > { %2203 = vmatpush.bf16.msrb.mxu1 %v8451_v5  ;;  %673 = vst.msk [vmem:[#allocation4 + $0x30] sm:$0xff] %vm649_vm1, %v9832_v1 }
 0x215   : > { %674 = vst.msk [vmem:[#allocation4 + $0x38] sm:$0xff] %vm649_vm1, %v9832_v1 }
 0x216   : > { %675 = vst.msk [vmem:[#allocation4 + $0x40] sm:$0xff] %vm649_vm1, %v9832_v1 }
 0x217   : > { %676 = vst.msk [vmem:[#allocation4 + $0x48] sm:$0xff] %vm649_vm1, %v9832_v1 }
 0x218   : > { %2204 = vmatpush.bf16.msrb.mxu1 %v8450_v15  ;;  %677 = vst.msk [vmem:[#allocation4 + $0x50] sm:$0xff] %vm649_vm1, %v9832_v1 }
 0x219   : > { %678 = vst.msk [vmem:[#allocation4 + $0x58] sm:$0xff] %vm649_vm1, %v9832_v1 }
 0x21a   : > { %679 = vst.msk [vmem:[#allocation4 + $0x60] sm:$0xff] %vm649_vm1, %v9832_v1 }
 0x21b   : > { %666 = vst.msk [vmem:[#allocation3 + $0x78] sm:$0x3] %vm665_vm2, %v9832_v1  ;;  %v8489_v1 = vld [vmem:[%s11381_s7 + $0x38] sm:$0xff] }
 0x21c   : > { %2518 = vmatpush.bf16.msra.mxu1 %v8461_v52  ;;  %v8470_v52 = vld [vmem:[%s11425_s5 + $0xc0] sm:$0xff] }
 0x222   : > { %6661 = vmatmul.msk.bf16.gmra.mxu1 %vm601_vm0, %v1806_v24  ;;  %6673 = vmatmul.msk.bf16.gmra.mxu2 %vm601_vm0, %v1873_v41 }
 0x223   : > { %6685 = vmatmul.msk.bf16.gmra.mxu3 %vm601_vm0, %v1940_v49  ;;  %v8448_v49 = vld [vmem:[%s11425_s5 + $0x10] sm:$0xff] }
 0x224   : > { %2290 = vmatpush.bf16.msrb.mxu2 %v8448_v49  ;;  %v2132_v49 = vld [vmem:[#allocation3 + $0x1] sm:$0xff] }
 0x225   : > { %v2145_v14 = vpack.c.bf16 %v2133_v56, %v2132_v49 }
 0x228   : > { %2291 = vmatpush.bf16.msrb.mxu2 %v8447_v7  ;;  %v8465_v7 = vld [vmem:[%s11425_s5 + $0x98] sm:$0xff] }
 0x22c   : > { %2292 = vmatpush.bf16.msrb.mxu2 %v8446_v55 }
 0x230   : > { %2639 = vmatpush.bf16.msra.mxu2 %v8465_v7 }
 0x232   : > { %6662 = vmatmul.msk.bf16.gmra.mxu1 %vm601_vm0, %v1807_v13  ;;  %6674 = vmatmul.msk.bf16.gmra.mxu2 %vm601_vm0, %v1874_v23 }
 0x233   : > { %6686 = vmatmul.msk.bf16.gmra.mxu3 %vm601_vm0, %v1941_v8 }
 0x23f   : > { %v1421_v31 = vpop.f32.mrf.mxu1 }
 0x242   : > { %6663 = vmatmul.msk.bf16.gmra.mxu1 %vm601_vm0, %v1808_v32  ;;  %6675 = vmatmul.msk.bf16.gmra.mxu2 %vm601_vm0, %v1875_v10  ;;  %v2113_v32 = vld [vmem:[#allocation3 + $0x8] sm:$0xff] }
 0x243   : > { %6687 = vmatmul.msk.bf16.gmra.mxu3 %vm601_vm0, %v1942_v63  ;;  %v2328_v10 = vld [vmem:[#allocation3 + $0x2] sm:$0xff]  ;;  %v9863_v63 = vld [vmem:[#allocation3 + $0xa] sm:$0xff] }
 0x245   : > { %v1474_v39 = vpop.f32.mrf.mxu2 }
 0x246   : > { %v1475_v40 = vadd.f32 %v1474_v39, %v1421_v31  ;;  %v1547_v24 = vpop.f32.mrf.mxu3  ;;  %v2112_v31 = vld [vmem:[#allocation3] sm:$0xff]  ;;  %v2341_v39 = vpack.c.bf16 %v9863_v63, %v2328_v10 }
 0x247   : > { %v9768_v41 = vpop.f32.mrf.mxu1  ;;  %v2125_v62 = vpack.c.bf16 %v2113_v32, %v2112_v31  ;;  %v1462_v31 = vadd.f32 %v9614_v28, %v9612_v27 }
 0x248   : > { %v9770_v48 = vadd.f32 %v1547_v24, %v1475_v40 }
 0x24d   : > { %v9775_v18 = vpop.f32.mrf.mxu2 }
 0x24e   : > { %v9777_v36 = vpop.f32.mrf.mxu3 }
 0x24f   : > { %v9779_v19 = vpop.f32.mrf.mxu1 }
 0x250   : > { %v1633_v15 = vadd.f32 %v9779_v19, %v9542_v60  ;;  %v1553_v60 = vadd.f32 %v9617_v30, %v1462_v31 }
 0x252   : > { %6791 = vmatmul.msk.bf16.vlgmr.msrb.gmra.mxu2 %vm649_vm1, %v2125_v62  ;;  %6768 = vmatmul.msk.bf16.vlgmr.msrb.gmra.mxu1 %vm649_vm1, %v2145_v14  ;;  %v8471_v62 = vld [vmem:[%s11425_s5 + $0xc8] sm:$0xff]  ;;  %v9940_v14 = vld [vmem:[%s11426_s4] ss:$0 sm:$0xff] }
 0x253   : > { %6814 = vmatmul.msk.bf16.vlgmr.msrb.gmra.mxu3 %vm649_vm1, %v2341_v39  ;;  %2883 = vmatpush.bf16.msrb.mxu0 %v8471_v62 }
 0x255   : > { %v9784_v59 = vpop.f32.mrf.mxu2 }
 0x256   : > { %v9786_v13 = vpop.f32.mrf.mxu3  ;;  %v1714_v32 = vadd.f32 %v9784_v59, %v1633_v15 }
 0x257   : > { %v9788_v23 = vpop.f32.mrf.mxu1  ;;  %2884 = vmatpush.bf16.msrb.mxu0 %v8470_v52 }
 0x258   : > { %v1795_v19 = vadd.f32 %v9786_v13, %v1714_v32  ;;  %v1634_v49 = vadd.f32 %v9788_v23, %v1553_v60 }
 0x25d   : > { %v9793_v8 = vpop.f32.mrf.mxu2 }
 0x25e   : > { %v9795_v61 = vpop.f32.mrf.mxu3  ;;  %v1715_v27 = vadd.f32 %v9793_v8, %v1634_v49 }
 0x25f   : > { %v9797_v4 = vpop.f32.mrf.mxu1 }
 0x260   : > { %v1796_v13 = vadd.f32 %v9795_v61, %v1715_v27  ;;  %v1635_v8 = vadd.f32 %v9797_v4, %v9630_v50  ;;  %v8464_v61 = vld [vmem:[%s11425_s5 + $0x90] sm:$0xff] }
 0x261   : > { %v8460_v50 = vld [vmem:[%s11425_s5 + $0x70] sm:$0xff]  ;;  %2640 = vmatpush.bf16.msra.mxu2 %v8464_v61  ;;  %v1472_v61 = vadd.f32 %v9755_v38, %v9750_v34 }
 0x262   : > { %2519 = vmatpush.bf16.msra.mxu1 %v8460_v50 }
 0x265   : > { %v9805_v2 = vpop.f32.mrf.mxu2 }
 0x266   : > { %v9807_v29 = vpop.f32.mrf.mxu3  ;;  %v1716_v60 = vadd.f32 %v9805_v2, %v1635_v8 }
 0x267   : > { %v9809_v45 = vpop.f32.mrf.mxu1 }
 0x26d   : > { %v9820_v46 = vpop.f32.mrf.mxu2 }
 0x26e   : > { %v9822_v12 = vpop.f32.mrf.mxu3 }
 0x26f   : > { %v9824_v57 = vpop.f32.mrf.mxu1 }
 0x275   : > { %v9845_v20 = vpop.f32.mrf.mxu2 }
 0x276   : > { %v9849_v22 = vpop.f32.mrf.mxu3 }
 0x277   : > { %v9853_v21 = vpop.f32.mrf.mxu1 }
 0x27d   : > { %v9871_v40 = vpop.f32.mrf.mxu2 }
 0x27e   : > { %v9876_v24 = vpop.f32.mrf.mxu3 }
 0x27f   : > { %v9883_v5 = vpop.f32.mrf.mxu1 }
 0x285   : > { %v9896_v51 = vpop.f32.mrf.mxu2 }
 0x286   : > { %v9900_v55 = vpop.f32.mrf.mxu3 }
 0x287   : > { %v9907_v54 = vpop.f32.mrf.mxu1 }
 0x28d   : > { %v9923_v37 = vpop.f32.mrf.mxu2 }
 0x28e   : > { %v9928_v10 = vpop.f32.mrf.mxu3 }
 0x28f   : > { %v1842_v39 = vpop.f32.mrf.mxu1 }
 0x290   : > { %v1862_v56 = vadd.f32 %v1842_v39, %v1795_v19  ;;  %v1467_v39 = vadd.f32 %v9702_v35, %v9700_v25  ;;  %v1797_v35 = vadd.f32 %v9807_v29, %v1716_v60 }
 0x292   : > { %v1555_v25 = vadd.f32 %v9704_v11, %v1467_v39 }
 0x295   : > { %v1909_v7 = vpop.f32.mrf.mxu2 }
 0x296   : > { %v1929_v28 = vadd.f32 %v1909_v7, %v1862_v56  ;;  %v1976_v59 = vpop.f32.mrf.mxu3  ;;  %v1636_v7 = vadd.f32 %v9809_v45, %v1555_v25 }
 0x297   : > { %v1844_v30 = vpop.f32.mrf.mxu1 }
 0x298   : > { %v1996_v15 = vadd.f32 %v1976_v59, %v1929_v28  ;;  %v1863_v32 = vadd.f32 %v1844_v30, %v1796_v13 }
 0x29a   : > { %v2007_v23 = vadd.f32 %v9940_v14, %v1996_v15  ;;  %v1717_v15 = vadd.f32 %v9820_v46, %v1636_v7  ;;  %v1637_v46 = vadd.f32 %v9824_v57, %v9706_v9 }
 0x29c   : > { %v2015_v31 = vmax.f32 %v2007_v23, 0.0  ;;  %v1798_v45 = vadd.f32 %v9822_v12, %v1717_v15  ;;  %v1718_v50 = vadd.f32 %v9845_v20, %v1637_v46 }
 0x29d   : > { %v1911_v62 = vpop.f32.mrf.mxu2 }
 0x29e   : > { %2023 = vst.msk [vmem:[#allocation3 + $0x16] sm:$0xff] %vm649_vm1, %v2015_v31  ;;  %v1930_v19 = vadd.f32 %v1911_v62, %v1863_v32  ;;  %v1978_v49 = vpop.f32.mrf.mxu3 }
 0x29f   : > { %v1847_v4 = vpop.f32.mrf.mxu1 }
 0x2a0   : > { %v1997_v56 = vadd.f32 %v1978_v49, %v1930_v19  ;;  %v1864_v28 = vadd.f32 %v1847_v4, %v1797_v35 }
 0x2a2   : > { %v2008_v2 = vadd.f32 %v9940_v14, %v1997_v56 }
 0x2a4   : > { %v2016_v27 = vmax.f32 %v2008_v2, 0.0 }
 0x2a5   : > { %v1914_v59 = vpop.f32.mrf.mxu2  ;;  %v2114_v52 = vld [vmem:[#allocation3 + $0x10] sm:$0xff]  ;;  %v2115_v30 = vld [vmem:[#allocation3 + $0x18] sm:$0xff] }
 0x2a6   : > { %2024 = vst.msk [vmem:[#allocation3 + $0x20] sm:$0xff] %vm649_vm1, %v2016_v27  ;;  %v1931_v13 = vadd.f32 %v1914_v59, %v1864_v28  ;;  %v1981_v23 = vpop.f32.mrf.mxu3  ;;  %v2126_v8 = vpack.c.bf16 %v2115_v30, %v2114_v52  ;;  %v9965_v31 = vld [vmem:[#allocation3 + $0x12] sm:$0xff]  ;;  %v1557_v28 = vadd.f32 %v9757_v58, %v1472_v61  ;;  %v1799_v59 = vadd.f32 %v9849_v22, %v1718_v50 }
 0x2a7   : > { %v1849_v11 = vpop.f32.mrf.mxu1  ;;  %v2462_v29 = vpack.c.bf16 %v9965_v31, %v9863_v63  ;;  %v2134_v19 = vld [vmem:[#allocation3 + $0x11] sm:$0xff]  ;;  %v1639_v50 = vadd.f32 %v9883_v5, %v9770_v48 }
 0x2a8   : > { %v1998_v32 = vadd.f32 %v1981_v23, %v1931_v13  ;;  %6792 = vmatmul.msk.bf16.gmra.mxu2 %vm649_vm1, %v2126_v8  ;;  %v1865_v60 = vadd.f32 %v1849_v11, %v1798_v45  ;;  %v9974_v49 = vld [vmem:[#allocation3 + $0x14] sm:$0xff]  ;;  %v1638_v30 = vadd.f32 %v9853_v21, %v1557_v28 }
 0x2a9   : > { %v8463_v58 = vld [vmem:[%s11425_s5 + $0x88] sm:$0xff] }
 0x2aa   : > { %v2009_v62 = vadd.f32 %v9940_v14, %v1998_v32  ;;  %v1719_v32 = vadd.f32 %v9871_v40, %v1638_v30  ;;  %v8459_v40 = vld [vmem:[%s11425_s5 + $0x68] sm:$0xff]  ;;  %2641 = vmatpush.bf16.msra.mxu2 %v8463_v58 }
 0x2ab   : > { %2520 = vmatpush.bf16.msra.mxu1 %v8459_v40 }
 0x2ac   : > { %v2017_v39 = vmax.f32 %v2009_v62, 0.0 }
 0x2ad   : > { %v1916_v4 = vpop.f32.mrf.mxu2  ;;  %v2135_v56 = vld [vmem:[#allocation3 + $0x19] sm:$0xff]  ;;  %v9988_v34 = vld [vmem:[#allocation3 + $0x22] sm:$0xff] }
 0x2ae   : > { %v9979_v25 = vld [vmem:[#allocation3 + $0x1a] sm:$0xff]  ;;  %2025 = vst.msk [vmem:[#allocation3 + $0x2a] sm:$0xff] %vm649_vm1, %v2017_v39  ;;  %v1932_v35 = vadd.f32 %v1916_v4, %v1865_v60  ;;  %v1983_v9 = vpop.f32.mrf.mxu3  ;;  %v2146_v57 = vpack.c.bf16 %v2135_v56, %v2134_v19  ;;  %v1800_v19 = vadd.f32 %v9876_v24, %v1719_v32 }
 0x2af   : > { %v9981_v12 = vld [vmem:[#allocation3 + $0x1c] sm:$0xff]  ;;  %v2342_v2 = vpack.c.bf16 %v9979_v25, %v9965_v31  ;;  %v1852_v38 = vpop.f32.mrf.mxu1  ;;  %v2463_v20 = vpack.c.bf16 %v9988_v34, %v9979_v25 }
 0x2b0   : > { %v2825_v7 = vpack.c.bf16 %v9981_v12, %v9974_v49  ;;  %v1999_v27 = vadd.f32 %v1983_v9, %v1932_v35  ;;  %6769 = vmatmul.msk.bf16.gmra.mxu1 %vm649_vm1, %v2146_v57  ;;  %v1866_v13 = vadd.f32 %v1852_v38, %v1799_v59  ;;  %v2116_v8 = vld [vmem:[#allocation3 + $0x20] sm:$0xff]  ;;  %v8475_v25 = vld [vmem:[%s11425_s5 + $0xe8] sm:$0xff] }
 0x2b1   : > { %6815 = vmatmul.msk.bf16.gmra.mxu3 %vm649_vm1, %v2342_v2  ;;  %v1477_v2 = vadd.f32 %v9775_v18, %v9768_v41  ;;  %v2136_v24 = vld [vmem:[#allocation3 + $0x21] sm:$0xff] }
 0x2b2   : > { %6906 = vmatmul.msk.bf16.vlgmr.msrb.gmra.mxu0 %vm649_vm1, %v2825_v7  ;;  %v2010_v52 = vadd.f32 %v9940_v14, %v1999_v27  ;;  %v1720_v7 = vadd.f32 %v9896_v51, %v1639_v50 }
 0x2b4   : > { %v2018_v15 = vmax.f32 %v2010_v52, 0.0 }
 0x2b5   : > { %v1919_v23 = vpop.f32.mrf.mxu2  ;;  %v2117_v11 = vld [vmem:[#allocation3 + $0x28] sm:$0xff] }
 0x2b6   : > { %2026 = vst.msk [vmem:[#allocation3 + $0x34] sm:$0xff] %vm649_vm1, %v2018_v15  ;;  %v1933_v45 = vadd.f32 %v1919_v23, %v1866_v13  ;;  %v1986_v62 = vpop.f32.mrf.mxu3  ;;  %v2127_v46 = vpack.c.bf16 %v2117_v11, %v2116_v8  ;;  %v10001_v39 = vld [vmem:[#allocation3 + $0x24] sm:$0xff]  ;;  %v10018_v57 = vld [vmem:[#allocation3 + $0x2c] sm:$0xff]  ;;  %v1559_v13 = vadd.f32 %v9777_v36, %v1477_v2  ;;  %v1801_v23 = vadd.f32 %v9900_v55, %v1720_v7 }
 0x2b7   : > { %v1854_v22 = vpop.f32.mrf.mxu1  ;;  %v2705_v21 = vpack.c.bf16 %v10001_v39, %v9981_v12  ;;  %v2137_v4 = vld [vmem:[#allocation3 + $0x29] sm:$0xff]  ;;  %v2826_v18 = vpack.c.bf16 %v10018_v57, %v10001_v39 }
 0x2b8   : > { %v2000_v60 = vadd.f32 %v1986_v62, %v1933_v45  ;;  %6793 = vmatmul.msk.bf16.gmra.mxu2 %vm649_vm1, %v2127_v46  ;;  %v10016_v56 = vld [vmem:[#allocation3 + $0x2a] sm:$0xff]  ;;  %v1867_v9 = vadd.f32 %v1854_v22, %v1800_v19  ;;  %v2147_v5 = vpack.c.bf16 %v2137_v4, %v2136_v24  ;;  %v1640_v11 = vadd.f32 %v9907_v54, %v1559_v13 }
 0x2b9   : > { %v2343_v59 = vpack.c.bf16 %v10016_v56, %v9988_v34  ;;  %v8462_v13 = vld [vmem:[%s11425_s5 + $0x80] sm:$0xff] }
 0x2ba   : > { %v2011_v61 = vadd.f32 %v9940_v14, %v2000_v60  ;;  %v1721_v22 = vadd.f32 %v9923_v37, %v1640_v11  ;;  %2642 = vmatpush.bf16.msra.mxu2 %v8462_v13 }
 0x2bc   : > { %v2019_v35 = vmax.f32 %v2011_v61, 0.0  ;;  %v1802_v55 = vadd.f32 %v9928_v10, %v1721_v22 }
 0x2bd   : > { %v1921_v38 = vpop.f32.mrf.mxu2  ;;  %v10023_v27 = vld [vmem:[#allocation3 + $0x32] sm:$0xff] }
 0x2be   : > { %2027 = vst.msk [vmem:[#allocation3 + $0x3e] sm:$0xff] %vm649_vm1, %v2019_v35  ;;  %v1934_v28 = vadd.f32 %v1921_v38, %v1867_v9  ;;  %v1988_v48 = vpop.f32.mrf.mxu3  ;;  %v10028_v52 = vld [vmem:[#allocation3 + $0x34] sm:$0xff]  ;;  %v2464_v30 = vpack.c.bf16 %v10023_v27, %v10016_v56 }
 0x2bf   : > { %v1857_v41 = vpop.f32.mrf.mxu1  ;;  %v2706_v51 = vpack.c.bf16 %v10028_v52, %v10018_v57  ;;  %v2118_v46 = vld [vmem:[#allocation3 + $0x30] sm:$0xff] }
 0x2c0   : > { %v2001_v15 = vadd.f32 %v1988_v48, %v1934_v28  ;;  %6770 = vmatmul.msk.bf16.gmra.mxu1 %vm649_vm1, %v2147_v5  ;;  %v1868_v45 = vadd.f32 %v1857_v41, %v1801_v23  ;;  %v2138_v7 = vld [vmem:[#allocation3 + $0x31] sm:$0xff] }
 0x2c1   : > { %6816 = vmatmul.msk.bf16.gmra.mxu3 %vm649_vm1, %v2343_v59  ;;  %v8458_v23 = vld [vmem:[%s11425_s5 + $0x60] sm:$0xff] }
 0x2c2   : > { %6907 = vmatmul.msk.bf16.gmra.mxu0 %vm649_vm1, %v2826_v18  ;;  %v2012_v8 = vadd.f32 %v9940_v14, %v2001_v15  ;;  %2521 = vmatpush.bf16.msra.mxu1 %v8458_v23  ;;  %v2575_v31 = vld [vmem:[#allocation3 + $0x33] sm:$0xff] }
 0x2c3   : > { %v8478_v57 = vld [vmem:[%s11425_s5 + $0x100] sm:$0xff] }
 0x2c4   : > { %v2020_v32 = vmax.f32 %v2012_v8, 0.0 }
 0x2c5   : > { %v1924_v62 = vpop.f32.mrf.mxu2  ;;  %v2119_v58 = vld [vmem:[#allocation3 + $0x38] sm:$0xff] }
 0x2c6   : > { %2028 = vst.msk [vmem:[#allocation3 + $0x48] sm:$0xff] %vm649_vm1, %v2020_v32  ;;  %v1935_v60 = vadd.f32 %v1924_v62, %v1868_v45  ;;  %v1991_v40 = vpop.f32.mrf.mxu3  ;;  %v2128_v19 = vpack.c.bf16 %v2119_v58, %v2118_v46  ;;  %v2139_v50 = vld [vmem:[#allocation3 + $0x39] sm:$0xff] }
 0x2c7   : > { %v1859_v36 = vpop.f32.mrf.mxu1  ;;  %v10048_v4 = vld [vmem:[#allocation3 + $0x3a] sm:$0xff]  ;;  %v2148_v24 = vpack.c.bf16 %v2139_v50, %v2138_v7  ;;  %v8469_v50 = vld [vmem:[%s11425_s5 + $0xb8] sm:$0xff] }
 0x2c8   : > { %v2002_v61 = vadd.f32 %v1991_v40, %v1935_v60  ;;  %6794 = vmatmul.msk.bf16.gmra.mxu2 %vm649_vm1, %v2128_v19  ;;  %v1869_v9 = vadd.f32 %v1859_v36, %v1802_v55  ;;  %v10050_v2 = vld [vmem:[#allocation3 + $0x3c] sm:$0xff]  ;;  %v2344_v28 = vpack.c.bf16 %v10048_v4, %v10023_v27  ;;  %2760 = vmatpush.bf16.msra.mxu3 %v8469_v50 }
 0x2c9   : > { %v2827_v59 = vpack.c.bf16 %v10050_v2, %v10028_v52  ;;  %v2120_v45 = vld [vmem:[#allocation3 + $0x40] sm:$0xff] }
 0x2ca   : > { %v2013_v54 = vadd.f32 %v9940_v14, %v2002_v61 }
 0x2cc   : > { %v2021_v35 = vmax.f32 %v2013_v54, 0.0 }
 0x2cd   : > { %v1926_v37 = vpop.f32.mrf.mxu2  ;;  %v10055_v48 = vld [vmem:[#allocation3 + $0x42] sm:$0xff]  ;;  %v10078_v58 = vld [vmem:[#allocation3 + $0x4a] sm:$0xff] }
 0x2ce   : > { %2029 = vst.msk [vmem:[#allocation3 + $0x52] sm:$0xff] %vm649_vm1, %v2021_v35  ;;  %v1936_v38 = vadd.f32 %v1926_v37, %v1869_v9  ;;  %v10057_v10 = vld [vmem:[#allocation3 + $0x44] sm:$0xff]  ;;  %v1993_v5 = vpop.f32.mrf.mxu3  ;;  %v2465_v41 = vpack.c.bf16 %v10055_v48, %v10048_v4  ;;  %v2345_v55 = vpack.c.bf16 %v10078_v58, %v10055_v48  ;;  %v8474_v4 = vld [vmem:[%s11425_s5 + $0xe0] sm:$0xff] }
 0x2cf   : > { %v2707_v18 = vpack.c.bf16 %v10057_v10, %v10050_v2  ;;  %v2121_v11 = vld [vmem:[#allocation3 + $0x48] sm:$0xff]  ;;  %v8468_v35 = vld [vmem:[%s11425_s5 + $0xb0] sm:$0xff] }
 0x2d0   : > { %v2003_v15 = vadd.f32 %v1993_v5, %v1936_v38  ;;  %6771 = vmatmul.msk.bf16.gmra.mxu1 %vm649_vm1, %v2148_v24  ;;  %v2129_v46 = vpack.c.bf16 %v2121_v11, %v2120_v45  ;;  %v2140_v19 = vld [vmem:[#allocation3 + $0x41] sm:$0xff]  ;;  %v2141_v61 = vld [vmem:[#allocation3 + $0x49] sm:$0xff]  ;;  %2761 = vmatpush.bf16.msra.mxu3 %v8468_v35  ;;  %v8467_v38 = vld [vmem:[%s11425_s5 + $0xa8] sm:$0xff] }
 0x2d1   : > { %6817 = vmatmul.msk.bf16.gmra.mxu3 %vm649_vm1, %v2344_v28  ;;  %v2149_v36 = vpack.c.bf16 %v2141_v61, %v2140_v19  ;;  %v8481_v24 = vld [vmem:[%s11425_s5 + $0x118] sm:$0xff]  ;;  %v8466_v28 = vld [vmem:[%s11425_s5 + $0xa0] sm:$0xff] }
 0x2d2   : > { %6908 = vmatmul.msk.bf16.gmra.mxu0 %vm649_vm1, %v2827_v59  ;;  %v2014_v8 = vadd.f32 %v9940_v14, %v2003_v15  ;;  %3123 = vmatpush.bf16.msrb.mxu2 %v8481_v24 }
 0x2d4   : > { %v2022_v32 = vmax.f32 %v2014_v8, 0.0  ;;  %2762 = vmatpush.bf16.msra.mxu3 %v8467_v38  ;;  %v2571_v38 = vld [vmem:[#allocation3 + $0x13] sm:$0xff] }
 0x2d5   : > { %v10075_v62 = vld [vmem:[#allocation3 + $0x4c] sm:$0xff]  ;;  %v10082_v60 = vld [vmem:[#allocation3 + $0x54] sm:$0xff]  ;;  %v2294_v50 = vpop.f32.mrf.mxu2 }
 0x2d6   : > { %2030 = vst.msk [vmem:[#allocation3 + $0x5c] sm:$0xff] %vm649_vm1, %v2022_v32  ;;  %v10080_v22 = vld [vmem:[#allocation3 + $0x52] sm:$0xff]  ;;  %v2708_v14 = vpack.c.bf16 %v10082_v60, %v10075_v62  ;;  %v2828_v54 = vpack.c.bf16 %v10075_v62, %v10057_v10  ;;  %v8477_v32 = vld [vmem:[%s11425_s5 + $0xf8] sm:$0xff] }
 0x2d7   : > { %v2466_v40 = vpack.c.bf16 %v10080_v22, %v10078_v58  ;;  %v2122_v37 = vld [vmem:[#allocation3 + $0x50] sm:$0xff]  ;;  %3002 = vmatpush.bf16.msrb.mxu1 %v8477_v32  ;;  %v2702_v10 = vld [vmem:[#allocation3 + $0x64] sm:$0xff] }
 0x2d8   : > { %6795 = vmatmul.msk.bf16.gmra.mxu2 %vm649_vm1, %v2129_v46  ;;  %v2142_v13 = vld [vmem:[#allocation3 + $0x51] sm:$0xff]  ;;  %2763 = vmatpush.bf16.msra.mxu3 %v8466_v28  ;;  %v8480_v28 = vld [vmem:[%s11425_s5 + $0x110] sm:$0xff] }
 0x2d9   : > { %3124 = vmatpush.bf16.msrb.mxu2 %v8480_v28 }
 0x2dc   : > { %3456 = vmatpush.bf16.msrb.mxu3 %v8489_v1 }
 0x2dd   : > { %v2123_v9 = vld [vmem:[#allocation3 + $0x58] sm:$0xff]  ;;  %v2124_v45 = vld [vmem:[#allocation3 + $0x60] sm:$0xf]  ;;  %v10153_v63 = vpop.f32.mrf.mxu2 }
 0x2de   : > { %v2130_v7 = vpack.c.bf16 %v2123_v9, %v2122_v37  ;;  %v2143_v5 = vld [vmem:[#allocation3 + $0x59] sm:$0xff]  ;;  %v2131_v46 = vpack.c.bf16 %v2124_v45, %v2124_v45  ;;  %v2144_v19 = vld [vmem:[#allocation3 + $0x61] sm:$0xf]  ;;  %v2402_v9 = vpop.f32.mrf.mxu3  ;;  %v2574_v45 = vld [vmem:[#allocation3 + $0x2b] sm:$0xff] }
 0x2df   : > { %v10112_v59 = vld [vmem:[#allocation3 + $0x5a] sm:$0xff]  ;;  %v2150_v23 = vpack.c.bf16 %v2143_v5, %v2142_v13  ;;  %v2340_v61 = vld [vmem:[#allocation3 + $0x62] sm:$0xf]  ;;  %v2691_v5 = vld [vmem:[#allocation3 + $0xc] sm:$0xff] }
 0x2e0   : > { %6772 = vmatmul.msk.bf16.gmra.mxu1 %vm649_vm1, %v2149_v36  ;;  %v10114_v15 = vld [vmem:[#allocation3 + $0x5c] sm:$0xff]  ;;  %v2346_v8 = vpack.c.bf16 %v10112_v59, %v10080_v22  ;;  %v2151_v36 = vpack.c.bf16 %v2144_v19, %v2144_v19 }
 0x2e1   : > { %6818 = vmatmul.msk.bf16.gmra.mxu3 %vm649_vm1, %v2345_v55  ;;  %v2829_v11 = vpack.c.bf16 %v10114_v15, %v10082_v60  ;;  %v2347_v55 = vpack.c.bf16 %v2340_v61, %v2340_v61  ;;  %v8476_v13 = vld [vmem:[%s11425_s5 + $0xf0] sm:$0xff] }
 0x2e2   : > { %6909 = vmatmul.msk.bf16.gmra.mxu0 %vm649_vm1, %v2828_v54  ;;  %v2206_v54 = vpop.f32.mrf.mxu1  ;;  %3003 = vmatpush.bf16.msrb.mxu1 %v8476_v13  ;;  %v2577_v61 = vld [vmem:[#allocation3 + $0x43] sm:$0xff] }
 0x2e3   : > { %v2295_v35 = vadd.f32 %v2294_v50, %v2206_v54  ;;  %v2576_v54 = vld [vmem:[#allocation3 + $0x3b] sm:$0xff] }
 0x2e4   : > { %v2460_v62 = vld [vmem:[#allocation3 + $0x62] sm:$0xff] }
 0x2e5   : > { %v10129_v37 = vadd.f32 %v2402_v9, %v2295_v35  ;;  %v2586_v35 = vpack.c.bf16 %v2577_v61, %v2576_v54  ;;  %v2582_v61 = vld [vmem:[#allocation3 + $0x6b] sm:$0xf] }
 0x2e6   : > { %3004 = vmatpush.bf16.msrb.mxu1 %v8475_v25  ;;  %v10164_v12 = vpop.f32.mrf.mxu3 }
 0x2e8   : > { %6796 = vmatmul.msk.bf16.gmra.mxu2 %vm649_vm1, %v2130_v7  ;;  %v2570_v7 = vld [vmem:[#allocation3 + $0xb] sm:$0xff] }
 0x2e9   : > { %v2583_v24 = vpack.c.bf16 %v2571_v38, %v2570_v7  ;;  %v2578_v38 = vld [vmem:[#allocation3 + $0x4b] sm:$0xff] }
 0x2ea   : > { %3005 = vmatpush.bf16.msrb.mxu1 %v8474_v4 }
 0x2f0   : > { %6773 = vmatmul.msk.bf16.gmra.mxu1 %vm649_vm1, %v2150_v23  ;;  %v2704_v23 = vpack.c.bf16 %v9974_v49, %v2691_v5  ;;  %v10158_v49 = vpop.f32.mrf.mxu1 }
 0x2f1   : > { %6819 = vmatmul.msk.bf16.gmra.mxu3 %vm649_vm1, %v2346_v8  ;;  %v2573_v8 = vld [vmem:[#allocation3 + $0x23] sm:$0xff] }
 0x2f2   : > { %6910 = vmatmul.msk.bf16.gmra.mxu0 %vm649_vm1, %v2829_v11  ;;  %v2572_v11 = vld [vmem:[#allocation3 + $0x1b] sm:$0xff] }
 0x2f3   : > { %v2584_v32 = vpack.c.bf16 %v2573_v8, %v2572_v11 }
 0x2f8   : > { %6797 = vmatmul.msk.bf16.gmra.mxu2 %vm649_vm1, %v2131_v46  ;;  %v2585_v46 = vpack.c.bf16 %v2575_v31, %v2574_v45  ;;  %v2581_v45 = vld [vmem:[#allocation3 + $0x63] sm:$0xff] }
 0x300   : > { %6774 = vmatmul.msk.bf16.gmra.mxu1 %vm649_vm1, %v2151_v36 }
 0x301   : > { %6820 = vmatmul.msk.bf16.gmra.mxu3 %vm649_vm1, %v2347_v55 }
 0x308   : > { %6860 = vmatmul.msk.bf16.vlgmr.msra.gmra.mxu2 %vm649_vm1, %v2583_v24  ;;  %v2579_v24 = vld [vmem:[#allocation3 + $0x53] sm:$0xff] }
 0x309   : > { %v2587_v2 = vpack.c.bf16 %v2579_v24, %v2578_v38 }
 0x310   : > { %6837 = vmatmul.msk.bf16.vlgmr.msra.gmra.mxu1 %vm649_vm1, %v2462_v29  ;;  %v8479_v29 = vld [vmem:[%s11425_s5 + $0x108] sm:$0xff] }
 0x311   : > { %6883 = vmatmul.msk.bf16.vlgmr.msra.gmra.mxu3 %vm649_vm1, %v2704_v23  ;;  %3125 = vmatpush.bf16.msrb.mxu2 %v8479_v29  ;;  %v2580_v29 = vld [vmem:[#allocation3 + $0x5b] sm:$0xff] }
 0x315   : > { %3126 = vmatpush.bf16.msrb.mxu2 %v8478_v57 }
 0x318   : > { %6861 = vmatmul.msk.bf16.gmra.mxu2 %vm649_vm1, %v2584_v32 }
 0x320   : > { %6838 = vmatmul.msk.bf16.gmra.mxu1 %vm649_vm1, %v2463_v20 }
 0x321   : > { %6884 = vmatmul.msk.bf16.gmra.mxu3 %vm649_vm1, %v2705_v21 }
 0x328   : > { %6862 = vmatmul.msk.bf16.gmra.mxu2 %vm649_vm1, %v2585_v46 }
 0x32b   : > { %v2299_v34 = vpop.f32.mrf.mxu2 }
 0x32d   : > { %v2211_v20 = vpop.f32.mrf.mxu1 }
 0x32e   : > { %v2300_v39 = vadd.f32 %v2299_v34, %v2211_v20  ;;  %v2588_v20 = vpack.c.bf16 %v2581_v45, %v2580_v29  ;;  %v2934_v45 = vld [vmem:[#allocation3 + $0x1d] sm:$0xff] }
 0x330   : > { %6839 = vmatmul.msk.bf16.gmra.mxu1 %vm649_vm1, %v2464_v30 }
 0x331   : > { %6885 = vmatmul.msk.bf16.gmra.mxu3 %vm649_vm1, %v2706_v51 }
 0x333   : > { %v2301_v21 = vpop.f32.mrf.mxu2 }
 0x334   : > { %v2407_v19 = vpop.f32.mrf.mxu3 }
 0x335   : > { %v10174_v36 = vadd.f32 %v2407_v19, %v2300_v39  ;;  %v2213_v55 = vpop.f32.mrf.mxu1  ;;  %v2824_v39 = vld [vmem:[#allocation3 + $0x74] sm:$0xf]  ;;  %v2709_v19 = vpack.c.bf16 %v2702_v10, %v10114_v15 }
 0x336   : > { %v2302_v50 = vadd.f32 %v2301_v21, %v2213_v55  ;;  %v2831_v21 = vpack.c.bf16 %v2824_v39, %v2824_v39 }
 0x338   : > { %6863 = vmatmul.msk.bf16.gmra.mxu2 %vm649_vm1, %v2586_v35  ;;  %v2589_v35 = vpack.c.bf16 %v2582_v61, %v2582_v61 }
 0x33b   : > { %v2304_v9 = vpop.f32.mrf.mxu2 }
 0x33c   : > { %v2409_v56 = vpop.f32.mrf.mxu3 }
 0x33d   : > { %v10177_v27 = vadd.f32 %v2409_v56, %v2302_v50  ;;  %v2216_v30 = vpop.f32.mrf.mxu1  ;;  %v10223_v56 = vpop.f32.mrf.mxu0 }
 0x33e   : > { %v2305_v7 = vadd.f32 %v2304_v9, %v2216_v30 }
 0x340   : > { %6840 = vmatmul.msk.bf16.gmra.mxu1 %vm649_vm1, %v2465_v41 }
 0x341   : > { %6886 = vmatmul.msk.bf16.gmra.mxu3 %vm649_vm1, %v2707_v18  ;;  %v2823_v18 = vld [vmem:[#allocation3 + $0x6c] sm:$0xff] }
 0x342   : > { %v2830_v5 = vpack.c.bf16 %v2823_v18, %v2702_v10  ;;  %v3055_v10 = vld [vmem:[#allocation3 + $0x1e] sm:$0xff] }
 0x343   : > { %v2306_v52 = vpop.f32.mrf.mxu2 }
 0x344   : > { %v2412_v51 = vpop.f32.mrf.mxu3  ;;  %6911 = vmatmul.msk.bf16.gmra.mxu0 %vm649_vm1, %v2830_v5 }
 0x345   : > { %v10190_v28 = vadd.f32 %v2412_v51, %v2305_v7  ;;  %v2218_v48 = vpop.f32.mrf.mxu1  ;;  %v2703_v7 = vld [vmem:[#allocation3 + $0x6c] sm:$0xf]  ;;  %v10230_v4 = vpop.f32.mrf.mxu0 }
 0x346   : > { %v10195_v41 = vadd.f32 %v2306_v52, %v2218_v48  ;;  %v2710_v51 = vpack.c.bf16 %v2703_v7, %v2703_v7 }
 0x348   : > { %6864 = vmatmul.msk.bf16.gmra.mxu2 %vm649_vm1, %v2587_v2 }
 0x34b   : > { %v2309_v13 = vpop.f32.mrf.mxu2 }
 0x34c   : > { %v10198_v23 = vpop.f32.mrf.mxu3 }
 0x34d   : > { %v2221_v8 = vpop.f32.mrf.mxu1 }
 0x34e   : > { %v2310_v11 = vadd.f32 %v2309_v13, %v2221_v8  ;;  %v3054_v13 = vld [vmem:[#allocation3 + $0x16] sm:$0xff] }
 0x350   : > { %6841 = vmatmul.msk.bf16.gmra.mxu1 %vm649_vm1, %v2466_v40 }
 0x351   : > { %6887 = vmatmul.msk.bf16.gmra.mxu3 %vm649_vm1, %v2708_v14  ;;  %v2467_v14 = vpack.c.bf16 %v2460_v62, %v10112_v59  ;;  %v2461_v59 = vld [vmem:[#allocation3 + $0x6a] sm:$0xf]  ;;  %v3057_v62 = vld [vmem:[#allocation3 + $0x2e] sm:$0xff] }
 0x352   : > { %v2468_v52 = vpack.c.bf16 %v2461_v59, %v2461_v59 }
 0x353   : > { %v2311_v32 = vpop.f32.mrf.mxu2 }
 0x354   : > { %v2417_v31 = vpop.f32.mrf.mxu3  ;;  %6912 = vmatmul.msk.bf16.gmra.mxu0 %vm649_vm1, %v2831_v21 }
 0x355   : > { %v10209_v46 = vadd.f32 %v2417_v31, %v2310_v11  ;;  %v2223_v25 = vpop.f32.mrf.mxu1  ;;  %v3067_v11 = vpack.c.bf16 %v3055_v10, %v3054_v13  ;;  %v3058_v13 = vld [vmem:[#allocation3 + $0x36] sm:$0xff] }
 0x356   : > { %v10211_v34 = vadd.f32 %v2311_v32, %v2223_v25  ;;  %v10239_v32 = vpop.f32.mrf.mxu0 }
 0x358   : > { %6865 = vmatmul.msk.bf16.gmra.mxu2 %vm649_vm1, %v2588_v20  ;;  %v2933_v20 = vld [vmem:[#allocation3 + $0x15] sm:$0xff] }
 0x359   : > { %v2946_v39 = vpack.c.bf16 %v2934_v45, %v2933_v20 }
 0x35b   : > { %v2314_v58 = vpop.f32.mrf.mxu2 }
 0x35c   : > { %v10214_v22 = vpop.f32.mrf.mxu3 }
 0x35d   : > { %v2226_v60 = vpop.f32.mrf.mxu1 }
 0x35e   : > { %v2315_v40 = vadd.f32 %v2314_v58, %v2226_v60  ;;  %v10244_v60 = vpop.f32.mrf.mxu0 }
 0x360   : > { %6842 = vmatmul.msk.bf16.gmra.mxu1 %vm649_vm1, %v2467_v14  ;;  %v3056_v14 = vld [vmem:[#allocation3 + $0x26] sm:$0xff] }
 0x361   : > { %6888 = vmatmul.msk.bf16.gmra.mxu3 %vm649_vm1, %v2709_v19  ;;  %v3068_v19 = vpack.c.bf16 %v3057_v62, %v3056_v14 }
 0x363   : > { %v2316_v55 = vpop.f32.mrf.mxu2 }
 0x364   : > { %v2422_v54 = vpop.f32.mrf.mxu3 }
 0x365   : > { %v10221_v50 = vadd.f32 %v2422_v54, %v2315_v40  ;;  %v2228_v9 = vpop.f32.mrf.mxu1  ;;  %v2936_v54 = vld [vmem:[#allocation3 + $0x2d] sm:$0xff] }
 0x366   : > { %v10225_v30 = vadd.f32 %v2316_v55, %v2228_v9  ;;  %v2935_v9 = vld [vmem:[#allocation3 + $0x25] sm:$0xff]  ;;  %v10247_v59 = vpop.f32.mrf.mxu0 }
 0x368   : > { %6866 = vmatmul.msk.bf16.gmra.mxu2 %vm649_vm1, %v2589_v35 }
 0x36b   : > { %v2319_v15 = vpop.f32.mrf.mxu2 }
 0x36c   : > { %v10228_v57 = vpop.f32.mrf.mxu3 }
 0x36d   : > { %v2231_v38 = vpop.f32.mrf.mxu1 }
 0x36e   : > { %v2320_v24 = vadd.f32 %v2319_v15, %v2231_v38  ;;  %v2947_v15 = vpack.c.bf16 %v2936_v54, %v2935_v9  ;;  %v10256_v45 = vpop.f32.mrf.mxu0  ;;  %v3060_v54 = vld [vmem:[#allocation3 + $0x46] sm:$0xff] }
 0x370   : > { %6843 = vmatmul.msk.bf16.gmra.mxu1 %vm649_vm1, %v2468_v52  ;;  %v2297_v52 = vadd.f32 %v10153_v63, %v10158_v49 }
 0x371   : > { %6889 = vmatmul.msk.bf16.gmra.mxu3 %vm649_vm1, %v2710_v51 }
 0x373   : > { %v2321_v48 = vpop.f32.mrf.mxu2 }
 0x374   : > { %v2427_v2 = vpop.f32.mrf.mxu3 }
 0x375   : > { %v10234_v18 = vadd.f32 %v2427_v2, %v2320_v24  ;;  %v2233_v5 = vpop.f32.mrf.mxu1  ;;  %v2437_v2 = vadd.f32 %v10164_v12, %v2297_v52  ;;  %v2940_v52 = vld [vmem:[#allocation3 + $0x4d] sm:$0xff] }
 0x376   : > { %v10236_v8 = vadd.f32 %v2321_v48, %v2233_v5  ;;  %v3059_v48 = vld [vmem:[#allocation3 + $0x3e] sm:$0xff]  ;;  %v10265_v62 = vpop.f32.mrf.mxu0 }
 0x378   : > { %6952 = vmatmul.msk.bf16.vlgmr.msrb.gmra.mxu2 %vm649_vm1, %v3067_v11 }
 0x37b   : > { %v2324_v31 = vpop.f32.mrf.mxu2 }
 0x37c   : > { %v10241_v29 = vpop.f32.mrf.mxu3  ;;  %v3069_v31 = vpack.c.bf16 %v3059_v48, %v3058_v13 }
 0x37d   : > { %v2236_v25 = vpop.f32.mrf.mxu1 }
 0x37e   : > { %v2938_v25 = vld [vmem:[#allocation3 + $0x3d] sm:$0xff] }
 0x380   : > { %6929 = vmatmul.msk.bf16.vlgmr.msrb.gmra.mxu1 %vm649_vm1, %v2946_v39  ;;  %v2937_v39 = vld [vmem:[#allocation3 + $0x35] sm:$0xff] }
 0x383   : > { %v2326_v21 = vpop.f32.mrf.mxu2 }
 0x384   : > { %v2432_v58 = vpop.f32.mrf.mxu3  ;;  %v2948_v21 = vpack.c.bf16 %v2938_v25, %v2937_v39 }
 0x385   : > { %v2238_v40 = vpop.f32.mrf.mxu1 }
 0x388   : > { %6953 = vmatmul.msk.bf16.gmra.mxu2 %vm649_vm1, %v3068_v19  ;;  %v3061_v19 = vld [vmem:[#allocation3 + $0x4e] sm:$0xff] }
 0x389   : > { %v3070_v9 = vpack.c.bf16 %v3061_v19, %v3060_v54 }
 0x38b   : > { %v2644_v55 = vpop.f32.mrf.mxu2 }
 0x38c   : > { %v2434_v61 = vpop.f32.mrf.mxu3 }
 0x38d   : > { %v2523_v35 = vpop.f32.mrf.mxu1 }
 0x38e   : > { %v2557_v7 = vadd.f32 %v2523_v35, %v10129_v37 }
 0x390   : > { %6930 = vmatmul.msk.bf16.gmra.mxu1 %vm649_vm1, %v2947_v15  ;;  %v2678_v51 = vadd.f32 %v2644_v55, %v2557_v7 }
 0x393   : > { %v2646_v38 = vpop.f32.mrf.mxu2 }
 0x394   : > { %v2765_v24 = vpop.f32.mrf.mxu3 }
 0x395   : > { %v10254_v10 = vadd.f32 %v2765_v24, %v2678_v51  ;;  %v2525_v5 = vpop.f32.mrf.mxu1  ;;  %v10275_v51 = vpop.f32.mrf.mxu0  ;;  %v2939_v24 = vld [vmem:[#allocation3 + $0x45] sm:$0xff] }
 0x396   : > { %v2558_v11 = vadd.f32 %v2525_v5, %v2437_v2  ;;  %v2949_v2 = vpack.c.bf16 %v2940_v52, %v2939_v24 }
 0x398   : > { %6954 = vmatmul.msk.bf16.gmra.mxu2 %vm649_vm1, %v3069_v31  ;;  %v10259_v37 = vadd.f32 %v2646_v38, %v2558_v11  ;;  %v3062_v11 = vld [vmem:[#allocation3 + $0x56] sm:$0xff]  ;;  %v3063_v31 = vld [vmem:[#allocation3 + $0x5e] sm:$0xff] }
 0x399   : > { %v3071_v39 = vpack.c.bf16 %v3063_v31, %v3062_v11 }
 0x39b   : > { %v2649_v63 = vpop.f32.mrf.mxu2 }
 0x39c   : > { %v10261_v49 = vpop.f32.mrf.mxu3 }
 0x39d   : > { %v2528_v20 = vpop.f32.mrf.mxu1 }
 0x39e   : > { %v2559_v12 = vadd.f32 %v2528_v20, %v10174_v36  ;;  %v10285_v20 = vpop.f32.mrf.mxu0 }
 0x3a0   : > { %6931 = vmatmul.msk.bf16.gmra.mxu1 %vm649_vm1, %v2948_v21  ;;  %v2680_v58 = vadd.f32 %v2649_v63, %v2559_v12  ;;  %v2941_v21 = vld [vmem:[#allocation3 + $0x55] sm:$0xff] }
 0x3a3   : > { %v2651_v40 = vpop.f32.mrf.mxu2 }
 0x3a4   : > { %v2770_v14 = vpop.f32.mrf.mxu3 }
 0x3a5   : > { %v10267_v61 = vadd.f32 %v2770_v14, %v2680_v58  ;;  %v2530_v55 = vpop.f32.mrf.mxu1  ;;  %v2942_v58 = vld [vmem:[#allocation3 + $0x5d] sm:$0xff] }
 0x3a6   : > { %v2560_v35 = vadd.f32 %v2530_v55, %v10177_v27  ;;  %v2950_v19 = vpack.c.bf16 %v2942_v58, %v2941_v21  ;;  %v10292_v55 = vpop.f32.mrf.mxu0 }
 0x3a8   : > { %6955 = vmatmul.msk.bf16.gmra.mxu2 %vm649_vm1, %v3070_v9  ;;  %v10271_v7 = vadd.f32 %v2651_v40, %v2560_v35  ;;  %v3064_v35 = vld [vmem:[#allocation3 + $0x66] sm:$0xff]  ;;  %v3065_v9 = vld [vmem:[#allocation3 + $0x6e] sm:$0xff] }
 0x3a9   : > { %v3072_v24 = vpack.c.bf16 %v3065_v9, %v3064_v35 }
 0x3ab   : > { %v2654_v36 = vpop.f32.mrf.mxu2 }
 0x3ac   : > { %v10273_v15 = vpop.f32.mrf.mxu3 }
 0x3ad   : > { %v2533_v38 = vpop.f32.mrf.mxu1 }
 0x3ae   : > { %v2561_v48 = vadd.f32 %v2533_v38, %v10190_v28 }
 0x3b0   : > { %6932 = vmatmul.msk.bf16.gmra.mxu1 %vm649_vm1, %v2949_v2  ;;  %v2682_v5 = vadd.f32 %v2654_v36, %v2561_v48  ;;  %v2943_v2 = vld [vmem:[#allocation3 + $0x65] sm:$0xff] }
 0x3b3   : > { %v10279_v27 = vpop.f32.mrf.mxu2 }
 0x3b4   : > { %v2775_v13 = vpop.f32.mrf.mxu3 }
 0x3b5   : > { %v10281_v63 = vadd.f32 %v2775_v13, %v2682_v5  ;;  %v10283_v25 = vpop.f32.mrf.mxu1  ;;  %v2944_v5 = vld [vmem:[#allocation3 + $0x6d] sm:$0xff] }
 0x3b6   : > { %v2951_v31 = vpack.c.bf16 %v2944_v5, %v2943_v2 }
 0x3b8   : > { %6956 = vmatmul.msk.bf16.gmra.mxu2 %vm649_vm1, %v3071_v39 }
 0x3bb   : > { %v2659_v12 = vpop.f32.mrf.mxu2 }
 0x3bc   : > { %v10288_v28 = vpop.f32.mrf.mxu3 }
 0x3bd   : > { %v2538_v40 = vpop.f32.mrf.mxu1 }
 0x3be   : > { %v2563_v14 = vadd.f32 %v2538_v40, %v10209_v46  ;;  %v3066_v40 = vld [vmem:[#allocation3 + $0x76] sm:$0xf] }
 0x3bf   : > { %v3073_v35 = vpack.c.bf16 %v3066_v40, %v3066_v40 }
 0x3c0   : > { %6933 = vmatmul.msk.bf16.gmra.mxu1 %vm649_vm1, %v2950_v19  ;;  %v2684_v54 = vadd.f32 %v2659_v12, %v2563_v14 }
 0x3c1   : > { %v2911_v46 = vpop.f32.mrf.mxu0 }
 0x3c3   : > { %v10295_v36 = vpop.f32.mrf.mxu2 }
 0x3c4   : > { %v2780_v52 = vpop.f32.mrf.mxu3 }
 0x3c5   : > { %v10297_v38 = vadd.f32 %v2780_v52, %v2684_v54  ;;  %v10299_v48 = vpop.f32.mrf.mxu1 }
 0x3c8   : > { %6957 = vmatmul.msk.bf16.gmra.mxu2 %vm649_vm1, %v3072_v24  ;;  %v2945_v24 = vld [vmem:[#allocation3 + $0x75] sm:$0xf] }
 0x3c9   : > { %v10309_v58 = vpop.f32.mrf.mxu0  ;;  %v2952_v2 = vpack.c.bf16 %v2945_v24, %v2945_v24 }
 0x3cb   : > { %v2664_v13 = vpop.f32.mrf.mxu2 }
 0x3cc   : > { %v10305_v11 = vpop.f32.mrf.mxu3 }
 0x3cd   : > { %v2543_v39 = vpop.f32.mrf.mxu1 }
 0x3ce   : > { %v2565_v12 = vadd.f32 %v2543_v39, %v10221_v50 }
 0x3d0   : > { %6934 = vmatmul.msk.bf16.gmra.mxu1 %vm649_vm1, %v2951_v31  ;;  %v2686_v21 = vadd.f32 %v2664_v13, %v2565_v12 }
 0x3d1   : > { %v2916_v52 = vpop.f32.mrf.mxu0 }
 0x3d2   : > { %v8488_v52 = vld [vmem:[%s11381_s7 + $0x30] sm:$0xff] }
 0x3d3   : > { %v10311_v14 = vpop.f32.mrf.mxu2  ;;  %3457 = vmatpush.bf16.msrb.mxu3 %v8488_v52  ;;  %v2800_v52 = vadd.f32 %v10261_v49, %v10259_v37  ;;  %v8501_v37 = vld [vmem:[%s11381_s7 + $0x98] sm:$0xff] }
 0x3d4   : > { %v2785_v19 = vpop.f32.mrf.mxu3  ;;  %3675 = vmatpush.bf16.msra.mxu0 %v8501_v37 }
 0x3d5   : > { %v10313_v54 = vadd.f32 %v2785_v19, %v2686_v21  ;;  %v10315_v9 = vpop.f32.mrf.mxu1 }
 0x3d8   : > { %6958 = vmatmul.msk.bf16.gmra.mxu2 %vm649_vm1, %v3073_v35 }
 0x3d9   : > { %v2918_v39 = vpop.f32.mrf.mxu0 }
 0x3db   : > { %v2669_v1 = vpop.f32.mrf.mxu2 }
 0x3dc   : > { %v10318_v50 = vpop.f32.mrf.mxu3 }
 0x3dd   : > { %v2548_v5 = vpop.f32.mrf.mxu1 }
 0x3de   : > { %v2567_v13 = vadd.f32 %v2548_v5, %v10234_v18 }
 0x3e0   : > { %6935 = vmatmul.msk.bf16.gmra.mxu1 %vm649_vm1, %v2952_v2  ;;  %v2688_v31 = vadd.f32 %v2669_v1, %v2567_v13 }
 0x3e3   : > { %v10322_v12 = vpop.f32.mrf.mxu2 }
 0x3e4   : > { %v2790_v21 = vpop.f32.mrf.mxu3 }
 0x3e5   : > { %v2809_v40 = vadd.f32 %v2790_v21, %v2688_v31  ;;  %v10324_v19 = vpop.f32.mrf.mxu1  ;;  %v2920_v31 = vadd.f32 %v10223_v56, %v10254_v10 }
 0x3e7   : > { %v10326_v35 = vadd.f32 %v2911_v46, %v2809_v40  ;;  %v10338_v40 = vld [vmem:[%s11427_s6] ss:$0 sm:$0xff] }
 0x3eb   : > { %v2674_v24 = vpop.f32.mrf.mxu2 }
 0x3ec   : > { %v10331_v6 = vpop.f32.mrf.mxu3 }
 0x3ed   : > { %v2553_v18 = vpop.f32.mrf.mxu1 }
 0x3f3   : > { %v2676_v2 = vpop.f32.mrf.mxu2 }
 0x3f4   : > { %v2795_v1 = vpop.f32.mrf.mxu3 }
 0x3f5   : > { %v2555_v5 = vpop.f32.mrf.mxu1 }
 0x3f6   : > { %v2921_v5 = vadd.f32 %v10230_v4, %v2800_v52 }
 0x3fb   : > { %v3128_v13 = vpop.f32.mrf.mxu2 }
 0x3fc   : > { %v2797_v39 = vpop.f32.mrf.mxu3 }
 0x3fd   : > { %v3007_v21 = vpop.f32.mrf.mxu1 }
 0x3fe   : > { %v3041_v46 = vadd.f32 %v3007_v21, %v2920_v31  ;;  %v8487_v21 = vld [vmem:[%s11381_s7 + $0x28] sm:$0xff] }
 0x3ff   : > { %3458 = vmatpush.bf16.msrb.mxu3 %v8487_v21 }
 0x400   : > { %v3162_v24 = vadd.f32 %v3128_v13, %v3041_v46 }
 0x402   : > { %v3178_v18 = vadd.f32 %v10338_v40, %v3162_v24 }
 0x403   : > { %v3130_v2 = vpop.f32.mrf.mxu2 }
 0x404   : > { %v3191_v1 = vmax.f32 %v3178_v18, 0.0  ;;  %v2802_v18 = vadd.f32 %v10273_v15, %v10271_v7 }
 0x405   : > { %v3009_v39 = vpop.f32.mrf.mxu1 }
 0x406   : > { %v3282_v56 = vmul.f32 %v9638_v53, %v3191_v1  ;;  %v3042_v10 = vadd.f32 %v3009_v39, %v2921_v5  ;;  %v2922_v53 = vadd.f32 %v10239_v32, %v10267_v61  ;;  %v10359_v1 = vpop.permute.xlu2 %3254 }
 0x408   : > { %3295 = vst.msk [vmem:[#allocation4 + $0xb] sm:$0xff] %vm649_vm1, %v3282_v56  ;;  %v3163_v31 = vadd.f32 %v3130_v2, %v3042_v10  ;;  %v2923_v10 = vadd.f32 %v10244_v60, %v2802_v18  ;;  %v2924_v60 = vadd.f32 %v10247_v59, %v10281_v63 }
 0x40a   : > { %v3179_v49 = vadd.f32 %v10338_v40, %v3163_v31 }
 0x40b   : > { %v3133_v4 = vpop.f32.mrf.mxu2 }
 0x40c   : > { %v3192_v13 = vmax.f32 %v3179_v49, 0.0 }
 0x40d   : > { %v3012_v46 = vpop.f32.mrf.mxu1 }
 0x40e   : > { %v3283_v52 = vmul.f32 %v9641_v43, %v3192_v13  ;;  %v3043_v24 = vadd.f32 %v3012_v46, %v2922_v53  ;;  %v2441_v43 = vadd.f32 %v10198_v23, %v10195_v41  ;;  %v3245_v37 = vpop.permute.xlu2 %3244 }
 0x410   : > { %3296 = vst.msk [vmem:[#allocation4 + $0x13] sm:$0xff] %vm649_vm1, %v3283_v52  ;;  %v3164_v2 = vadd.f32 %v3133_v4, %v3043_v24  ;;  %v2562_v15 = vadd.f32 %v10283_v25, %v2441_v43  ;;  %v8486_v25 = vld [vmem:[%s11381_s7 + $0x20] sm:$0xff]  ;;  %v8500_v52 = vld [vmem:[%s11381_s7 + $0x90] sm:$0xff] }
 0x411   : > { %3459 = vmatpush.bf16.msrb.mxu3 %v8486_v25  ;;  %3676 = vmatpush.bf16.msra.mxu0 %v8500_v52 }
 0x412   : > { %v3180_v5 = vadd.f32 %v10338_v40, %v3164_v2 }
 0x413   : > { %v3135_v39 = vpop.f32.mrf.mxu2 }
 0x414   : > { %v3193_v56 = vmax.f32 %v3180_v5, 0.0  ;;  %v2443_v5 = vadd.f32 %v10214_v22, %v10211_v34 }
 0x415   : > { %v3014_v31 = vpop.f32.mrf.mxu1 }
 0x416   : > { %v3284_v32 = vmul.f32 %v9609_v16, %v3193_v56  ;;  %v3044_v61 = vadd.f32 %v3014_v31, %v2923_v10  ;;  %v2683_v16 = vadd.f32 %v10279_v27, %v2562_v15  ;;  %v2564_v56 = vadd.f32 %v10299_v48, %v2443_v5 }
 0x418   : > { %3297 = vst.msk [vmem:[#allocation4 + $0x1b] sm:$0xff] %vm649_vm1, %v3284_v32  ;;  %v3165_v7 = vadd.f32 %v3135_v39, %v3044_v61  ;;  %v2804_v41 = vadd.f32 %v10288_v28, %v2683_v16  ;;  %v3240_v28 = vpop.permute.xlu2 %3239  ;;  %v2926_v61 = vadd.f32 %v10265_v62, %v10297_v38  ;;  %v2685_v43 = vadd.f32 %v10295_v36, %v2564_v56  ;;  %v8485_v16 = vld [vmem:[%s11381_s7 + $0x18] sm:$0xff] }
 0x419   : > { %v2445_v36 = vadd.f32 %v10228_v57, %v10225_v30  ;;  %3497 = vmatpush.bf16.msra.mxu3 %v8485_v16  ;;  %v2447_v56 = vadd.f32 %v10241_v29, %v10236_v8  ;;  %v8507_v8 = vld [vmem:[%s11381_s7 + $0xc8] sm:$0xff] }
 0x41a   : > { %v3181_v21 = vadd.f32 %v10338_v40, %v3165_v7  ;;  %v2925_v63 = vadd.f32 %v10256_v45, %v2804_v41 }
 0x41b   : > { %v3138_v49 = vpop.f32.mrf.mxu2 }
 0x41c   : > { %v3194_v4 = vmax.f32 %v3181_v21, 0.0  ;;  %v2806_v21 = vadd.f32 %v10305_v11, %v2685_v43 }
 0x41d   : > { %v3017_v13 = vpop.f32.mrf.mxu1 }
 0x41e   : > { %v3285_v53 = vmul.f32 %v9620_v3, %v3194_v4  ;;  %v3045_v46 = vadd.f32 %v3017_v13, %v2924_v60  ;;  %v2927_v4 = vadd.f32 %v10275_v51, %v2806_v21  ;;  %v8499_v51 = vld [vmem:[%s11381_s7 + $0x88] sm:$0xff] }
 0x41f   : > { %3677 = vmatpush.bf16.msra.mxu0 %v8499_v51 }
 0x420   : > { %3298 = vst.msk [vmem:[#allocation4 + $0x23] sm:$0xff] %vm649_vm1, %v3285_v53  ;;  %v3166_v23 = vadd.f32 %v3138_v49, %v3045_v46  ;;  %v2566_v53 = vadd.f32 %v10315_v9, %v2445_v36 }
 0x422   : > { %v3182_v59 = vadd.f32 %v10338_v40, %v3166_v23  ;;  %v2928_v23 = vadd.f32 %v10285_v20, %v10313_v54  ;;  %v2687_v52 = vadd.f32 %v10311_v14, %v2566_v53  ;;  %v8509_v20 = vld [vmem:[%s11381_s7 + $0xd8] sm:$0xff]  ;;  %v8483_v54 = vld [vmem:[%s11381_s7 + $0x8] sm:$0xff] }
 0x423   : > { %v3140_v27 = vpop.f32.mrf.mxu2 }
 0x424   : > { %v3195_v3 = vmax.f32 %v3182_v59, 0.0  ;;  %v2808_v9 = vadd.f32 %v10318_v50, %v2687_v52 }
 0x425   : > { %v3019_v24 = vpop.f32.mrf.mxu1 }
 0x426   : > { %v3286_v18 = vmul.f32 %v3240_v28, %v3195_v3  ;;  %v3046_v2 = vadd.f32 %v3019_v24, %v2925_v63  ;;  %v8484_v63 = vld [vmem:[%s11381_s7 + $0x10] sm:$0xff]  ;;  %v8498_v28 = vld [vmem:[%s11381_s7 + $0x80] sm:$0xff]  ;;  %v2929_v24 = vadd.f32 %v10292_v55, %v2808_v9  ;;  %v8517_v9 = vld [vmem:[%s11381_s7 + $0x118] sm:$0xff] }
 0x427   : > { %3498 = vmatpush.bf16.msra.mxu3 %v8484_v63  ;;  %3678 = vmatpush.bf16.msra.mxu0 %v8498_v28  ;;  %v8508_v55 = vld [vmem:[%s11381_s7 + $0xd0] sm:$0xff] }
 0x428   : > { %3299 = vst.msk [vmem:[#allocation4 + $0x2b] sm:$0xff] %vm649_vm1, %v3286_v18  ;;  %v3167_v39 = vadd.f32 %v3140_v27, %v3046_v2 }
 0x42a   : > { %v3183_v10 = vadd.f32 %v10338_v40, %v3167_v39  ;;  %v10434_v39 = vpop.permute.xlu2 %3274 }
 0x42b   : > { %v3143_v31 = vpop.f32.mrf.mxu2  ;;  %3789 = vmatpush.bf16.msrb.mxu0 %v8509_v20  ;;  %3499 = vmatpush.bf16.msra.mxu3 %v8483_v54  ;;  %v3393_v20 = vld [vmem:[#allocation4 + $0x1f] ss:$2 sm:$0xf] }
 0x42c   : > { %v3196_v32 = vmax.f32 %v3183_v10, 0.0 }
 0x42d   : > { %v3022_v45 = vpop.f32.mrf.mxu1 }
 0x42e   : > { %v3287_v7 = vmul.f32 %v3245_v37, %v3196_v32  ;;  %v3047_v15 = vadd.f32 %v3022_v45, %v2926_v61 }
 0x42f   : > { %3790 = vmatpush.bf16.msrb.mxu0 %v8508_v55  ;;  %v3630_v36 = vld [vmem:[#allocation4 + $0x2a] ss:$2 sm:$0xf] }
 0x430   : > { %3300 = vst.msk [vmem:[#allocation4 + $0x33] sm:$0xff] %vm649_vm1, %v3287_v7  ;;  %v3168_v34 = vadd.f32 %v3143_v31, %v3047_v15  ;;  %v8482_v31 = vld [vmem:[%s11381_s7] sm:$0xff]  ;;  %v3636_v53 = vrot.slane %v3630_v36, 4 }
 0x431   : > { %3500 = vmatpush.bf16.msra.mxu3 %v8482_v31  ;;  %v3391_v31 = vld [vmem:[#allocation4 + $0xb] ss:$2 sm:$0xf] }
 0x432   : > { %v3184_v22 = vadd.f32 %v10338_v40, %v3168_v34 }
 0x433   : > { %v3145_v48 = vpop.f32.mrf.mxu2  ;;  %3791 = vmatpush.bf16.msrb.mxu0 %v8507_v8 }
 0x434   : > { %v3197_v49 = vmax.f32 %v3184_v22, 0.0 }
 0x435   : > { %v3024_v60 = vpop.f32.mrf.mxu1 }
 0x436   : > { %v3288_v13 = vmul.f32 %v9660_v26, %v3197_v49  ;;  %v3048_v62 = vadd.f32 %v3024_v60, %v2927_v4  ;;  %v3411_v26 = vld [vmem:[#allocation4 + $0x20] ss:$2 sm:$0xf] }
 0x437   : > { %v10396_v38 = vld [vmem:[#allocation4 + $0x34] ss:$2 sm:$0xf]  ;;  %v3417_v21 = vrot.slane %v3411_v26, 4 }
 0x438   : > { %3301 = vst.msk [vmem:[#allocation4 + $0x3b] sm:$0xff] %vm649_vm1, %v3288_v13  ;;  %v3169_v11 = vadd.f32 %v3145_v48, %v3048_v62  ;;  %v3804_v37 = vrot.slane %v10396_v38, 4  ;;  %v8493_v13 = vld [vmem:[%s11381_s7 + $0x58] sm:$0xff] }
 0x43a   : > { %v3185_v46 = vadd.f32 %v10338_v40, %v3169_v11  ;;  %v10411_v30 = vsel %vm3404_vm3, %v3411_v26, %v3804_v37 }
 0x43b   : > { %v3148_v57 = vpop.f32.mrf.mxu2 }
 0x43c   : > { %v3198_v41 = vmax.f32 %v3185_v46, 0.0 }
 0x43d   : > { %v3027_v25 = vpop.f32.mrf.mxu1 }
 0x43e   : > { %v3289_v59 = vmul.f32 %v10359_v1, %v3198_v41  ;;  %v3049_v27 = vadd.f32 %v3027_v25, %v2928_v23  ;;  %v3628_v41 = vld [vmem:[#allocation4 + $0x16] ss:$2 sm:$0xf] }
 0x440   : > { %3302 = vst.msk [vmem:[#allocation4 + $0x43] sm:$0xff] %vm649_vm1, %v3289_v59  ;;  %v3170_v3 = vadd.f32 %v3148_v57, %v3049_v27  ;;  %v3641_v59 = vsel %vm3404_vm3, %v3628_v41, %v3636_v53  ;;  %v8491_v27 = vld [vmem:[%s11381_s7 + $0x48] sm:$0xff] }
 0x442   : > { %v3186_v14 = vadd.f32 %v10338_v40, %v3170_v3 }
 0x443   : > { %v3150_v50 = vpop.f32.mrf.mxu2 }
 0x444   : > { %v3199_v1 = vmax.f32 %v3186_v14, 0.0 }
 0x445   : > { %v3029_v18 = vpop.f32.mrf.mxu1 }
 0x446   : > { %v3290_v2 = vmul.f32 %v9622_v33, %v3199_v1  ;;  %v3050_v5 = vadd.f32 %v3029_v18, %v2929_v24  ;;  %v2568_v33 = vadd.f32 %v10324_v19, %v2447_v56  ;;  %v8506_v19 = vld [vmem:[%s11381_s7 + $0xc0] sm:$0xff]  ;;  %v3399_v1 = vrot.slane %v3393_v20, 4  ;;  %v8516_v18 = vld [vmem:[%s11381_s7 + $0x110] sm:$0xff] }
 0x447   : > { %3792 = vmatpush.bf16.msrb.mxu0 %v8506_v19  ;;  %v8490_v24 = vld [vmem:[%s11381_s7 + $0x40] sm:$0xff]  ;;  %v8496_v19 = vld [vmem:[%s11381_s7 + $0x70] sm:$0xff] }
 0x448   : > { %3303 = vst.msk [vmem:[#allocation4 + $0x4b] sm:$0xff] %vm649_vm1, %v3290_v2  ;;  %v3171_v10 = vadd.f32 %v3150_v50, %v3050_v5  ;;  %v2689_v43 = vadd.f32 %v10322_v12, %v2568_v33  ;;  %v10461_v12 = vpop.permute.xlu2 %4849  ;;  %v3395_v2 = vld [vmem:[#allocation4 + $0x33] ss:$2 sm:$0xf]  ;;  %v3405_v55 = vsel %vm3404_vm3, %v3391_v31, %v3399_v1  ;;  %v8497_v33 = vld [vmem:[%s11381_s7 + $0x78] sm:$0xff] }
 0x449   : > { %v8511_v1 = vld [vmem:[%s11381_s7 + $0xe8] sm:$0xff] }
 0x44a   : > { %v3187_v32 = vadd.f32 %v10338_v40, %v3171_v10  ;;  %v2810_v22 = vadd.f32 %v10331_v6, %v2689_v43  ;;  %v3688_v31 = vld [vmem:[#allocation4 + $0x17] ss:$2 sm:$0xf] }
 0x44b   : > { %v3153_v29 = vpop.f32.mrf.mxu2 }
 0x44c   : > { %v3200_v61 = vmax.f32 %v3187_v32, 0.0  ;;  %v2931_v11 = vadd.f32 %v10309_v58, %v2810_v22  ;;  %v3632_v58 = vld [vmem:[#allocation4 + $0x3e] ss:$2 sm:$0xf] }
 0x44d   : > { %v3032_v45 = vpop.f32.mrf.mxu1  ;;  %v8515_v32 = vld [vmem:[%s11381_s7 + $0x108] sm:$0xff] }
 0x44e   : > { %v3291_v7 = vmul.f32 %v9662_v17, %v3200_v61  ;;  %v3051_v15 = vadd.f32 %v3032_v45, %v10326_v35  ;;  %v3409_v17 = vld [vmem:[#allocation4 + $0xc] ss:$2 sm:$0xf] }
 0x44f   : > { %v10456_v34 = vld [vmem:[#allocation4 + $0x48] ss:$2 sm:$0xf]  ;;  %v3422_v4 = vsel %vm3404_vm3, %v3409_v17, %v3417_v21  ;;  %v3397_v25 = vld [vmem:[#allocation4 + $0x47] ss:$2 sm:$0xf] }
 0x450   : > { %3304 = vst.msk [vmem:[#allocation4 + $0x53] sm:$0xff] %vm649_vm1, %v3291_v7  ;;  %v3172_v48 = vadd.f32 %v3153_v29, %v3051_v15  ;;  %v3420_v49 = vrot.slane %v10456_v34, 4  ;;  %v10486_v3 = vpop.permute.xlu2 %6432  ;;  %v3750_v21 = vrot.slane %v3395_v2, 4  ;;  %v8495_v17 = vld [vmem:[%s11381_s7 + $0x68] sm:$0xff] }
 0x452   : > { %v3188_v35 = vadd.f32 %v10338_v40, %v3172_v48  ;;  %v3423_v60 = vsel %vm3404_vm3, %v10396_v38, %v3420_v49  ;;  %v8492_v38 = vld [vmem:[%s11381_s7 + $0x50] sm:$0xff]  ;;  %v3514_v48 = vld [vmem:[#allocation4 + $0x49] ss:$2 sm:$0xf]  ;;  %v3755_v49 = vsel %vm3404_vm3, %v3393_v20, %v3750_v21  ;;  %v8539_v21 = vld [vmem:[%s11383_s9 + $0xa8] sm:$0xff] }
 0x453   : > { %v3424_v6 = vpack.c.bf16 %v3423_v60, %v3422_v4  ;;  %v3155_v62 = vpop.f32.mrf.mxu2  ;;  %v3510_v4 = vld [vmem:[#allocation4 + $0x21] ss:$2 sm:$0xf]  ;;  %v3519_v60 = vrot.slane %v3514_v48, 4 }
 0x454   : > { %v3201_v37 = vmax.f32 %v3188_v35, 0.0 }
 0x455   : > { %v3034_v16 = vpop.f32.mrf.mxu1  ;;  %7039 = vmatmul.msk.bf16.vlgmr.msrb.gmra.mxu3 %vm649_vm1, %v3424_v6  ;;  %v8494_v6 = vld [vmem:[%s11381_s7 + $0x60] sm:$0xff] }
 0x456   : > { %v3292_v51 = vmul.f32 %v9666_v47, %v3201_v37  ;;  %v3052_v26 = vadd.f32 %v3034_v16, %v2931_v11  ;;  %3555 = vmatpush.bf16.msrb.mxu3 %v8493_v13  ;;  %v3516_v13 = vrot.slane %v3510_v4, 4  ;;  %v3508_v11 = vld [vmem:[#allocation4 + $0xd] ss:$2 sm:$0xf] }
 0x457   : > { %v3634_v46 = vld [vmem:[#allocation4 + $0x52] ss:$2 sm:$0xf]  ;;  %v3574_v41 = vld [vmem:[#allocation4 + $0x51] ss:$2 sm:$0xf] }
 0x458   : > { %3305 = vst.msk [vmem:[#allocation4 + $0x5b] sm:$0xff] %vm649_vm1, %v3292_v51  ;;  %v3173_v57 = vadd.f32 %v3155_v62, %v3052_v26  ;;  %v3639_v23 = vrot.slane %v3634_v46, 4  ;;  %v3280_v7 = vpop.permute.xlu2 %3279  ;;  %v3512_v62 = vld [vmem:[#allocation4 + $0x35] ss:$2 sm:$0xf]  ;;  %v3521_v16 = vsel %vm3404_vm3, %v3508_v11, %v3516_v13  ;;  %v8505_v51 = vld [vmem:[%s11381_s7 + $0xb8] sm:$0xff] }
 0x459   : > { %v3522_v36 = vsel %vm3404_vm3, %v3512_v62, %v3519_v60  ;;  %v8504_v46 = vld [vmem:[%s11381_s7 + $0xb0] sm:$0xff]  ;;  %v8547_v7 = vld [vmem:[%s11383_s9 + $0xe8] sm:$0xff]  ;;  %v8530_v11 = vld [vmem:[%s11383_s9 + $0x60] sm:$0xff] }
 0x45a   : > { %v3189_v52 = vadd.f32 %v10338_v40, %v3173_v57  ;;  %v3642_v47 = vsel %vm3404_vm3, %v3632_v58, %v3639_v23  ;;  %3556 = vmatpush.bf16.msrb.mxu3 %v8492_v38  ;;  %v3402_v40 = vrot.slane %v3397_v25, 4  ;;  %v3523_v26 = vpack.c.bf16 %v3522_v36, %v3521_v16  ;;  %v8503_v58 = vld [vmem:[%s11381_s7 + $0xa8] sm:$0xff]  ;;  %v8537_v16 = vld [vmem:[%s11383_s9 + $0x98] sm:$0xff] }
 0x45b   : > { %v3643_v63 = vpack.c.bf16 %v3642_v47, %v3641_v59  ;;  %v3158_v28 = vpop.f32.mrf.mxu2  ;;  %v3858_v38 = vrot.slane %v3512_v62, 4  ;;  %v3579_v59 = vrot.slane %v3574_v41, 4  ;;  %v8531_v60 = vld [vmem:[%s11383_s9 + $0x68] sm:$0xff]  ;;  %v8528_v41 = vld [vmem:[%s11383_s9 + $0x50] sm:$0xff] }
 0x45c   : > { %v3202_v14 = vmax.f32 %v3189_v52, 0.0  ;;  %v3406_v56 = vsel %vm3404_vm3, %v3395_v2, %v3402_v40  ;;  %v3570_v52 = vld [vmem:[#allocation4 + $0x29] ss:$2 sm:$0xf]  ;;  %v8523_v13 = vld [vmem:[%s11383_s9 + $0x28] sm:$0xff] }
 0x45d   : > { %v3037_v54 = vpop.f32.mrf.mxu1  ;;  %7107 = vmatmul.msk.bf16.vlgmr.msra.gmra.mxu0 %vm649_vm1, %v3643_v63  ;;  %v3407_v29 = vpack.c.bf16 %v3406_v56, %v3405_v55  ;;  %v3863_v23 = vsel %vm3404_vm3, %v3510_v4, %v3858_v38  ;;  %v3576_v47 = vrot.slane %v3570_v52, 4  ;;  %v3568_v28 = vld [vmem:[#allocation4 + $0x15] ss:$2 sm:$0xf]  ;;  %v8521_v38 = vld [vmem:[%s11383_s9 + $0x18] sm:$0xff]  ;;  %v8544_v52 = vld [vmem:[%s11383_s9 + $0xd0] sm:$0xff] }
 0x45e   : > { %v3293_v50 = vmul.f32 %v10434_v39, %v3202_v14  ;;  %3557 = vmatpush.bf16.msrb.mxu3 %v8491_v27  ;;  %3897 = vmatpush.bf16.msra.mxu0 %v8517_v9  ;;  %v8502_v27 = vld [vmem:[%s11381_s7 + $0xa0] sm:$0xff]  ;;  %v3572_v9 = vld [vmem:[#allocation4 + $0x3d] ss:$2 sm:$0xf]  ;;  %v8513_v14 = vld [vmem:[%s11381_s7 + $0xf8] sm:$0xff] }
 0x45f   : > { %v3802_v5 = vld [vmem:[#allocation4 + $0x5c] ss:$2 sm:$0xf]  ;;  %v3748_v39 = vld [vmem:[#allocation4 + $0x5b] ss:$2 sm:$0xf]  ;;  %v3582_v63 = vsel %vm3404_vm3, %v3572_v9, %v3579_v59  ;;  %v3581_v20 = vsel %vm3404_vm3, %v3568_v28, %v3576_v47 }
 0x460   : > { %3306 = vst.msk [vmem:[#allocation4 + $0x63] sm:$0xff] %vm649_vm1, %v3293_v50  ;;  %v3807_v10 = vrot.slane %v3802_v5, 4  ;;  %v3753_v43 = vrot.slane %v3748_v39, 4  ;;  %v3583_v40 = vpack.c.bf16 %v3582_v63, %v3581_v20  ;;  %v8512_v54 = vld [vmem:[%s11381_s7 + $0xf0] sm:$0xff]  ;;  %v8510_v5 = vld [vmem:[%s11381_s7 + $0xe0] sm:$0xff]  ;;  %v8527_v59 = vld [vmem:[%s11383_s9 + $0x48] sm:$0xff] }
 0x461   : > { %v3694_v50 = vld [vmem:[#allocation4 + $0x53] ss:$2 sm:$0xf]  ;;  %v3692_v56 = vld [vmem:[#allocation4 + $0x3f] ss:$2 sm:$0xf] }
 0x462   : > { %3558 = vmatpush.bf16.msrb.mxu3 %v8490_v24  ;;  %3898 = vmatpush.bf16.msra.mxu0 %v8516_v18  ;;  %v10507_v8 = vsel %vm3404_vm3, %v10456_v34, %v3807_v10  ;;  %v8514_v34 = vld [vmem:[%s11381_s7 + $0x100] sm:$0xff]  ;;  %v3756_v22 = vsel %vm3404_vm3, %v3397_v25, %v3753_v43  ;;  %v3699_v18 = vrot.slane %v3694_v50, 4  ;;  %v8548_v43 = vld [vmem:[%s11383_s9 + $0xf0] sm:$0xff]  ;;  %v8519_v47 = vld [vmem:[%s11383_s9 + $0x8] sm:$0xff] }
 0x463   : > { %v3811_v61 = vpack.c.bf16 %v10507_v8, %v10411_v30  ;;  %v3160_v45 = vpop.f32.mrf.mxu2  ;;  %v3757_v35 = vpack.c.bf16 %v3756_v22, %v3755_v49  ;;  %v3690_v24 = vld [vmem:[#allocation4 + $0x2b] ss:$2 sm:$0xf]  ;;  %v8540_v8 = vld [vmem:[%s11383_s9 + $0xb0] sm:$0xff]  ;;  %v8535_v9 = vld [vmem:[%s11383_s9 + $0x88] sm:$0xff] }
 0x464   : > { %v3696_v2 = vrot.slane %v3690_v24, 4  ;;  %v3702_v10 = vsel %vm3404_vm3, %v3692_v56, %v3699_v18  ;;  %v8532_v49 = vld [vmem:[%s11383_s9 + $0x70] sm:$0xff]  ;;  %v8538_v4 = vld [vmem:[%s11383_s9 + $0xa0] sm:$0xff]  ;;  %v8543_v63 = vld [vmem:[%s11383_s9 + $0xc8] sm:$0xff] }
 0x465   : > { %7056 = vmatmul.msk.bf16.vlgmr.msra.gmra.mxu3 %vm649_vm1, %v3407_v29  ;;  %v3039_v15 = vpop.f32.mrf.mxu1  ;;  %v8541_v29 = vld [vmem:[%s11383_s9 + $0xb8] sm:$0xff]  ;;  %v8542_v24 = vld [vmem:[%s11383_s9 + $0xc0] sm:$0xff] }
 0x466   : > { %3615 = vmatpush.bf16.msra.mxu3 %v8497_v33  ;;  %3899 = vmatpush.bf16.msra.mxu0 %v8515_v32  ;;  %v3701_v39 = vsel %vm3404_vm3, %v3688_v31, %v3696_v2  ;;  %v8549_v32 = vld [vmem:[%s11383_s9 + $0xf8] sm:$0xff] }
 0x467   : > { %v3856_v37 = vld [vmem:[#allocation4 + $0x5d] ss:$2 sm:$0xf]  ;;  %v3703_v55 = vpack.c.bf16 %v3702_v10, %v3701_v39  ;;  %4371 = vmatpush.bf16.msra.mxu2 %v8549_v32  ;;  %4287 = vmatpush.bf16.msra.mxu1 %v8541_v29  ;;  %v8557_v18 = vld [vmem:[%s11383_s9 + $0x138] sm:$0xff]  ;;  %v8782_v29 = vld [vmem:[%s11382_s8] ss:$0 sm:$0xff] }
 0x468   : > { %v3861_v53 = vrot.slane %v3856_v37, 4  ;;  %v8522_v37 = vld [vmem:[%s11383_s9 + $0x20] sm:$0xff]  ;;  %v8556_v10 = vld [vmem:[%s11383_s9 + $0x130] sm:$0xff] }
 0x46a   : > { %3616 = vmatpush.bf16.msra.mxu3 %v8496_v19  ;;  %3900 = vmatpush.bf16.msra.mxu0 %v8514_v34  ;;  %v3864_v57 = vsel %vm3404_vm3, %v3514_v48, %v3861_v53  ;;  %v8533_v19 = vld [vmem:[%s11383_s9 + $0x78] sm:$0xff] }
 0x46b   : > { %v3865_v25 = vpack.c.bf16 %v3864_v57, %v3863_v23  ;;  %4372 = vmatpush.bf16.msra.mxu2 %v8548_v43  ;;  %4288 = vmatpush.bf16.msra.mxu1 %v8540_v8  ;;  %v8525_v34 = vld [vmem:[%s11383_s9 + $0x38] sm:$0xff]  ;;  %v8520_v23 = vld [vmem:[%s11383_s9 + $0x10] sm:$0xff] }
 0x46c   : > { %v8529_v53 = vld [vmem:[%s11383_s9 + $0x58] sm:$0xff] }
 0x46d   : > { %7141 = vmatmul.msk.bf16.vlgmr.msrb.gmra.mxu0 %vm649_vm1, %v3757_v35  ;;  %v8546_v35 = vld [vmem:[%s11383_s9 + $0xe0] sm:$0xff]  ;;  %v8565_v8 = vld [vmem:[%s11383_s9 + $0x178] sm:$0xff] }
 0x46e   : > { %3617 = vmatpush.bf16.msra.mxu3 %v8495_v17  ;;  %4208 = vmatpush.bf16.msrb.mxu0 %v8525_v34  ;;  %v8524_v17 = vld [vmem:[%s11383_s9 + $0x30] sm:$0xff] }
 0x46f   : > { %4373 = vmatpush.bf16.msra.mxu2 %v8547_v7  ;;  %4289 = vmatpush.bf16.msra.mxu1 %v8539_v21  ;;  %v8581_v7 = vld [vmem:[%s11383_s9 + $0x1f8] sm:$0xff]  ;;  %v8554_v21 = vld [vmem:[%s11383_s9 + $0x120] sm:$0xff] }
 0x472   : > { %3618 = vmatpush.bf16.msra.mxu3 %v8494_v6  ;;  %4209 = vmatpush.bf16.msrb.mxu0 %v8524_v17 }
 0x473   : > { %4374 = vmatpush.bf16.msra.mxu2 %v8546_v35  ;;  %4290 = vmatpush.bf16.msra.mxu1 %v8538_v4 }
 0x475   : > { %7073 = vmatmul.msk.bf16.vlgmr.msrb.gmra.mxu3 %vm649_vm1, %v3523_v26 }
 0x476   : > { %3735 = vmatpush.bf16.msrb.mxu3 %v8505_v51  ;;  %4210 = vmatpush.bf16.msrb.mxu0 %v8523_v13  ;;  %v8545_v51 = vld [vmem:[%s11383_s9 + $0xd8] sm:$0xff]  ;;  %v8563_v13 = vld [vmem:[%s11383_s9 + $0x168] sm:$0xff] }
 0x477   : > { %4291 = vmatpush.bf16.msra.mxu1 %v8537_v16  ;;  %4375 = vmatpush.bf16.msra.mxu2 %v8545_v51  ;;  %v4231_v16 = vld [vmem:[#allocation5 + $0x2] sm:$0xff]  ;;  %v8562_v51 = vld [vmem:[%s11383_s9 + $0x160] sm:$0xff] }
 0x47a   : > { %3736 = vmatpush.bf16.msrb.mxu3 %v8504_v46  ;;  %4211 = vmatpush.bf16.msrb.mxu0 %v8522_v37  ;;  %v4081_v37 = vld [vmem:[#allocation5 + $0x1] sm:$0xff] }
 0x47b   : > { %4376 = vmatpush.bf16.msra.mxu2 %v8544_v52 }
 0x47d   : > { %7175 = vmatmul.msk.bf16.vlgmr.msra.gmra.mxu0 %vm649_vm1, %v3865_v25 }
 0x47e   : > { %3737 = vmatpush.bf16.msrb.mxu3 %v8503_v58  ;;  %4212 = vmatpush.bf16.msrb.mxu0 %v8521_v38  ;;  %v8536_v58 = vld [vmem:[%s11383_s9 + $0x90] sm:$0xff] }
 0x47f   : > { %4292 = vmatpush.bf16.msra.mxu1 %v8536_v58  ;;  %4377 = vmatpush.bf16.msra.mxu2 %v8543_v63  ;;  %v4315_v38 = vld [vmem:[#allocation5 + $0x6] sm:$0xff] }
 0x480   : > { %v8787_v58 = vld [vmem:[#allocation5] sm:$0xff]  ;;  %v8561_v63 = vld [vmem:[%s11383_s9 + $0x158] sm:$0xff] }
 0x482   : > { %3738 = vmatpush.bf16.msrb.mxu3 %v8502_v27  ;;  %4213 = vmatpush.bf16.msrb.mxu0 %v8520_v23 }
 0x483   : > { %4293 = vmatpush.bf16.msra.mxu1 %v8535_v9  ;;  %4378 = vmatpush.bf16.msra.mxu2 %v8542_v24  ;;  %v8576_v24 = vld [vmem:[%s11383_s9 + $0x1d0] sm:$0xff] }
 0x485   : > { %7090 = vmatmul.msk.bf16.vlgmr.msra.gmra.mxu3 %vm649_vm1, %v3583_v40  ;;  %v8518_v40 = vld [vmem:[%s11383_s9] sm:$0xff] }
 0x486   : > { %3843 = vmatpush.bf16.msra.mxu3 %v8513_v14  ;;  %4214 = vmatpush.bf16.msrb.mxu0 %v8519_v47  ;;  %v8526_v14 = vld [vmem:[%s11383_s9 + $0x40] sm:$0xff] }
 0x487   : > { %4707 = vmatpush.bf16.msrb.mxu2 %v8581_v7  ;;  %v8570_v47 = vld [vmem:[%s11383_s9 + $0x1a0] sm:$0xff] }
 0x48a   : > { %3844 = vmatpush.bf16.msra.mxu3 %v8512_v54  ;;  %4215 = vmatpush.bf16.msrb.mxu0 %v8518_v40  ;;  %v8560_v40 = vld [vmem:[%s11383_s9 + $0x150] sm:$0xff] }
 0x48e   : > { %3845 = vmatpush.bf16.msra.mxu3 %v8511_v1  ;;  %v8534_v1 = vld [vmem:[%s11383_s9 + $0x80] sm:$0xff]  ;;  %4539 = vmatpush.bf16.msra.mxu0 %v8565_v8 }
 0x48f   : > { %4294 = vmatpush.bf16.msra.mxu1 %v8534_v1  ;;  %v8568_v1 = vld [vmem:[%s11383_s9 + $0x190] sm:$0xff]  ;;  %v8566_v8 = vld [vmem:[%s11383_s9 + $0x180] sm:$0xff] }
 0x492   : > { %3846 = vmatpush.bf16.msra.mxu3 %v8510_v5 }
 0x495   : > { %7124 = vmatmul.msk.bf16.vlgmr.msrb.gmra.mxu3 %vm649_vm1, %v3703_v55 }
 0x496   : > { %4137 = vmatpush.bf16.msrb.mxu3 %v8533_v19  ;;  %v8564_v19 = vld [vmem:[%s11383_s9 + $0x170] sm:$0xff] }
 0x497   : > { %4540 = vmatpush.bf16.msra.mxu0 %v8564_v19  ;;  %v8588_v19 = vld [vmem:[%s11383_s9 + $0x230] sm:$0xff] }
 0x49a   : > { %4138 = vmatpush.bf16.msrb.mxu3 %v8532_v49  ;;  %v8580_v49 = vld [vmem:[%s11383_s9 + $0x1f0] sm:$0xff] }
 0x49b   : > { %4708 = vmatpush.bf16.msrb.mxu2 %v8580_v49  ;;  %4541 = vmatpush.bf16.msra.mxu0 %v8563_v13 }
 0x49e   : > { %4139 = vmatpush.bf16.msrb.mxu3 %v8531_v60  ;;  %v8553_v60 = vld [vmem:[%s11383_s9 + $0x118] sm:$0xff] }
 0x49f   : > { %4542 = vmatpush.bf16.msra.mxu0 %v8562_v51 }
 0x4a2   : > { %4140 = vmatpush.bf16.msrb.mxu3 %v8530_v11 }
 0x4a3   : > { %4543 = vmatpush.bf16.msra.mxu0 %v8561_v63 }
 0x4a5   : > { %7158 = vmatmul.msk.bf16.vlgmr.msra.gmra.mxu3 %vm649_vm1, %v3811_v61 }
 0x4a6   : > { %4141 = vmatpush.bf16.msrb.mxu3 %v8529_v53 }
 0x4a7   : > { %4544 = vmatpush.bf16.msra.mxu0 %v8560_v40 }
 0x4aa   : > { %4142 = vmatpush.bf16.msrb.mxu3 %v8528_v41 }
 0x4ae   : > { %4143 = vmatpush.bf16.msrb.mxu3 %v8527_v59 }
 0x4b2   : > { %4144 = vmatpush.bf16.msrb.mxu3 %v8526_v14  ;;  %v8551_v14 = vld [vmem:[%s11383_s9 + $0x108] sm:$0xff] }
 0x4b6   : > { %4455 = vmatpush.bf16.msra.mxu3 %v8557_v18 }
 0x4ba   : > { %4456 = vmatpush.bf16.msra.mxu3 %v8556_v10 }
 0x4d8   : > { %v3461_v33 = vpop.f32.mrf.mxu3 }
 0x4da   : > { %v3680_v22 = vpop.f32.mrf.mxu0 }
 0x4e0   : > { %v10573_v45 = vpop.f32.mrf.mxu3 }
 0x4e2   : > { %v3682_v62 = vpop.f32.mrf.mxu0 }
 0x4e8   : > { %v3502_v30 = vpop.f32.mrf.mxu3 }
 0x4e9   : > { %v3503_v57 = vadd.f32 %v3502_v30, %v3461_v33 }
 0x4ea   : > { %v3794_v26 = vpop.f32.mrf.mxu0 }
 0x4f0   : > { %v3504_v61 = vpop.f32.mrf.mxu3 }
 0x4f1   : > { %v3505_v54 = vadd.f32 %v3504_v61, %v10573_v45  ;;  %v8555_v45 = vld [vmem:[%s11383_s9 + $0x128] sm:$0xff]  ;;  %v8573_v61 = vld [vmem:[%s11383_s9 + $0x1b8] sm:$0xff] }
 0x4f2   : > { %v3796_v28 = vpop.f32.mrf.mxu0  ;;  %4457 = vmatpush.bf16.msra.mxu3 %v8555_v45  ;;  %4623 = vmatpush.bf16.msrb.mxu1 %v8573_v61  ;;  %v8574_v61 = vld [vmem:[%s11383_s9 + $0x1c0] sm:$0xff] }
 0x4f6   : > { %4458 = vmatpush.bf16.msra.mxu3 %v8554_v21  ;;  %v8589_v21 = vld [vmem:[%s11383_s9 + $0x238] sm:$0xff] }
 0x4f8   : > { %v3560_v15 = vpop.f32.mrf.mxu3 }
 0x4f9   : > { %v3565_v25 = vadd.f32 %v3560_v15, %v3503_v57 }
 0x4fa   : > { %v3902_v39 = vpop.f32.mrf.mxu0  ;;  %4459 = vmatpush.bf16.msra.mxu3 %v8553_v60 }
 0x500   : > { %v3562_v48 = vpop.f32.mrf.mxu3 }
 0x501   : > { %v3566_v2 = vadd.f32 %v3562_v48, %v3505_v54  ;;  %v8572_v48 = vld [vmem:[%s11383_s9 + $0x1b0] sm:$0xff]  ;;  %v8550_v54 = vld [vmem:[%s11383_s9 + $0x100] sm:$0xff] }
 0x502   : > { %v3904_v4 = vpop.f32.mrf.mxu0  ;;  %4624 = vmatpush.bf16.msrb.mxu1 %v8572_v48 }
 0x508   : > { %v3620_v6 = vpop.f32.mrf.mxu3 }
 0x509   : > { %v3625_v27 = vadd.f32 %v3620_v6, %v3565_v25 }
 0x50b   : > { %v3685_v50 = vadd.f32 %v3680_v22, %v3625_v27  ;;  %v8578_v27 = vld [vmem:[%s11383_s9 + $0x1e0] sm:$0xff] }
 0x510   : > { %v3622_v36 = vpop.f32.mrf.mxu3 }
 0x511   : > { %v3626_v56 = vadd.f32 %v3622_v36, %v3566_v2  ;;  %v8579_v36 = vld [vmem:[%s11383_s9 + $0x1e8] sm:$0xff] }
 0x512   : > { %4709 = vmatpush.bf16.msrb.mxu2 %v8579_v36  ;;  %v8559_v2 = vld [vmem:[%s11383_s9 + $0x148] sm:$0xff]  ;;  %v8584_v36 = vld [vmem:[%s11383_s9 + $0x210] sm:$0xff] }
 0x513   : > { %v3686_v33 = vadd.f32 %v3682_v62, %v3626_v56  ;;  %v8571_v62 = vld [vmem:[%s11383_s9 + $0x1a8] sm:$0xff]  ;;  %4545 = vmatpush.bf16.msra.mxu0 %v8559_v2  ;;  %v4655_v2 = vld [vmem:[#allocation5 + $0x2d] sm:$0xf] }
 0x514   : > { %4625 = vmatpush.bf16.msrb.mxu1 %v8571_v62  ;;  %v8575_v56 = vld [vmem:[%s11383_s9 + $0x1c8] sm:$0xff]  ;;  %v8585_v62 = vld [vmem:[%s11383_s9 + $0x218] sm:$0xff] }
 0x516   : > { %4710 = vmatpush.bf16.msrb.mxu2 %v8578_v27 }
 0x518   : > { %v3740_v46 = vpop.f32.mrf.mxu3  ;;  %4626 = vmatpush.bf16.msrb.mxu1 %v8570_v47 }
 0x519   : > { %v3745_v5 = vadd.f32 %v3740_v46, %v3685_v50 }
 0x51b   : > { %v3799_v31 = vadd.f32 %v3794_v26, %v3745_v5  ;;  %v8552_v26 = vld [vmem:[%s11383_s9 + $0x110] sm:$0xff]  ;;  %v8567_v5 = vld [vmem:[%s11383_s9 + $0x188] sm:$0xff] }
 0x51c   : > { %4460 = vmatpush.bf16.msra.mxu3 %v8552_v26 }
 0x520   : > { %v3742_v20 = vpop.f32.mrf.mxu3  ;;  %4461 = vmatpush.bf16.msra.mxu3 %v8551_v14 }
 0x521   : > { %v3746_v43 = vadd.f32 %v3742_v20, %v3686_v33  ;;  %v8577_v20 = vld [vmem:[%s11383_s9 + $0x1d8] sm:$0xff] }
 0x522   : > { %4711 = vmatpush.bf16.msrb.mxu2 %v8577_v20 }
 0x523   : > { %v3800_v22 = vadd.f32 %v3796_v28, %v3746_v43  ;;  %v8569_v28 = vld [vmem:[%s11383_s9 + $0x198] sm:$0xff] }
 0x524   : > { %4627 = vmatpush.bf16.msrb.mxu1 %v8569_v28  ;;  %4462 = vmatpush.bf16.msra.mxu3 %v8550_v54  ;;  %v4654_v28 = vld [vmem:[#allocation5 + $0x25] sm:$0xff] }
 0x526   : > { %4712 = vmatpush.bf16.msrb.mxu2 %v8576_v24  ;;  %v4487_v24 = vld [vmem:[#allocation5 + $0x28] sm:$0xf] }
 0x528   : > { %v3848_v55 = vpop.f32.mrf.mxu3  ;;  %4628 = vmatpush.bf16.msrb.mxu1 %v8568_v1  ;;  %v4403_v1 = vld [vmem:[#allocation5 + $0x27] sm:$0xf] }
 0x529   : > { %v3853_v32 = vadd.f32 %v3848_v55, %v3799_v31 }
 0x52a   : > { %4713 = vmatpush.bf16.msrb.mxu2 %v8575_v56  ;;  %v4406_v56 = vpack.c.bf16 %v4403_v1, %v4403_v1 }
 0x52b   : > { %v3907_v30 = vadd.f32 %v3902_v39, %v3853_v32  ;;  %v8558_v39 = vld [vmem:[%s11383_s9 + $0x140] sm:$0xff] }
 0x52c   : > { %4629 = vmatpush.bf16.msrb.mxu1 %v8567_v5  ;;  %4546 = vmatpush.bf16.msra.mxu0 %v8558_v39  ;;  %v4571_v5 = vld [vmem:[#allocation5 + $0x2c] sm:$0xf]  ;;  %v4658_v39 = vpack.c.bf16 %v4655_v2, %v4655_v2  ;;  %v8594_v2 = vld [vmem:[%s11385_s11 + $0x20] sm:$0xff] }
 0x52d   : > { %v3912_v15 = vadd.f32 %v8782_v29, %v3907_v30 }
 0x52e   : > { %4714 = vmatpush.bf16.msrb.mxu2 %v8574_v61 }
 0x52f   : > { %v3914_v34 = vmax.f32 %v3912_v15, 0.0 }
 0x530   : > { %v3850_v17 = vpop.f32.mrf.mxu3  ;;  %4630 = vmatpush.bf16.msrb.mxu1 %v8566_v8 }
 0x531   : > { %3916 = vst [vmem:[#allocation5 + $0xe] sm:$0xf] %v3914_v34  ;;  %v3854_v35 = vadd.f32 %v3850_v17, %v3800_v22  ;;  %v4319_v22 = vld [vmem:[#allocation5 + $0x26] sm:$0xf] }
 0x532   : > { %3917 = vst [vmem:[#allocation5 + $0x10] sm:$0xf0] %v3914_v34  ;;  %v8587_v34 = vld [vmem:[%s11383_s9 + $0x228] sm:$0xff] }
 0x533   : > { %v3908_v6 = vadd.f32 %v3904_v4, %v3854_v35  ;;  %v4322_v35 = vpack.c.bf16 %v4319_v22, %v4319_v22 }
 0x535   : > { %v3913_v11 = vadd.f32 %v8782_v29, %v3908_v6  ;;  %v8586_v6 = vld [vmem:[%s11383_s9 + $0x220] sm:$0xff] }
 0x537   : > { %v3915_v53 = vmax.f32 %v3913_v11, 0.0 }
 0x538   : > { %v4082_v46 = vld [vmem:[#allocation5 + $0x9] sm:$0xff] }
 0x539   : > { %v10717_v57 = vld [vmem:[#allocation5 + $0x8] sm:$0xff]  ;;  %3918 = vst [vmem:[#allocation5 + $0x1a] sm:$0xf] %v3915_v53  ;;  %v4086_v23 = vpack.c.bf16 %v4082_v46, %v4081_v37  ;;  %v4083_v32 = vld [vmem:[#allocation5 + $0x11] sm:$0xff] }
 0x53a   : > { %v4232_v41 = vld [vmem:[#allocation5 + $0xa] sm:$0xff]  ;;  %v4078_v25 = vpack.c.bf16 %v10717_v57, %v8787_v58  ;;  %3919 = vst [vmem:[#allocation5 + $0x1c] sm:$0xf0] %v3915_v53  ;;  %v4233_v30 = vld [vmem:[#allocation5 + $0x12] sm:$0xff] }
 0x53b   : > { %v4236_v52 = vpack.c.bf16 %v4232_v41, %v4231_v16  ;;  %v10720_v59 = vld [vmem:[#allocation5 + $0xe] sm:$0xff]  ;;  %4145 = vmatmul.bf16.vlgmr.msrb.gmra.mxu3 %v4086_v23  ;;  %v8583_v58 = vld [vmem:[%s11383_s9 + $0x208] sm:$0xff] }
 0x53c   : > { %v4320_v9 = vpack.c.bf16 %v10720_v59, %v4315_v38  ;;  %4216 = vmatmul.bf16.vlgmr.msrb.gmra.mxu0 %v4078_v25  ;;  %v4075_v29 = vld [vmem:[#allocation5 + $0x10] sm:$0xff]  ;;  %4791 = vmatpush.bf16.msrb.mxu3 %v8589_v21  ;;  %v4399_v11 = vld [vmem:[#allocation5 + $0x7] sm:$0xff] }
 0x53d   : > { %4295 = vmatmul.bf16.vlgmr.msra.gmra.mxu1 %v4236_v52  ;;  %v4400_v37 = vld [vmem:[#allocation5 + $0xf] sm:$0xff]  ;;  %v4488_v53 = vpack.c.bf16 %v4075_v29, %v10717_v57  ;;  %v4570_v52 = vld [vmem:[#allocation5 + $0x24] sm:$0xff] }
 0x53e   : > { %4379 = vmatmul.bf16.vlgmr.msra.gmra.mxu2 %v4320_v9  ;;  %v4404_v26 = vpack.c.bf16 %v4400_v37, %v4399_v11  ;;  %v4567_v38 = vld [vmem:[#allocation5 + $0xc] sm:$0xff] }
 0x53f   : > { %v4651_v46 = vld [vmem:[#allocation5 + $0xd] sm:$0xff] }
 0x540   : > { %v10747_v50 = vld [vmem:[#allocation5 + $0x16] sm:$0xff]  ;;  %4792 = vmatpush.bf16.msrb.mxu3 %v8588_v19 }
 0x541   : > { %v4740_v18 = vpack.c.bf16 %v10747_v50, %v10720_v59  ;;  %v4084_v10 = vld [vmem:[#allocation5 + $0x19] sm:$0xff]  ;;  %v4085_v48 = vld [vmem:[#allocation5 + $0x21] sm:$0xf]  ;;  %v8582_v25 = vld [vmem:[%s11383_s9 + $0x200] sm:$0xff] }
 0x542   : > { %v10766_v31 = vld [vmem:[#allocation5 + $0x18] sm:$0xff]  ;;  %v4087_v45 = vpack.c.bf16 %v4084_v10, %v4083_v32  ;;  %v4077_v49 = vld [vmem:[#allocation5 + $0x20] sm:$0xf]  ;;  %v4088_v4 = vpack.c.bf16 %v4085_v48, %v4085_v48  ;;  %v4490_v10 = vpack.c.bf16 %v4487_v24, %v4487_v24  ;;  %v8602_v24 = vld [vmem:[%s11385_s11 + $0x60] sm:$0xff] }
 0x543   : > { %v4234_v55 = vld [vmem:[#allocation5 + $0x1a] sm:$0xff]  ;;  %v4079_v43 = vpack.c.bf16 %v10766_v31, %v4075_v29  ;;  %v4235_v17 = vld [vmem:[#allocation5 + $0x22] sm:$0xf]  ;;  %v4080_v60 = vpack.c.bf16 %v4077_v49, %v4077_v49  ;;  %v4739_v29 = vld [vmem:[#allocation5 + $0x2e] sm:$0xf] }
 0x544   : > { %v10771_v33 = vld [vmem:[#allocation5 + $0x1e] sm:$0xff]  ;;  %v4237_v7 = vpack.c.bf16 %v4234_v55, %v4233_v30  ;;  %4793 = vmatpush.bf16.msrb.mxu3 %v8587_v34  ;;  %v4238_v13 = vpack.c.bf16 %v4235_v17, %v4235_v17  ;;  %v4568_v16 = vld [vmem:[#allocation5 + $0x14] sm:$0xff]  ;;  %v4574_v55 = vpack.c.bf16 %v4571_v5, %v4571_v5  ;;  %v8613_v5 = vld [vmem:[%s11385_s11 + $0xb8] sm:$0xff] }
 0x545   : > { %v4321_v15 = vpack.c.bf16 %v10771_v33, %v10747_v50  ;;  %v4652_v51 = vld [vmem:[#allocation5 + $0x15] sm:$0xff]  ;;  %v4572_v41 = vpack.c.bf16 %v4568_v16, %v4567_v38  ;;  %v4402_v47 = vld [vmem:[#allocation5 + $0x1f] sm:$0xff]  ;;  %5223 = vmatpush.bf16.msra.mxu2 %v8613_v5 }
 0x546   : > { %v4656_v23 = vpack.c.bf16 %v4652_v51, %v4651_v46  ;;  %v4401_v57 = vld [vmem:[#allocation5 + $0x17] sm:$0xff]  ;;  %v4486_v27 = vld [vmem:[#allocation5 + $0x20] sm:$0xff] }
 0x547   : > { %v4569_v9 = vld [vmem:[#allocation5 + $0x1c] sm:$0xff]  ;;  %v4405_v20 = vpack.c.bf16 %v4402_v47, %v4401_v57  ;;  %v4489_v14 = vpack.c.bf16 %v4486_v27, %v10766_v31  ;;  %v4738_v31 = vld [vmem:[#allocation5 + $0x26] sm:$0xff] }
 0x548   : > { %4794 = vmatpush.bf16.msrb.mxu3 %v8586_v6  ;;  %v4653_v63 = vld [vmem:[#allocation5 + $0x1d] sm:$0xff]  ;;  %v4573_v40 = vpack.c.bf16 %v4570_v52, %v4569_v9  ;;  %v4741_v32 = vpack.c.bf16 %v4738_v31, %v10771_v33 }
 0x549   : > { %v4657_v54 = vpack.c.bf16 %v4654_v28, %v4653_v63  ;;  %v8604_v9 = vld [vmem:[%s11385_s11 + $0x70] sm:$0xff] }
 0x54a   : > { %v8596_v63 = vld [vmem:[%s11385_s11 + $0x30] sm:$0xff] }
 0x54b   : > { %4150 = vmatmul.bf16.gmra.mxu3 %v4087_v45  ;;  %v4742_v45 = vpack.c.bf16 %v4739_v29, %v4739_v29  ;;  %v8624_v5 = vld [vmem:[%s11385_s11 + $0x110] sm:$0xff] }
 0x54c   : > { %4221 = vmatmul.bf16.gmra.mxu0 %v4079_v43  ;;  %4795 = vmatpush.bf16.msrb.mxu3 %v8585_v62 }
 0x54d   : > { %4300 = vmatmul.bf16.gmra.mxu1 %v4237_v7 }
 0x54e   : > { %4384 = vmatmul.bf16.gmra.mxu2 %v4321_v15 }
 0x550   : > { %4796 = vmatpush.bf16.msrb.mxu3 %v8584_v36 }
 0x554   : > { %4797 = vmatpush.bf16.msrb.mxu3 %v8583_v58  ;;  %v8605_v58 = vld [vmem:[%s11385_s11 + $0x78] sm:$0xff] }
 0x555   : > { %5092 = vmatpush.bf16.msrb.mxu0 %v8605_v58  ;;  %v8618_v58 = vld [vmem:[%s11385_s11 + $0xe0] sm:$0xff] }
 0x558   : > { %4798 = vmatpush.bf16.msrb.mxu3 %v8582_v25  ;;  %v8597_v25 = vld [vmem:[%s11385_s11 + $0x38] sm:$0xff] }
 0x559   : > { %5153 = vmatpush.bf16.msra.mxu1 %v8597_v25  ;;  %5093 = vmatpush.bf16.msrb.mxu0 %v8604_v9  ;;  %v8617_v9 = vld [vmem:[%s11385_s11 + $0xd8] sm:$0xff] }
 0x55b   : > { %4155 = vmatmul.bf16.gmra.mxu3 %v4088_v4 }
 0x55c   : > { %4226 = vmatmul.bf16.gmra.mxu0 %v4080_v60 }
 0x55d   : > { %4305 = vmatmul.bf16.gmra.mxu1 %v4238_v13 }
 0x55e   : > { %4389 = vmatmul.bf16.gmra.mxu2 %v4322_v35  ;;  %5154 = vmatpush.bf16.msra.mxu1 %v8596_v63  ;;  %v8625_v63 = vld [vmem:[%s11385_s11 + $0x118] sm:$0xff] }
 0x56b   : > { %4463 = vmatmul.bf16.vlgmr.msra.gmra.mxu3 %v4404_v26 }
 0x56c   : > { %4547 = vmatmul.bf16.vlgmr.msra.gmra.mxu0 %v4488_v53 }
 0x56d   : > { %4631 = vmatmul.bf16.vlgmr.msrb.gmra.mxu1 %v4572_v41 }
 0x56e   : > { %4715 = vmatmul.bf16.vlgmr.msrb.gmra.mxu2 %v4656_v23 }
 0x57b   : > { %4468 = vmatmul.bf16.gmra.mxu3 %v4405_v20 }
 0x57c   : > { %4552 = vmatmul.bf16.gmra.mxu0 %v4489_v14  ;;  %v8603_v14 = vld [vmem:[%s11385_s11 + $0x68] sm:$0xff] }
 0x57d   : > { %4636 = vmatmul.bf16.gmra.mxu1 %v4573_v40  ;;  %v8595_v40 = vld [vmem:[%s11385_s11 + $0x28] sm:$0xff]  ;;  %5094 = vmatpush.bf16.msrb.mxu0 %v8603_v14 }
 0x57e   : > { %4720 = vmatmul.bf16.gmra.mxu2 %v4657_v54  ;;  %5155 = vmatpush.bf16.msra.mxu1 %v8595_v40 }
 0x581   : > { %5095 = vmatpush.bf16.msrb.mxu0 %v8602_v24  ;;  %v8606_v24 = vld [vmem:[%s11385_s11 + $0x80] sm:$0xff] }
 0x582   : > { %5156 = vmatpush.bf16.msra.mxu1 %v8594_v2  ;;  %v8616_v2 = vld [vmem:[%s11385_s11 + $0xd0] sm:$0xff] }
 0x58b   : > { %4473 = vmatmul.bf16.gmra.mxu3 %v4406_v56 }
 0x58c   : > { %4557 = vmatmul.bf16.gmra.mxu0 %v4490_v10 }
 0x58d   : > { %4641 = vmatmul.bf16.gmra.mxu1 %v4574_v55  ;;  %v8593_v55 = vld [vmem:[%s11385_s11 + $0x18] sm:$0xff] }
 0x58e   : > { %4725 = vmatmul.bf16.gmra.mxu2 %v4658_v39  ;;  %v8601_v39 = vld [vmem:[%s11385_s11 + $0x58] sm:$0xff]  ;;  %5157 = vmatpush.bf16.msra.mxu1 %v8593_v55 }
 0x58f   : > { %5096 = vmatpush.bf16.msrb.mxu0 %v8601_v39  ;;  %v10983_v39 = vld [vmem:[%s11384_s10] ss:$0 sm:$0xff] }
 0x59b   : > { %4799 = vmatmul.bf16.vlgmr.msrb.gmra.mxu3 %v4740_v18 }
 0x5ab   : > { %4804 = vmatmul.bf16.gmra.mxu3 %v4741_v32  ;;  %v8612_v32 = vld [vmem:[%s11385_s11 + $0xb0] sm:$0xff] }
 0x5ac   : > { %5224 = vmatpush.bf16.msra.mxu2 %v8612_v32 }
 0x5b9   : > { %v4217_v43 = vpop.f32.mrf.mxu0 }
 0x5ba   : > { %v4296_v30 = vpop.f32.mrf.mxu1 }
 0x5bb   : > { %4809 = vmatmul.bf16.gmra.mxu3 %v4742_v45  ;;  %v8600_v45 = vld [vmem:[%s11385_s11 + $0x50] sm:$0xff] }
 0x5bc   : > { %5097 = vmatpush.bf16.msrb.mxu0 %v8600_v45  ;;  %v8615_v45 = vld [vmem:[%s11385_s11 + $0xc8] sm:$0xff] }
 0x5be   : > { %v4146_v8 = vpop.f32.mrf.mxu3 }
 0x5bf   : > { %v4218_v61 = vadd.f32 %v4217_v43, %v4146_v8  ;;  %v8592_v43 = vld [vmem:[%s11385_s11 + $0x10] sm:$0xff] }
 0x5c0   : > { %5158 = vmatpush.bf16.msra.mxu1 %v8592_v43  ;;  %v8636_v43 = vld [vmem:[%s11385_s11 + $0x170] sm:$0xff] }
 0x5c1   : > { %v4380_v7 = vpop.f32.mrf.mxu2  ;;  %v4219_v15 = vpop.f32.mrf.mxu0  ;;  %v4310_v21 = vadd.f32 %v4296_v30, %v4218_v61  ;;  %v8599_v61 = vld [vmem:[%s11385_s11 + $0x48] sm:$0xff] }
 0x5c2   : > { %v4298_v19 = vpop.f32.mrf.mxu1  ;;  %5098 = vmatpush.bf16.msrb.mxu0 %v8599_v61 }
 0x5c3   : > { %v10812_v34 = vadd.f32 %v4380_v7, %v4310_v21  ;;  %v8591_v7 = vld [vmem:[%s11385_s11 + $0x8] sm:$0xff] }
 0x5c4   : > { %5159 = vmatpush.bf16.msra.mxu1 %v8591_v7 }
 0x5c6   : > { %v4148_v22 = vpop.f32.mrf.mxu3 }
 0x5c7   : > { %v4220_v59 = vadd.f32 %v4219_v15, %v4148_v22 }
 0x5c9   : > { %v4382_v50 = vpop.f32.mrf.mxu2  ;;  %v4222_v18 = vpop.f32.mrf.mxu0  ;;  %v4311_v48 = vadd.f32 %v4298_v19, %v4220_v59  ;;  %v8598_v59 = vld [vmem:[%s11385_s11 + $0x40] sm:$0xff] }
 0x5ca   : > { %v4301_v33 = vpop.f32.mrf.mxu1  ;;  %5099 = vmatpush.bf16.msrb.mxu0 %v8598_v59 }
 0x5cb   : > { %v10814_v49 = vadd.f32 %v4382_v50, %v4311_v48  ;;  %v8590_v50 = vld [vmem:[%s11385_s11] sm:$0xff] }
 0x5cc   : > { %5160 = vmatpush.bf16.msra.mxu1 %v8590_v50  ;;  %v8641_v50 = vld [vmem:[%s11385_s11 + $0x198] sm:$0xff] }
 0x5ce   : > { %v4151_v17 = vpop.f32.mrf.mxu3 }
 0x5cf   : > { %v4223_v35 = vadd.f32 %v4222_v18, %v4151_v17  ;;  %v8611_v18 = vld [vmem:[%s11385_s11 + $0xa8] sm:$0xff]  ;;  %v8629_v17 = vld [vmem:[%s11385_s11 + $0x138] sm:$0xff] }
 0x5d0   : > { %5225 = vmatpush.bf16.msra.mxu2 %v8611_v18  ;;  %5365 = vmatpush.bf16.msrb.mxu1 %v8629_v17  ;;  %v8614_v18 = vld [vmem:[%s11385_s11 + $0xc0] sm:$0xff] }
 0x5d1   : > { %v4385_v4 = vpop.f32.mrf.mxu2  ;;  %v4224_v60 = vpop.f32.mrf.mxu0  ;;  %v4312_v13 = vadd.f32 %v4301_v33, %v4223_v35  ;;  %v8621_v33 = vld [vmem:[%s11385_s11 + $0xf8] sm:$0xff] }
 0x5d2   : > { %v4303_v6 = vpop.f32.mrf.mxu1  ;;  %5294 = vmatpush.bf16.msra.mxu0 %v8621_v33 }
 0x5d3   : > { %v10816_v62 = vadd.f32 %v4385_v4, %v4312_v13  ;;  %v8610_v4 = vld [vmem:[%s11385_s11 + $0xa0] sm:$0xff]  ;;  %v8628_v13 = vld [vmem:[%s11385_s11 + $0x130] sm:$0xff] }
 0x5d4   : > { %5226 = vmatpush.bf16.msra.mxu2 %v8610_v4  ;;  %5366 = vmatpush.bf16.msrb.mxu1 %v8628_v13  ;;  %v8640_v13 = vld [vmem:[%s11385_s11 + $0x190] sm:$0xff] }
 0x5d6   : > { %v4153_v36 = vpop.f32.mrf.mxu3 }
 0x5d7   : > { %v4225_v11 = vadd.f32 %v4224_v60, %v4153_v36  ;;  %v8620_v60 = vld [vmem:[%s11385_s11 + $0xf0] sm:$0xff] }
 0x5d8   : > { %5295 = vmatpush.bf16.msra.mxu0 %v8620_v60  ;;  %v8634_v60 = vld [vmem:[%s11385_s11 + $0x160] sm:$0xff] }
 0x5d9   : > { %v4387_v37 = vpop.f32.mrf.mxu2  ;;  %v4227_v16 = vpop.f32.mrf.mxu0  ;;  %v4313_v51 = vadd.f32 %v4303_v6, %v4225_v11  ;;  %v8645_v11 = vld [vmem:[%s11385_s11 + $0x1b8] sm:$0xff] }
 0x5da   : > { %v4306_v26 = vpop.f32.mrf.mxu1  ;;  %v8619_v16 = vld [vmem:[%s11385_s11 + $0xe8] sm:$0xff]  ;;  %5505 = vmatpush.bf16.msra.mxu3 %v8645_v11  ;;  %v8633_v11 = vld [vmem:[%s11385_s11 + $0x158] sm:$0xff] }
 0x5db   : > { %v10818_v53 = vadd.f32 %v4387_v37, %v4313_v51  ;;  %v8609_v37 = vld [vmem:[%s11385_s11 + $0x98] sm:$0xff]  ;;  %v8627_v51 = vld [vmem:[%s11385_s11 + $0x128] sm:$0xff] }
 0x5dc   : > { %5227 = vmatpush.bf16.msra.mxu2 %v8609_v37  ;;  %5296 = vmatpush.bf16.msra.mxu0 %v8619_v16 }
 0x5dd   : > { %5367 = vmatpush.bf16.msrb.mxu1 %v8627_v51 }
 0x5de   : > { %v4156_v38 = vpop.f32.mrf.mxu3 }
 0x5e0   : > { %5297 = vmatpush.bf16.msra.mxu0 %v8618_v58 }
 0x5e1   : > { %v4390_v46 = vpop.f32.mrf.mxu2  ;;  %v4229_v41 = vpop.f32.mrf.mxu0 }
 0x5e2   : > { %v4308_v23 = vpop.f32.mrf.mxu1  ;;  %v8644_v46 = vld [vmem:[%s11385_s11 + $0x1b0] sm:$0xff] }
 0x5e3   : > { %v8608_v23 = vld [vmem:[%s11385_s11 + $0x90] sm:$0xff]  ;;  %5506 = vmatpush.bf16.msra.mxu3 %v8644_v46 }
 0x5e4   : > { %5228 = vmatpush.bf16.msra.mxu2 %v8608_v23  ;;  %5298 = vmatpush.bf16.msra.mxu0 %v8617_v9 }
 0x5e6   : > { %v4158_v52 = vpop.f32.mrf.mxu3 }
 0x5e8   : > { %5299 = vmatpush.bf16.msra.mxu0 %v8616_v2 }
 0x5e9   : > { %v4392_v57 = vpop.f32.mrf.mxu2  ;;  %v10826_v47 = vpop.f32.mrf.mxu0 }
 0x5ea   : > { %v10828_v27 = vpop.f32.mrf.mxu1  ;;  %v8607_v57 = vld [vmem:[%s11385_s11 + $0x88] sm:$0xff] }
 0x5eb   : > { %5229 = vmatpush.bf16.msra.mxu2 %v8607_v57  ;;  %v8630_v57 = vld [vmem:[%s11385_s11 + $0x140] sm:$0xff] }
 0x5ec   : > { %5300 = vmatpush.bf16.msra.mxu0 %v8615_v45 }
 0x5ee   : > { %v10836_v28 = vpop.f32.mrf.mxu3 }
 0x5ef   : > { %v4478_v38 = vadd.f32 %v10836_v28, %v10812_v34  ;;  %v8626_v34 = vld [vmem:[%s11385_s11 + $0x120] sm:$0xff]  ;;  %5230 = vmatpush.bf16.msra.mxu2 %v8606_v24 }
 0x5f0   : > { %5368 = vmatpush.bf16.msrb.mxu1 %v8626_v34  ;;  %5301 = vmatpush.bf16.msra.mxu0 %v8614_v18  ;;  %v4860_v18 = vpop.permute.xlu0 %4859 }
 0x5f1   : > { %v10838_v20 = vpop.f32.mrf.mxu2  ;;  %v10846_v54 = vpop.f32.mrf.mxu0  ;;  %v4562_v25 = vadd.f32 %v10826_v47, %v4478_v38  ;;  %v8643_v47 = vld [vmem:[%s11385_s11 + $0x1a8] sm:$0xff] }
 0x5f2   : > { %v10848_v1 = vpop.f32.mrf.mxu1  ;;  %5507 = vmatpush.bf16.msra.mxu3 %v8643_v47  ;;  %v8653_v47 = vld [vmem:[%s11385_s11 + $0x1f8] sm:$0xff] }
 0x5f3   : > { %v4646_v14 = vadd.f32 %v10828_v27, %v4562_v25 }
 0x5f4   : > { %5369 = vmatpush.bf16.msrb.mxu1 %v8625_v63 }
 0x5f5   : > { %v4730_v27 = vadd.f32 %v10838_v20, %v4646_v14  ;;  %v8623_v20 = vld [vmem:[%s11385_s11 + $0x108] sm:$0xff]  ;;  %v8661_v14 = vld [vmem:[%s11385_s11 + $0x238] sm:$0xff] }
 0x5f6   : > { %v10859_v56 = vpop.f32.mrf.mxu3 }
 0x5f7   : > { %v4479_v40 = vadd.f32 %v10859_v56, %v10814_v49  ;;  %v8637_v49 = vld [vmem:[%s11385_s11 + $0x178] sm:$0xff] }
 0x5f8   : > { %5370 = vmatpush.bf16.msrb.mxu1 %v8624_v5  ;;  %5436 = vmatpush.bf16.msrb.mxu2 %v8637_v49  ;;  %v8652_v49 = vld [vmem:[%s11385_s11 + $0x1f0] sm:$0xff] }
 0x5f9   : > { %v10861_v10 = vpop.f32.mrf.mxu2  ;;  %v10869_v31 = vpop.f32.mrf.mxu0  ;;  %v4563_v56 = vadd.f32 %v10846_v54, %v4479_v40  ;;  %v8642_v54 = vld [vmem:[%s11385_s11 + $0x1a0] sm:$0xff] }
 0x5fa   : > { %v10874_v29 = vpop.f32.mrf.mxu1  ;;  %5508 = vmatpush.bf16.msra.mxu3 %v8642_v54  ;;  %v8651_v54 = vld [vmem:[%s11385_s11 + $0x1e8] sm:$0xff] }
 0x5fb   : > { %v4647_v61 = vadd.f32 %v10848_v1, %v4563_v56  ;;  %v8622_v1 = vld [vmem:[%s11385_s11 + $0x100] sm:$0xff] }
 0x5fc   : > { %5371 = vmatpush.bf16.msrb.mxu1 %v8623_v20  ;;  %5437 = vmatpush.bf16.msrb.mxu2 %v8636_v43  ;;  %v8659_v43 = vld [vmem:[%s11385_s11 + $0x228] sm:$0xff] }
 0x5fe   : > { %v10882_v30 = vpop.f32.mrf.mxu3  ;;  %5509 = vmatpush.bf16.msra.mxu3 %v8641_v50 }
 0x5ff   : > { %v4480_v7 = vadd.f32 %v10882_v30, %v10816_v62  ;;  %v8635_v62 = vld [vmem:[%s11385_s11 + $0x168] sm:$0xff]  ;;  %v4731_v30 = vadd.f32 %v10861_v10, %v4647_v61 }
 0x600   : > { %5372 = vmatpush.bf16.msrb.mxu1 %v8622_v1  ;;  %5438 = vmatpush.bf16.msrb.mxu2 %v8635_v62  ;;  %v8658_v1 = vld [vmem:[%s11385_s11 + $0x220] sm:$0xff] }
 0x601   : > { %v10884_v8 = vpop.f32.mrf.mxu2  ;;  %v10892_v15 = vpop.f32.mrf.mxu0  ;;  %v4564_v33 = vadd.f32 %v10869_v31, %v4480_v7  ;;  %v8677_v7 = vld [vmem:[%s11387_s13 + $0x78] sm:$0xff] }
 0x602   : > { %v10894_v21 = vpop.f32.mrf.mxu1  ;;  %5510 = vmatpush.bf16.msra.mxu3 %v8640_v13 }
 0x603   : > { %v4648_v10 = vadd.f32 %v10874_v29, %v4564_v33 }
 0x604   : > { %5439 = vmatpush.bf16.msrb.mxu2 %v8634_v60 }
 0x605   : > { %v4732_v37 = vadd.f32 %v10884_v8, %v4648_v10 }
 0x606   : > { %v10896_v19 = vpop.f32.mrf.mxu3 }
 0x608   : > { %5440 = vmatpush.bf16.msrb.mxu2 %v8633_v11  ;;  %v8657_v11 = vld [vmem:[%s11385_s11 + $0x218] sm:$0xff] }
 0x609   : > { %v10898_v22 = vpop.f32.mrf.mxu2  ;;  %v4558_v48 = vpop.f32.mrf.mxu0 }
 0x60a   : > { %v4642_v35 = vpop.f32.mrf.mxu1 }
 0x60e   : > { %v4474_v6 = vpop.f32.mrf.mxu3 }
 0x60f   : > { %v8639_v6 = vld [vmem:[%s11385_s11 + $0x188] sm:$0xff] }
 0x610   : > { %5511 = vmatpush.bf16.msra.mxu3 %v8639_v6 }
 0x611   : > { %v4726_v36 = vpop.f32.mrf.mxu2  ;;  %v4560_v26 = vpop.f32.mrf.mxu0 }
 0x612   : > { %v4644_v41 = vpop.f32.mrf.mxu1  ;;  %v8632_v26 = vld [vmem:[%s11385_s11 + $0x150] sm:$0xff] }
 0x613   : > { %5441 = vmatpush.bf16.msrb.mxu2 %v8632_v26  ;;  %v8647_v26 = vld [vmem:[%s11385_s11 + $0x1c8] sm:$0xff] }
 0x616   : > { %v4476_v52 = vpop.f32.mrf.mxu3 }
 0x619   : > { %v4728_v28 = vpop.f32.mrf.mxu2 }
 0x61e   : > { %v4800_v55 = vpop.f32.mrf.mxu3 }
 0x61f   : > { %v4814_v32 = vadd.f32 %v4800_v55, %v4730_v27  ;;  %v8660_v27 = vld [vmem:[%s11385_s11 + $0x230] sm:$0xff] }
 0x621   : > { %v4822_v59 = vadd.f32 %v10983_v39, %v4814_v32 }
 0x623   : > { %v4827_v48 = vmax.f32 %v4822_v59, 0.0 }
 0x625   : > { %v4862_v17 = vmul.f32 %v9686_v42, %v4827_v48  ;;  %v4481_v42 = vadd.f32 %v10896_v19, %v10818_v53  ;;  %v8638_v53 = vld [vmem:[%s11385_s11 + $0x180] sm:$0xff] }
 0x626   : > { %v4802_v35 = vpop.f32.mrf.mxu3  ;;  %5512 = vmatpush.bf16.msra.mxu3 %v8638_v53  ;;  %v8650_v48 = vld [vmem:[%s11385_s11 + $0x1e0] sm:$0xff] }
 0x627   : > { %4867 = vst [vmem:[#allocation6 + $0x7] sm:$0xff] %v4862_v17  ;;  %v4815_v4 = vadd.f32 %v4802_v35, %v4731_v30  ;;  %v4565_v29 = vadd.f32 %v10892_v15, %v4481_v42  ;;  %v8649_v42 = vld [vmem:[%s11385_s11 + $0x1d8] sm:$0xff] }
 0x629   : > { %v4823_v31 = vadd.f32 %v10983_v39, %v4815_v4  ;;  %v4649_v38 = vadd.f32 %v10894_v21, %v4565_v29  ;;  %v8648_v29 = vld [vmem:[%s11385_s11 + $0x1d0] sm:$0xff] }
 0x62b   : > { %v4828_v36 = vmax.f32 %v4823_v31, 0.0  ;;  %v4733_v46 = vadd.f32 %v10898_v22, %v4649_v38 }
 0x62d   : > { %v4863_v16 = vmul.f32 %v9669_v0, %v4828_v36  ;;  %v8631_v0 = vld [vmem:[%s11385_s11 + $0x148] sm:$0xff] }
 0x62e   : > { %v4805_v19 = vpop.f32.mrf.mxu3  ;;  %5442 = vmatpush.bf16.msrb.mxu2 %v8631_v0  ;;  %v5036_v9 = vld [vmem:[#allocation6 + $0x8] ss:$2 sm:$0x3]  ;;  %v5026_v63 = vld [vmem:[#allocation6 + $0x7] ss:$2 sm:$0x3] }
 0x62f   : > { %4868 = vst [vmem:[#allocation6 + $0xf] sm:$0xff] %v4863_v16  ;;  %v4816_v51 = vadd.f32 %v4805_v19, %v4732_v37  ;;  %v5167_v55 = vld [vmem:[#allocation6 + $0x9] ss:$2 sm:$0x3] }
 0x630   : > { %v8656_v16 = vld [vmem:[%s11385_s11 + $0x210] sm:$0xff] }
 0x631   : > { %v4824_v8 = vadd.f32 %v10983_v39, %v4816_v51 }
 0x632   : > { %5443 = vmatpush.bf16.msrb.mxu2 %v8630_v57  ;;  %v8676_v57 = vld [vmem:[%s11387_s13 + $0x70] sm:$0xff] }
 0x633   : > { %v4829_v15 = vmax.f32 %v4824_v8, 0.0 }
 0x635   : > { %v4864_v41 = vmul.f32 %v10461_v12, %v4829_v15  ;;  %v8655_v15 = vld [vmem:[%s11385_s11 + $0x208] sm:$0xff] }
 0x636   : > { %v4807_v23 = vpop.f32.mrf.mxu3  ;;  %v11048_v58 = vld [vmem:[#allocation6 + $0x14] ss:$2 sm:$0x3]  ;;  %v5028_v34 = vld [vmem:[#allocation6 + $0x13] ss:$2 sm:$0x3] }
 0x637   : > { %4869 = vst [vmem:[#allocation6 + $0x17] sm:$0xff] %v4864_v41  ;;  %v4817_v21 = vadd.f32 %v4807_v23, %v4733_v46  ;;  %v5040_v25 = vrot.slane %v11048_v58, 6  ;;  %v5030_v52 = vrot.slane %v5028_v34, 6  ;;  %v5238_v62 = vld [vmem:[#allocation6 + $0xd] ss:$2 sm:$0x3] }
 0x638   : > { %v5309_v30 = vld [vmem:[#allocation6 + $0xe] ss:$2 sm:$0x3]  ;;  %v5380_v53 = vld [vmem:[#allocation6 + $0xf] ss:$2 sm:$0x3] }
 0x639   : > { %v4825_v22 = vadd.f32 %v10983_v39, %v4817_v21  ;;  %v5042_v12 = vsel %vm5032_vm4, %v5036_v9, %v5040_v25  ;;  %v5033_v28 = vsel %vm5032_vm4, %v5026_v63, %v5030_v52  ;;  %v8646_v41 = vld [vmem:[%s11385_s11 + $0x1c0] sm:$0xff]  ;;  %v8675_v9 = vld [vmem:[%s11387_s13 + $0x68] sm:$0xff]  ;;  %v8669_v63 = vld [vmem:[%s11387_s13 + $0x38] sm:$0xff] }
 0x63a   : > { %v5043_v40 = vpack.c.bf16 %v5042_v12, %v5042_v12  ;;  %v5034_v24 = vpack.c.bf16 %v5033_v28, %v5033_v28  ;;  %v8654_v23 = vld [vmem:[%s11385_s11 + $0x200] sm:$0xff]  ;;  %v8693_v12 = vld [vmem:[%s11387_s13 + $0xf8] sm:$0xff]  ;;  %5933 = vmatpush.bf16.msrb.mxu3 %v8669_v63  ;;  %v8668_v28 = vld [vmem:[%s11387_s13 + $0x30] sm:$0xff] }
 0x63b   : > { %v4830_v2 = vmax.f32 %v4825_v22, 0.0  ;;  %v8685_v22 = vld [vmem:[%s11387_s13 + $0xb8] sm:$0xff] }
 0x63c   : > { %5100 = vmatmul.bf16.vlgmr.msrb.gmra.mxu0 %v5043_v40  ;;  %5161 = vmatmul.bf16.vlgmr.msra.gmra.mxu1 %v5034_v24  ;;  %v8692_v40 = vld [vmem:[%s11387_s13 + $0xf0] sm:$0xff] }
 0x63d   : > { %v4865_v5 = vmul.f32 %v9688_v44, %v4830_v2  ;;  %5574 = vmatpush.bf16.msrb.mxu0 %v8653_v47  ;;  %5643 = vmatpush.bf16.msra.mxu1 %v8661_v14  ;;  %v8684_v47 = vld [vmem:[%s11387_s13 + $0xb0] sm:$0xff]  ;;  %v8673_v14 = vld [vmem:[%s11387_s13 + $0x58] sm:$0xff]  ;;  %v8667_v2 = vld [vmem:[%s11387_s13 + $0x28] sm:$0xff] }
 0x63e   : > { %v4810_v56 = vpop.f32.mrf.mxu3  ;;  %v11070_v39 = vld [vmem:[#allocation6 + $0x15] ss:$2 sm:$0x3]  ;;  %v5240_v45 = vld [vmem:[#allocation6 + $0x19] ss:$2 sm:$0x3]  ;;  %5934 = vmatpush.bf16.msrb.mxu3 %v8668_v28 }
 0x63f   : > { %4870 = vst [vmem:[#allocation6 + $0x1f] sm:$0xff] %v4865_v5  ;;  %v5171_v32 = vrot.slane %v11070_v39, 6  ;;  %v5311_v20 = vld [vmem:[#allocation6 + $0x1a] ss:$2 sm:$0x3]  ;;  %v5242_v59 = vrot.slane %v5240_v45, 6 }
 0x640   : > { %v5313_v50 = vrot.slane %v5311_v20, 6  ;;  %v5382_v13 = vld [vmem:[#allocation6 + $0x1b] ss:$2 sm:$0x3]  ;;  %v8672_v24 = vld [vmem:[%s11387_s13 + $0x50] sm:$0xff]  ;;  %v8683_v5 = vld [vmem:[%s11387_s13 + $0xa8] sm:$0xff] }
 0x641   : > { %5575 = vmatpush.bf16.msrb.mxu0 %v8652_v49  ;;  %5644 = vmatpush.bf16.msra.mxu1 %v8660_v27  ;;  %v5173_v44 = vsel %vm5032_vm4, %v5167_v55, %v5171_v32  ;;  %v5244_v35 = vsel %vm5032_vm4, %v5238_v62, %v5242_v59  ;;  %v5384_v37 = vrot.slane %v5382_v13, 6  ;;  %v8691_v49 = vld [vmem:[%s11387_s13 + $0xe8] sm:$0xff]  ;;  %v8666_v56 = vld [vmem:[%s11387_s13 + $0x20] sm:$0xff]  ;;  %v8665_v45 = vld [vmem:[%s11387_s13 + $0x18] sm:$0xff] }
 0x642   : > { %v5174_v61 = vpack.c.bf16 %v5173_v44, %v5173_v44  ;;  %v5315_v4 = vsel %vm5032_vm4, %v5309_v30, %v5313_v50  ;;  %v5245_v31 = vpack.c.bf16 %v5244_v35, %v5244_v35  ;;  %5935 = vmatpush.bf16.msrb.mxu3 %v8667_v2  ;;  %v8671_v27 = vld [vmem:[%s11387_s13 + $0x48] sm:$0xff]  ;;  %v8690_v55 = vld [vmem:[%s11387_s13 + $0xe0] sm:$0xff]  ;;  %v8681_v20 = vld [vmem:[%s11387_s13 + $0x98] sm:$0xff] }
 0x643   : > { %v5316_v6 = vpack.c.bf16 %v5315_v4, %v5315_v4  ;;  %v5386_v19 = vsel %vm5032_vm4, %v5380_v53, %v5384_v37  ;;  %v8670_v32 = vld [vmem:[%s11387_s13 + $0x40] sm:$0xff]  ;;  %v8689_v44 = vld [vmem:[%s11387_s13 + $0xd8] sm:$0xff]  ;;  %v8700_v59 = vld [vmem:[%s11387_s13 + $0x130] sm:$0xff] }
 0x644   : > { %5231 = vmatmul.bf16.vlgmr.msra.gmra.mxu2 %v5174_v61  ;;  %v5387_v8 = vpack.c.bf16 %v5386_v19, %v5386_v19  ;;  %v8680_v61 = vld [vmem:[%s11387_s13 + $0x90] sm:$0xff]  ;;  %v8663_v62 = vld [vmem:[%s11387_s13 + $0x8] sm:$0xff]  ;;  %v8662_v4 = vld [vmem:[%s11387_s13] sm:$0xff] }
 0x645   : > { %5576 = vmatpush.bf16.msrb.mxu0 %v8651_v54  ;;  %5645 = vmatpush.bf16.msra.mxu1 %v8659_v43  ;;  %v8701_v54 = vld [vmem:[%s11387_s13 + $0x138] sm:$0xff]  ;;  %v8664_v43 = vld [vmem:[%s11387_s13 + $0x10] sm:$0xff]  ;;  %v8679_v30 = vld [vmem:[%s11387_s13 + $0x88] sm:$0xff] }
 0x646   : > { %v5451_v33 = vld [vmem:[#allocation6 + $0x1f] ss:$2 sm:$0x3]  ;;  %5871 = vmatpush.bf16.msra.mxu2 %v8677_v7  ;;  %v4812_v17 = vpop.f32.mrf.mxu3  ;;  %v5520_v51 = vld [vmem:[#allocation6 + $0x20] ss:$2 sm:$0x3]  ;;  %5936 = vmatpush.bf16.msrb.mxu3 %v8666_v56 }
 0x647   : > { %v5453_v60 = vrot.slane %v5451_v33, 6  ;;  %v5589_v38 = vld [vmem:[#allocation6 + $0x21] ss:$2 sm:$0x3]  ;;  %v5522_v0 = vrot.slane %v5520_v51, 6  ;;  %v8688_v7 = vld [vmem:[%s11387_s13 + $0xd0] sm:$0xff] }
 0x648   : > { %v5591_v46 = vrot.slane %v5589_v38, 6  ;;  %v8687_v33 = vld [vmem:[%s11387_s13 + $0xc8] sm:$0xff]  ;;  %v8686_v13 = vld [vmem:[%s11387_s13 + $0xc0] sm:$0xff]  ;;  %v8716_v53 = vld [vmem:[%s11387_s13 + $0x1b0] sm:$0xff] }
 0x649   : > { %5577 = vmatpush.bf16.msrb.mxu0 %v8650_v48  ;;  %5646 = vmatpush.bf16.msra.mxu1 %v8658_v1  ;;  %v5455_v10 = vsel %vm5032_vm4, %v5028_v34, %v5453_v60  ;;  %v5524_v34 = vsel %vm5032_vm4, %v11048_v58, %v5522_v0  ;;  %v8674_v58 = vld [vmem:[%s11387_s13 + $0x60] sm:$0xff]  ;;  %v8699_v17 = vld [vmem:[%s11387_s13 + $0x128] sm:$0xff]  ;;  %v8724_v51 = vld [vmem:[%s11387_s13 + $0x1f0] sm:$0xff] }
 0x64a   : > { %v5456_v36 = vpack.c.bf16 %v5455_v10, %v5455_v10  ;;  %v5593_v21 = vsel %vm5032_vm4, %v11070_v39, %v5591_v46  ;;  %v5525_v25 = vpack.c.bf16 %v5524_v34, %v5524_v34  ;;  %5872 = vmatpush.bf16.msra.mxu2 %v8676_v57  ;;  %v8682_v39 = vld [vmem:[%s11387_s13 + $0xa0] sm:$0xff]  ;;  %5937 = vmatpush.bf16.msrb.mxu3 %v8665_v45  ;;  %v8707_v46 = vld [vmem:[%s11387_s13 + $0x168] sm:$0xff]  ;;  %v8721_v2 = vld [vmem:[%s11387_s13 + $0x1d8] sm:$0xff] }
 0x64b   : > { %v5594_v52 = vpack.c.bf16 %v5593_v21, %v5593_v21  ;;  %v8678_v60 = vld [vmem:[%s11387_s13 + $0x80] sm:$0xff]  ;;  %v8723_v34 = vld [vmem:[%s11387_s13 + $0x1e8] sm:$0xff]  ;;  %v8712_v56 = vld [vmem:[%s11387_s13 + $0x190] sm:$0xff] }
 0x64c   : > { %5302 = vmatmul.bf16.vlgmr.msra.gmra.mxu0 %v5245_v31  ;;  %5373 = vmatmul.bf16.vlgmr.msrb.gmra.mxu1 %v5316_v6  ;;  %v8698_v10 = vld [vmem:[%s11387_s13 + $0x120] sm:$0xff]  ;;  %v8709_v6 = vld [vmem:[%s11387_s13 + $0x178] sm:$0xff]  ;;  %v8695_v21 = vld [vmem:[%s11387_s13 + $0x108] sm:$0xff] }
 0x64d   : > { %5513 = vmatmul.bf16.vlgmr.msra.gmra.mxu3 %v5456_v36  ;;  %5578 = vmatpush.bf16.msrb.mxu0 %v8649_v42  ;;  %v8717_v36 = vld [vmem:[%s11387_s13 + $0x1b8] sm:$0xff] }
 0x64e   : > { %5647 = vmatpush.bf16.msra.mxu1 %v8657_v11  ;;  %5873 = vmatpush.bf16.msra.mxu2 %v8675_v9  ;;  %v8725_v11 = vld [vmem:[%s11387_s13 + $0x1f8] sm:$0xff]  ;;  %v8722_v9 = vld [vmem:[%s11387_s13 + $0x1e0] sm:$0xff] }
 0x64f   : > { %5938 = vmatpush.bf16.msrb.mxu3 %v8664_v43 }
 0x651   : > { %5579 = vmatpush.bf16.msrb.mxu0 %v8648_v29  ;;  %v8697_v29 = vld [vmem:[%s11387_s13 + $0x118] sm:$0xff] }
 0x652   : > { %5648 = vmatpush.bf16.msra.mxu1 %v8656_v16  ;;  %5874 = vmatpush.bf16.msra.mxu2 %v8674_v58  ;;  %v8708_v16 = vld [vmem:[%s11387_s13 + $0x170] sm:$0xff] }
 0x653   : > { %5939 = vmatpush.bf16.msrb.mxu3 %v8663_v62 }
 0x654   : > { %5444 = vmatmul.bf16.vlgmr.msrb.gmra.mxu2 %v5387_v8  ;;  %v8696_v8 = vld [vmem:[%s11387_s13 + $0x110] sm:$0xff] }
 0x655   : > { %5580 = vmatpush.bf16.msrb.mxu0 %v8647_v26 }
 0x656   : > { %5649 = vmatpush.bf16.msra.mxu1 %v8655_v15  ;;  %5875 = vmatpush.bf16.msra.mxu2 %v8673_v14  ;;  %v8713_v14 = vld [vmem:[%s11387_s13 + $0x198] sm:$0xff] }
 0x657   : > { %5940 = vmatpush.bf16.msrb.mxu3 %v8662_v4  ;;  %v8788_v4 = vld [vmem:[#allocation5] sm:$0xff] }
 0x659   : > { %5581 = vmatpush.bf16.msrb.mxu0 %v8646_v41  ;;  %v8715_v41 = vld [vmem:[%s11387_s13 + $0x1a8] sm:$0xff] }
 0x65a   : > { %5650 = vmatpush.bf16.msra.mxu1 %v8654_v23  ;;  %5876 = vmatpush.bf16.msra.mxu2 %v8672_v24 }
 0x65b   : > { %6199 = vmatpush.bf16.msra.mxu3 %v8709_v6  ;;  %v8732_v6 = vld [vmem:[%s11387_s13 + $0x230] sm:$0xff] }
 0x65c   : > { %5582 = vmatmul.bf16.vlgmr.msrb.gmra.mxu0 %v5525_v25  ;;  %v8706_v25 = vld [vmem:[%s11387_s13 + $0x160] sm:$0xff] }
 0x65d   : > { %5651 = vmatmul.bf16.vlgmr.msra.gmra.mxu1 %v5594_v52  ;;  %5998 = vmatpush.bf16.msra.mxu0 %v8685_v22  ;;  %v8714_v52 = vld [vmem:[%s11387_s13 + $0x1a0] sm:$0xff] }
 0x65e   : > { %6065 = vmatpush.bf16.msrb.mxu1 %v8693_v12  ;;  %5877 = vmatpush.bf16.msra.mxu2 %v8671_v27  ;;  %v8694_v12 = vld [vmem:[%s11387_s13 + $0x100] sm:$0xff]  ;;  %v8704_v27 = vld [vmem:[%s11387_s13 + $0x150] sm:$0xff] }
 0x65f   : > { %6200 = vmatpush.bf16.msra.mxu3 %v8708_v16 }
 0x661   : > { %5999 = vmatpush.bf16.msra.mxu0 %v8684_v47  ;;  %v8705_v47 = vld [vmem:[%s11387_s13 + $0x158] sm:$0xff] }
 0x662   : > { %6066 = vmatpush.bf16.msrb.mxu1 %v8692_v40  ;;  %5878 = vmatpush.bf16.msra.mxu2 %v8670_v32 }
 0x663   : > { %6201 = vmatpush.bf16.msra.mxu3 %v8707_v46  ;;  %v8727_v46 = vld [vmem:[%s11387_s13 + $0x208] sm:$0xff] }
 0x665   : > { %6000 = vmatpush.bf16.msra.mxu0 %v8683_v5 }
 0x666   : > { %6067 = vmatpush.bf16.msrb.mxu1 %v8691_v49  ;;  %6132 = vmatpush.bf16.msrb.mxu2 %v8701_v54  ;;  %v8784_v49 = vld [vmem:[%s11386_s12] ss:$0 sm:$0xff]  ;;  %v8711_v54 = vld [vmem:[%s11387_s13 + $0x188] sm:$0xff] }
 0x667   : > { %6202 = vmatpush.bf16.msra.mxu3 %v8706_v25 }
 0x669   : > { %6001 = vmatpush.bf16.msra.mxu0 %v8682_v39 }
 0x66a   : > { %6068 = vmatpush.bf16.msrb.mxu1 %v8690_v55  ;;  %6133 = vmatpush.bf16.msrb.mxu2 %v8700_v59  ;;  %v8720_v55 = vld [vmem:[%s11387_s13 + $0x1d0] sm:$0xff]  ;;  %v8702_v59 = vld [vmem:[%s11387_s13 + $0x140] sm:$0xff] }
 0x66b   : > { %6203 = vmatpush.bf16.msra.mxu3 %v8705_v47 }
 0x66d   : > { %6002 = vmatpush.bf16.msra.mxu0 %v8681_v20 }
 0x66e   : > { %6069 = vmatpush.bf16.msrb.mxu1 %v8689_v44  ;;  %6134 = vmatpush.bf16.msrb.mxu2 %v8699_v17  ;;  %v8703_v44 = vld [vmem:[%s11387_s13 + $0x148] sm:$0xff] }
 0x66f   : > { %6204 = vmatpush.bf16.msra.mxu3 %v8704_v27 }
 0x671   : > { %6003 = vmatpush.bf16.msra.mxu0 %v8680_v61 }
 0x672   : > { %6070 = vmatpush.bf16.msrb.mxu1 %v8688_v7  ;;  %6135 = vmatpush.bf16.msrb.mxu2 %v8698_v10  ;;  %v8719_v7 = vld [vmem:[%s11387_s13 + $0x1c8] sm:$0xff] }
 0x673   : > { %6205 = vmatpush.bf16.msra.mxu3 %v8703_v44 }
 0x675   : > { %6004 = vmatpush.bf16.msra.mxu0 %v8679_v30 }
 0x676   : > { %6071 = vmatpush.bf16.msrb.mxu1 %v8687_v33  ;;  %6136 = vmatpush.bf16.msrb.mxu2 %v8697_v29 }
 0x677   : > { %6206 = vmatpush.bf16.msra.mxu3 %v8702_v59 }
 0x679   : > { %6005 = vmatpush.bf16.msra.mxu0 %v8678_v60 }
 0x67a   : > { %6072 = vmatpush.bf16.msrb.mxu1 %v8686_v13  ;;  %6137 = vmatpush.bf16.msrb.mxu2 %v8696_v8 }
 0x67d   : > { %6266 = vmatpush.bf16.msrb.mxu0 %v8717_v36  ;;  %v8731_v36 = vld [vmem:[%s11387_s13 + $0x228] sm:$0xff] }
 0x67e   : > { %6333 = vmatpush.bf16.msra.mxu1 %v8725_v11  ;;  %6138 = vmatpush.bf16.msrb.mxu2 %v8695_v21  ;;  %v8730_v11 = vld [vmem:[%s11387_s13 + $0x220] sm:$0xff] }
 0x681   : > { %6267 = vmatpush.bf16.msrb.mxu0 %v8716_v53 }
 0x682   : > { %6334 = vmatpush.bf16.msra.mxu1 %v8724_v51  ;;  %6139 = vmatpush.bf16.msrb.mxu2 %v8694_v12 }
 0x685   : > { %6268 = vmatpush.bf16.msrb.mxu0 %v8715_v41  ;;  %v8726_v41 = vld [vmem:[%s11387_s13 + $0x200] sm:$0xff] }
 0x686   : > { %6335 = vmatpush.bf16.msra.mxu1 %v8723_v34 }
 0x689   : > { %6269 = vmatpush.bf16.msrb.mxu0 %v8714_v52 }
 0x68a   : > { %6336 = vmatpush.bf16.msra.mxu1 %v8722_v9 }
 0x68d   : > { %6270 = vmatpush.bf16.msrb.mxu0 %v8713_v14 }
 0x68e   : > { %6337 = vmatpush.bf16.msra.mxu1 %v8721_v2 }
 0x691   : > { %6271 = vmatpush.bf16.msrb.mxu0 %v8712_v56 }
 0x692   : > { %6338 = vmatpush.bf16.msra.mxu1 %v8720_v55 }
 0x695   : > { %6272 = vmatpush.bf16.msrb.mxu0 %v8711_v54 }
 0x696   : > { %6339 = vmatpush.bf16.msra.mxu1 %v8719_v7 }
 0x6b9   : > { %v5101_v50 = vpop.f32.mrf.mxu0  ;;  %v5162_v18 = vpop.f32.mrf.mxu1 }
 0x6ba   : > { %v5163_v37 = vadd.f32 %v5162_v18, %v5101_v50  ;;  %v8710_v50 = vld [vmem:[%s11387_s13 + $0x180] sm:$0xff] }
 0x6bb   : > { %v8718_v18 = vld [vmem:[%s11387_s13 + $0x1c0] sm:$0xff]  ;;  %6273 = vmatpush.bf16.msrb.mxu0 %v8710_v50 }
 0x6bc   : > { %6340 = vmatpush.bf16.msra.mxu1 %v8718_v18  ;;  %v8785_v50 = vld [vmem:[%s11388_s14] ss:$0 sm:$0xff] }
 0x6c1   : > { %v5103_v48 = vpop.f32.mrf.mxu0  ;;  %v5164_v1 = vpop.f32.mrf.mxu1 }
 0x6c2   : > { %v5820_v48 = vld [vmem:[#allocation7 + $0x1] sm:$0xff] }
 0x6c3   : > { %v5947_v1 = vld [vmem:[#allocation7 + $0x2] sm:$0xff] }
 0x6c7   : > { %v5232_v35 = vpop.f32.mrf.mxu2 }
 0x6c8   : > { %v5236_v19 = vadd.f32 %v5232_v35, %v5163_v37 }
 0x6c9   : > { %v5303_v42 = vpop.f32.mrf.mxu0  ;;  %v5374_v31 = vpop.f32.mrf.mxu1 }
 0x6ca   : > { %v5307_v23 = vadd.f32 %v5303_v42, %v5236_v19  ;;  %v8733_v42 = vld [vmem:[%s11387_s13 + $0x238] sm:$0xff] }
 0x6cb   : > { %v6283_v19 = vld [vmem:[#allocation7 + $0x11] sm:$0xff] }
 0x6cc   : > { %v5378_v57 = vadd.f32 %v5374_v31, %v5307_v23  ;;  %v6350_v23 = vld [vmem:[#allocation7 + $0x12] sm:$0xff] }
 0x6cf   : > { %v5234_v26 = vpop.f32.mrf.mxu2 }
 0x6d0   : > { %v5514_v38 = vpop.f32.mrf.mxu3 }
 0x6d1   : > { %v5305_v15 = vpop.f32.mrf.mxu0  ;;  %v5376_v0 = vpop.f32.mrf.mxu1 }
 0x6d2   : > { %v8728_v0 = vld [vmem:[%s11387_s13 + $0x210] sm:$0xff] }
 0x6d7   : > { %v5445_v58 = vpop.f32.mrf.mxu2 }
 0x6d8   : > { %v5449_v63 = vadd.f32 %v5445_v58, %v5378_v57  ;;  %v5516_v22 = vpop.f32.mrf.mxu3 }
 0x6d9   : > { %v5583_v28 = vpop.f32.mrf.mxu0 }
 0x6da   : > { %v5518_v40 = vadd.f32 %v5514_v38, %v5449_v63  ;;  %v5652_v24 = vpop.f32.mrf.mxu1  ;;  %v8729_v38 = vld [vmem:[%s11387_s13 + $0x218] sm:$0xff] }
 0x6dc   : > { %v5587_v5 = vadd.f32 %v5583_v28, %v5518_v40 }
 0x6de   : > { %v5656_v39 = vadd.f32 %v5652_v24, %v5587_v5 }
 0x6df   : > { %v5447_v32 = vpop.f32.mrf.mxu2 }
 0x6e0   : > { %v5660_v45 = vadd.f32 %v8784_v49, %v5656_v39 }
 0x6e1   : > { %v5585_v20 = vpop.f32.mrf.mxu0 }
 0x6e2   : > { %v5661_v43 = vmax.f32 %v5660_v45, 0.0  ;;  %v5654_v61 = vpop.f32.mrf.mxu1 }
 0x6e4   : > { %5662 = vst [vmem:[#allocation7 + $0xa] sm:$0x3] %v5661_v43 }
 0x6e5   : > { %5663 = vst [vmem:[#allocation7 + $0xc] sm:$0xc] %v5661_v43 }
 0x6eb   : > { %v6014_v62 = vld [vmem:[#allocation7 + $0x4] sm:$0xff] }
 0x6ec   : > { %v5821_v30 = vld [vmem:[#allocation7 + $0x9] sm:$0xff] }
 0x6ed   : > { %v5818_v33 = vld [vmem:[#allocation7 + $0x8] sm:$0xff]  ;;  %v5822_v35 = vpack.c.bf16 %v5821_v30, %v5820_v48  ;;  %v6284_v15 = vpack.c.bf16 %v6283_v19, %v5821_v30 }
 0x6ee   : > { %v5948_v17 = vld [vmem:[#allocation7 + $0xa] sm:$0xff]  ;;  %v5819_v60 = vpack.c.bf16 %v5818_v33, %v8788_v4  ;;  %v6217_v8 = vpack.c.bf16 %v8788_v4, %v5818_v33  ;;  %v11428_v4 = vld [vmem:[#allocation18_spill] sm:$0xff] }
 0x6ef   : > { %v5949_v13 = vpack.c.bf16 %v5948_v17, %v5947_v1  ;;  %v6015_v10 = vld [vmem:[#allocation7 + $0xc] sm:$0xff]  ;;  %5879 = vmatmul.bf16.vlgmr.msra.gmra.mxu2 %v5822_v35  ;;  %v6351_v34 = vpack.c.bf16 %v6350_v23, %v5948_v17 }
 0x6f0   : > { %v6016_v31 = vpack.c.bf16 %v6015_v10, %v6014_v62  ;;  %5941 = vmatmul.bf16.vlgmr.msrb.gmra.mxu3 %v5819_v60  ;;  %6400 = vmatpush.bf16.msra.mxu2 %v8733_v42  ;;  %v6081_v37 = vld [vmem:[#allocation7 + $0x5] sm:$0xff]  ;;  %v6082_v29 = vld [vmem:[#allocation7 + $0xd] sm:$0xff] }
 0x6f1   : > { %6006 = vmatmul.bf16.vlgmr.msra.gmra.mxu0 %v5949_v13  ;;  %v6148_v16 = vld [vmem:[#allocation7 + $0x6] sm:$0xff]  ;;  %v6149_v53 = vld [vmem:[#allocation7 + $0xe] sm:$0xff]  ;;  %v6083_v51 = vpack.c.bf16 %v6082_v29, %v6081_v37 }
 0x6f2   : > { %6073 = vmatmul.bf16.vlgmr.msrb.gmra.mxu1 %v6016_v31  ;;  %v6150_v26 = vpack.c.bf16 %v6149_v53, %v6148_v16 }
 0x6f4   : > { %6401 = vmatpush.bf16.msra.mxu2 %v8732_v6 }
 0x6f8   : > { %6402 = vmatpush.bf16.msra.mxu2 %v8731_v36 }
 0x6fc   : > { %6403 = vmatpush.bf16.msra.mxu2 %v8730_v11 }
 0x6ff   : > { %6140 = vmatmul.bf16.vlgmr.msrb.gmra.mxu2 %v6083_v51 }
 0x700   : > { %6207 = vmatmul.bf16.vlgmr.msra.gmra.mxu3 %v6150_v26  ;;  %6404 = vmatpush.bf16.msra.mxu2 %v8729_v38 }
 0x701   : > { %6274 = vmatmul.bf16.vlgmr.msrb.gmra.mxu0 %v6217_v8 }
 0x702   : > { %6341 = vmatmul.bf16.vlgmr.msra.gmra.mxu1 %v6284_v15 }
 0x704   : > { %6405 = vmatpush.bf16.msra.mxu2 %v8728_v0 }
 0x708   : > { %6406 = vmatpush.bf16.msra.mxu2 %v8727_v46 }
 0x70c   : > { %6407 = vmatpush.bf16.msra.mxu2 %v8726_v41 }
 0x70f   : > { %6408 = vmatmul.bf16.vlgmr.msra.gmra.mxu2 %v6351_v34 }
 0x76e   : > { %v6007_v52 = vpop.f32.mrf.mxu0 }
 0x76f   : > { %v6074_v9 = vpop.f32.mrf.mxu1 }
 0x772   : > { %v5880_v21 = vpop.f32.mrf.mxu2 }
 0x773   : > { %v5942_v25 = vpop.f32.mrf.mxu3 }
 0x774   : > { %v5943_v63 = vadd.f32 %v5942_v25, %v5880_v21 }
 0x776   : > { %v6009_v22 = vpop.f32.mrf.mxu0  ;;  %v6012_v12 = vadd.f32 %v6007_v52, %v5943_v63 }
 0x777   : > { %v6076_v14 = vpop.f32.mrf.mxu1 }
 0x778   : > { %v6079_v40 = vadd.f32 %v6074_v9, %v6012_v12 }
 0x77a   : > { %v5882_v57 = vpop.f32.mrf.mxu2 }
 0x77b   : > { %v5944_v58 = vpop.f32.mrf.mxu3 }
 0x77c   : > { %v5945_v47 = vadd.f32 %v5944_v58, %v5882_v57 }
 0x77e   : > { %v6013_v2 = vadd.f32 %v6009_v22, %v5945_v47  ;;  %v6275_v27 = vpop.f32.mrf.mxu0 }
 0x77f   : > { %v6342_v32 = vpop.f32.mrf.mxu1 }
 0x780   : > { %v6080_v39 = vadd.f32 %v6076_v14, %v6013_v2 }
 0x782   : > { %v6141_v28 = vpop.f32.mrf.mxu2 }
 0x783   : > { %v6208_v24 = vpop.f32.mrf.mxu3  ;;  %v6146_v5 = vadd.f32 %v6141_v28, %v6079_v40 }
 0x785   : > { %v6213_v56 = vadd.f32 %v6208_v24, %v6146_v5 }
 0x786   : > { %v6277_v61 = vpop.f32.mrf.mxu0 }
 0x787   : > { %v6280_v45 = vadd.f32 %v6275_v27, %v6213_v56  ;;  %v6344_v18 = vpop.f32.mrf.mxu1 }
 0x789   : > { %v6347_v43 = vadd.f32 %v6342_v32, %v6280_v45 }
 0x78a   : > { %v6143_v49 = vpop.f32.mrf.mxu2 }
 0x78b   : > { %v6147_v55 = vadd.f32 %v6143_v49, %v6080_v39  ;;  %v6210_v20 = vpop.f32.mrf.mxu3 }
 0x78d   : > { %v6214_v44 = vadd.f32 %v6210_v20, %v6147_v55 }
 0x78f   : > { %v6281_v7 = vadd.f32 %v6277_v61, %v6214_v44 }
 0x791   : > { %v6348_v1 = vadd.f32 %v6344_v18, %v6281_v7 }
 0x792   : > { %v6409_v54 = vpop.f32.mrf.mxu2 }
 0x793   : > { %v6414_v59 = vadd.f32 %v6409_v54, %v6347_v43 }
 0x795   : > { %v6419_v48 = vadd.f32 %v8785_v50, %v6414_v59 }
 0x797   : > { %v6421_v33 = vmax.f32 %v6419_v48, 0.0 }
 0x799   : > { %v6435_v60 = vmul.f32 %v11428_v4, %v6421_v33 }
 0x79a   : > { %v6411_v62 = vpop.f32.mrf.mxu2 }
 0x79b   : > { %v6415_v30 = vadd.f32 %v6411_v62, %v6348_v1 }
 0x79d   : > { %v6420_v17 = vadd.f32 %v8785_v50, %v6415_v30 }
 0x79f   : > { %v6422_v35 = vmax.f32 %v6420_v17, 0.0 }
 0x7a1   : > { %v6436_v13 = vmul.f32 %v10486_v3, %v6422_v35 }
 0x7a3   : > { %v6437_v10 = vadd.f32 %v6436_v13, %v6435_v60 }
 0x7a5   : > { %v6438_v42 = vrot.slane %v6437_v10, 4 }
 0x7a7   : > { %v6439_v31 = vadd.f32 %v6438_v42, %v6437_v10 }
 0x7a9   : > { %v6440_v6 = vrot.slane %v6439_v31, 2 }
 0x7ab   : > { %v6441_v36 = vadd.f32 %v6440_v6, %v6439_v31 }
 0x7ad   : > { %v6442_v11 = vrot.slane %v6441_v36, 1 }
 0x7af   : > { %v6443_v37 = vadd.f32 %v6442_v11, %v6441_v36 }
 0x7b1   : > { %v6444_v29 = vmul.f32 0.25, %v6443_v37 }
 0x7b3   : > { %6445 = vst [vmem:[%s594_s0] sm:$0x1] %v6444_v29 }
 0x7b4   : > { %8816 = shalt.err (!%p8813_p3)
}
 0x7b5   : > { %8735 = dma.vmem_to_hbm [thread:$0]  (%p8993_p5), %s6458_s24, 16, %s6460_s27, %s6447_s28  }
 0x7b6 PF: > { %s11430_s2 = sld [smem:[#allocation13_spill]] }
 0x7b7   : > { %s11431_s3 = sld [smem:[#allocation11_spill]] }
 0x7bc   : > { %p8741_p4 = scmp.ge.s32.totalorder %s11430_s2, 2 }
 0x7bd   : > { %s6471_s6 = sand.u32 1, %s11431_s3  }
 0x7be   : > { %p8738_p7 = pnand %p8741_p4, %p8997_p6  ;;  %s6472_s25 = scalar_lea.sflag [#allocation9], %s6471_s6 }
 0x7c0   : > { %p8739_p8 = pneg %p8738_p7 }
 0x7c2   : > { %8834 = dma.done.wait (%p8739_p8), %s6472_s25, 16  }
 0x7c3   : > { %8836 = vsyncadd (%p8739_p8), %s6472_s25, 4294967280  ;;  %s11433_s21 = sld [smem:[#allocation14_spill]]  ;;  %s11436_s0 = smov %s8843_s30 }
 0x7c4   : > { %s11434_s4 = sld [smem:[#allocation12_spill]] }
 0x7c5   : > { %s11435_s20 = sld [smem:[#allocation15_spill]] }
 0x7c9   : > { %p29_p9 = scmp.ge.s32.totalorder %s11433_s21, 4  }
 0x7ca   : > { %s11437_s30 = smov %s11434_s4 }
 0x7cb   :  { %31 = sbr.rel (!%p29_p9) target bundleno = 11 (0xb), region = 272 }
 0x7d0   :  { %6477 = vsyncpa [#allocation9], 1 }
 0x7d1   :  { %6479 = vsyncpa [#allocation9 + $0x1], 1 }

</bundles_post_ra>
